<compile_context>
chip_gen: v7x
topology: tpu7x:2x2x1
jax: 0.10.0
libtpu: 0.0.40
codegen_flags: <defaults>
</compile_context>

<pallas_src>
import functools

import jax
import jax.numpy as jnp
from jax.experimental import pallas as pl
from jax.experimental.pallas import tpu as pltpu


# ----------------------------------------------------------------------------
# Fused per-batch kernel
# ----------------------------------------------------------------------------

def _make_kernel(C, K, L, n_chunks):
    """C = dilation channels, K = Chebyshev order, L = N*Tp (lanes per batch)."""

    def mxu(a, b):
        # operands already bf16 (weights pre-cast on host, activations cast at
        # the call site), f32 accumulation.
        return jnp.dot(a, b, preferred_element_type=jnp.float32)

    def kernel(x_ref, g_ref, mf_ref, ml_ref,
               wres_ref, bres_ref, wt1_ref, bt1_ref,
               wg_ref, bg_ref, wt2_ref, bt2_ref,
               wf_ref, dmask_ref, sumt_ref, sumrow_ref, bfin_ref,
               out_ref):
        h = x_ref[...]                       # (C, L) f32, BN already applied
        mf = mf_ref[...]                     # (1, L) f32: kills x[t-1] at t==0
        ml = ml_ref[...]                     # (1, L) f32: kills x[t+1] at t==T-1

        def glu(xin, res, wt_ref, bt_ref, blk):
            # (1, Kt=3) temporal conv (padding 1) via lane rolls + border
            # masks, as 3 accumulated (2C, C) dots -- no concat materialized.
            # Rolls wrap across (n) groups / padded lanes, but the wrapped
            # values only land on masked (t==0 / t==T-1) or padded lanes.
            xb = xin.astype(jnp.bfloat16)
            xp = (pltpu.roll(xin, 1, axis=1) * mf).astype(jnp.bfloat16)
            xn = (pltpu.roll(xin, L - 1, axis=1) * ml).astype(jnp.bfloat16)
            t = (mxu(wt_ref[blk, 0], xp) + mxu(wt_ref[blk, 1], xb)
                 + mxu(wt_ref[blk, 2], xn) + bt_ref[blk])
            return (t[:C] + res) * jax.nn.sigmoid(t[C:])

        # --- three ST_BLOCK_4 blocks, fully unrolled, all VMEM-resident ------
        for blk in range(3):
            # residual 1x1 conv (c_in -> c_out)
            res = mxu(wres_ref[blk], h.astype(jnp.bfloat16)) + bres_ref[blk]
            # gated temporal conv 1
            h1 = glu(h, res, wt1_ref, bt1_ref, blk)
            # K-hop Chebyshev graph conv + relu.  Node mixing via the shared
            # per-batch (L, L) operator (t-diagonal, so padded t lanes never
            # mix into real lanes), channel projection accumulated per hop.
            h1b = h1.astype(jnp.bfloat16)
            acc = None
            for k in range(K):
                zk = mxu(h1b, g_ref[k]).astype(jnp.bfloat16)   # (C, L)
                term = mxu(wg_ref[blk, k], zk)                 # (C, L)
                acc = term if acc is None else acc + term
            h2 = jnp.maximum(acc + bg_ref[blk], 0.0)
            # gated temporal conv 2 (residual = graph-conv output)
            h = glu(h2, h2, wt2_ref, bt2_ref, blk)

        # --- final Conv2d(C -> out_dim, kernel (1, T)), chunked epilogue -----
        # y[(co,t*), (n,t)] = sum_c Wf[co,c,t*] h[c,(n,t)]; keep only t==t*
        # (real t only -> padded lanes drop out), sum t within each n, then
        # sum the t* row-groups.  0/1 reduction operators stay f32.
        hb = h.astype(jnp.bfloat16)
        out = None
        for c in range(n_chunks):
            y = mxu(wf_ref[c], hb) * dmask_ref[c]                           # (rows, L) f32
            p = jnp.dot(y, sumt_ref[...], preferred_element_type=jnp.float32)   # (rows, N)
            o = jnp.dot(sumrow_ref[c], p, preferred_element_type=jnp.float32)   # (out_dim, N)
            out = o if out is None else out + o
        out_ref[...] = (out + bfin_ref[...]).astype(out_ref.dtype)

    return kernel


# ----------------------------------------------------------------------------
# Plain-JAX (one-off, tiny) prep + wrapper
# ----------------------------------------------------------------------------

def _cheb_polys(adj, K):
    """T_0..T_{K-1} of adj (16x16 -> computed in plain JAX, not a kernel)."""
    N = adj.shape[0]
    polys = [jnp.eye(N, dtype=jnp.float32)]
    if K > 1:
        polys.append(adj.astype(jnp.float32))
    for _ in range(2, K):
        polys.append(2.0 * adj @ polys[-1] - polys[-2])
    return jnp.stack(polys[:K])                               # (K, N, N)


def _full_spec(arr):
    nd = arr.ndim
    return pl.BlockSpec(arr.shape, lambda b, _nd=nd: (0,) * _nd)


@functools.partial(jax.jit, static_argnames=("K", "Kt"))
def gated_stgcn_forward(x, adj, params, K=3, Kt=3):
    B, in_dim, N, T = x.shape
    C = params["w_res2"].shape[0]                 # dilation channels
    out_dim = params["w_final"].shape[0]
    assert Kt == 3, "kernel implements the (1,3) temporal window with padding 1"

    # pad T so per-batch lane count is a multiple of 128 (exact vreg/MXU tiles)
    Tp = ((T + 7) // 8) * 8
    L = N * Tp
    assert L % 128 == 0, "N * padded-T must be a multiple of 128 lanes"

    bf16 = jnp.bfloat16

    # ---- BatchNorm2d(in_dim, affine=False), training-mode stats, in wrapper -
    xf = x.astype(jnp.float32)
    mean = jnp.mean(xf, axis=(0, 2, 3), keepdims=True)
    var = jnp.mean(jnp.square(xf - mean), axis=(0, 2, 3), keepdims=True)
    xn = (xf - mean) * jax.lax.rsqrt(var + 1e-5)

    # ---- lane-dense per-batch layout: (B, C, N*Tp), zero-pad channels & time
    xn = jnp.pad(xn, ((0, 0), (0, C - in_dim), (0, 0), (0, Tp - T)))
    x3 = xn.reshape(B, C, L)

    # ---- per-batch graph operators: G_k[(n',t'),(n,t)] = lap[k,n,n'] d(t',t)
    lap = _cheb_polys(adj, K)
    eye_t = jnp.eye(Tp, dtype=jnp.float32)
    G = jnp.einsum('knm,st->kmsnt', lap, eye_t).reshape(K, L, L).astype(bf16)

    # ---- temporal border masks (zero the wrapped / padded-garbage lane)
    t_idx = jnp.arange(L, dtype=jnp.int32) % Tp
    mask_first = (t_idx != 0).astype(jnp.float32)[None, :]        # (1, L)
    mask_last = (t_idx != T - 1).astype(jnp.float32)[None, :]     # (1, L)

    # ---- weight prep (PyTorch layouts -> kernel layouts), block-1 channel pad
    def prep_res(w4, cin):            # (C, cin, 1, 1) -> (C, C) bf16
        return jnp.pad(w4[:, :, 0, 0], ((0, 0), (0, C - cin))).astype(bf16)

    def prep_temporal(w4, cin):       # (2C, cin, 1, Kt) -> (Kt, 2C, C) bf16
        w = jnp.pad(w4, ((0, 0), (0, C - cin), (0, 0), (0, 0)))[:, :, 0, :]
        return jnp.transpose(w, (2, 0, 1)).astype(bf16)

    w_res = jnp.stack([prep_res(params["w_res1"], in_dim),
                       prep_res(params["w_res2"], C),
                       prep_res(params["w_res3"], C)])
    b_res = jnp.stack([params["b_res1"], params["b_res2"],
                       params["b_res3"]])[:, :, None].astype(jnp.float32)
    w_t1 = jnp.stack([prep_temporal(params["w_t1_1"], in_dim),
                      prep_temporal(params["w_t1_2"], C),
                      prep_temporal(params["w_t1_3"], C)])
    b_t1 = jnp.stack([params["b_t1_1"], params["b_t1_2"],
                      params["b_t1_3"]])[:, :, None].astype(jnp.float32)
    w_t2 = jnp.stack([prep_temporal(params["w_t2_1"], C),
                      prep_temporal(params["w_t2_2"], C),
                      prep_temporal(params["w_t2_3"], C)])
    b_t2 = jnp.stack([params["b_t2_1"], params["b_t2_2"],
                      params["b_t2_3"]])[:, :, None].astype(jnp.float32)
    w_g = jnp.stack([params["w_g1"], params["w_g2"],
                     params["w_g3"]]).astype(bf16)                 # (3, K, C, C)
    b_g = jnp.stack([params["b_g1"], params["b_g2"],
                     params["b_g3"]])[:, :, None].astype(jnp.float32)

    # ---- final Conv2d(C, out_dim, (1, T)) as chunked constant operators -----
    n_chunks = 3 if out_dim % 3 == 0 else (2 if out_dim % 2 == 0 else 1)
    rows = (out_dim // n_chunks) * T

    w_final = params["w_final"]                                    # (out_dim, C, 1, T)
    wf = jnp.transpose(w_final[:, :, 0, :], (0, 2, 1)).reshape(out_dim * T, C)
    wf = wf.reshape(n_chunks, rows, C).astype(bf16)

    tstar = jnp.arange(out_dim * T, dtype=jnp.int32) % T
    dmask = (t_idx[None, :] == tstar[:, None]).astype(jnp.float32)      # (out_dim*T, L)
    dmask = dmask.reshape(n_chunks, rows, L)

    n_lane = jnp.arange(L, dtype=jnp.int32) // Tp
    sum_t = (n_lane[:, None] ==
             jnp.arange(N, dtype=jnp.int32)[None, :]).astype(jnp.float32)   # (L, N)

    co_of_row = jnp.arange(out_dim * T, dtype=jnp.int32) // T
    sum_row = (jnp.arange(out_dim, dtype=jnp.int32)[:, None] ==
               co_of_row[None, :]).astype(jnp.float32)                      # (out_dim, out_dim*T)
    sum_row = sum_row.reshape(out_dim, n_chunks, rows).transpose(1, 0, 2)   # (n_chunks, out_dim, rows)
    b_final = params["b_final"][:, None].astype(jnp.float32)                # (out_dim, 1)

    kernel = _make_kernel(C=C, K=K, L=L, n_chunks=n_chunks)

    out3 = pl.pallas_call(
        kernel,
        grid=(B,),
        in_specs=[
            pl.BlockSpec((None, C, L), lambda b: (b, 0, 0)),   # per-batch activations
            _full_spec(G), _full_spec(mask_first), _full_spec(mask_last),
            _full_spec(w_res), _full_spec(b_res),
            _full_spec(w_t1), _full_spec(b_t1),
            _full_spec(w_g), _full_spec(b_g),
            _full_spec(w_t2), _full_spec(b_t2),
            _full_spec(wf), _full_spec(dmask), _full_spec(sum_t),
            _full_spec(sum_row), _full_spec(b_final),
        ],
        out_specs=pl.BlockSpec((None, out_dim, N), lambda b: (b, 0, 0)),
        out_shape=jax.ShapeDtypeStruct((B, out_dim, N), jnp.float32),
        compiler_params=pltpu.CompilerParams(
            dimension_semantics=("parallel",),
            vmem_limit_bytes=8 * 1024 * 1024),
    )(x3, G, mask_first, mask_last,
      w_res, b_res, w_t1, b_t1, w_g, b_g, w_t2, b_t2,
      wf, dmask, sum_t, sum_row, b_final)

    out = out3[..., None]                                          # (B, out_dim, N, 1)
    return out, adj, adj


# ----------------------------------------------------------------------------
# Demo / smoke test
# ----------------------------------------------------------------------------

if __name__ == "__main__":
    key = jax.random.PRNGKey(0)
    B, in_dim, N, T = 2, 1, 16, 12            # (batch, in_dim, num_nodes, length)
    dil, K, Kt, out_dim = 32, 3, 3, 12

    keys = iter(jax.random.split(key, 40))

    def rnd(*shape, scale=0.1):
        return jax.random.normal(next(keys), shape, jnp.float32) * scale

    params = dict(
        # block 1 (in_dim -> dil)
        w_res1=rnd(dil, in_dim, 1, 1), b_res1=rnd(dil),
        w_t1_1=rnd(2 * dil, in_dim, 1, Kt), b_t1_1=rnd(2 * dil),
        w_g1=rnd(K, dil, dil), b_g1=rnd(dil),
        w_t2_1=rnd(2 * dil, dil, 1, Kt), b_t2_1=rnd(2 * dil),
        # block 2 (dil -> dil)
        w_res2=rnd(dil, dil, 1, 1), b_res2=rnd(dil),
        w_t1_2=rnd(2 * dil, dil, 1, Kt), b_t1_2=rnd(2 * dil),
        w_g2=rnd(K, dil, dil), b_g2=rnd(dil),
        w_t2_2=rnd(2 * dil, dil, 1, Kt), b_t2_2=rnd(2 * dil),
        # block 3 (dil -> dil)
        w_res3=rnd(dil, dil, 1, 1), b_res3=rnd(dil),
        w_t1_3=rnd(2 * dil, dil, 1, Kt), b_t1_3=rnd(2 * dil),
        w_g3=rnd(K, dil, dil), b_g3=rnd(dil),
        w_t2_3=rnd(2 * dil, dil, 1, Kt), b_t2_3=rnd(2 * dil),
        # final Conv2d(dil, 12, (1, T))
        w_final=rnd(out_dim, dil, 1, T), b_final=rnd(out_dim),
    )

    x = jax.random.normal(next(keys), (B, in_dim, N, T), jnp.float32)
    adj = jax.random.normal(next(keys), (N, N), jnp.float32) * 0.1     # supports[0]

    out, a1, a2 = gated_stgcn_forward(x, adj, params, K=K, Kt=Kt)
    jax.block_until_ready(out)
    assert out.shape == (B, out_dim, N, 1), out.shape
    assert a1.shape == (N, N) and a2.shape == (N, N)
    print("KERNEL_OK")
</pallas_src>

<mosaic_0001>
module attributes {stable_mosaic.version = 11 : i64} {
  func.func @kernel(%arg0: i32, %arg1: memref<1x32x256xf32, #tpu.memory_space<vmem>>, %arg2: memref<3x256x256xbf16, #tpu.memory_space<vmem>>, %arg3: memref<1x256xf32, #tpu.memory_space<vmem>>, %arg4: memref<1x256xf32, #tpu.memory_space<vmem>>, %arg5: memref<3x32x32xbf16, #tpu.memory_space<vmem>>, %arg6: memref<3x32x1xf32, #tpu.memory_space<vmem>>, %arg7: memref<3x3x64x32xbf16, #tpu.memory_space<vmem>>, %arg8: memref<3x64x1xf32, #tpu.memory_space<vmem>>, %arg9: memref<3x3x32x32xbf16, #tpu.memory_space<vmem>>, %arg10: memref<3x32x1xf32, #tpu.memory_space<vmem>>, %arg11: memref<3x3x64x32xbf16, #tpu.memory_space<vmem>>, %arg12: memref<3x64x1xf32, #tpu.memory_space<vmem>>, %arg13: memref<3x48x32xbf16, #tpu.memory_space<vmem>>, %arg14: memref<3x48x256xf32, #tpu.memory_space<vmem>>, %arg15: memref<256x16xf32, #tpu.memory_space<vmem>>, %arg16: memref<3x12x48xf32, #tpu.memory_space<vmem>>, %arg17: memref<12x1xf32, #tpu.memory_space<vmem>>, %arg18: memref<1x12x16xf32, #tpu.memory_space<vmem>>) attributes {dimension_semantics = [#tpu.dimension_semantics<parallel>], iteration_bounds = array<i64: 2>, scalar_prefetch = 0 : i64, scratch_operands = 0 : i64, tpu.core_type = #tpu.core_type<tc>, window_params = [{transform_indices = @transform_0, window_bounds = array<i64: 1, 32, 256>}, {pipeline_mode = #tpu.pipeline_mode<synchronous>, transform_indices = @transform_1, window_bounds = array<i64: 3, 256, 256>}, {pipeline_mode = #tpu.pipeline_mode<synchronous>, transform_indices = @transform_2, window_bounds = array<i64: 1, 256>}, {pipeline_mode = #tpu.pipeline_mode<synchronous>, transform_indices = @transform_3, window_bounds = array<i64: 1, 256>}, {pipeline_mode = #tpu.pipeline_mode<synchronous>, transform_indices = @transform_4, window_bounds = array<i64: 3, 32, 32>}, {pipeline_mode = #tpu.pipeline_mode<synchronous>, transform_indices = @transform_5, window_bounds = array<i64: 3, 32, 1>}, {pipeline_mode = #tpu.pipeline_mode<synchronous>, transform_indices = @transform_6, window_bounds = array<i64: 3, 3, 64, 32>}, {pipeline_mode = #tpu.pipeline_mode<synchronous>, transform_indices = @transform_7, window_bounds = array<i64: 3, 64, 1>}, {pipeline_mode = #tpu.pipeline_mode<synchronous>, transform_indices = @transform_8, window_bounds = array<i64: 3, 3, 32, 32>}, {pipeline_mode = #tpu.pipeline_mode<synchronous>, transform_indices = @transform_9, window_bounds = array<i64: 3, 32, 1>}, {pipeline_mode = #tpu.pipeline_mode<synchronous>, transform_indices = @transform_10, window_bounds = array<i64: 3, 3, 64, 32>}, {pipeline_mode = #tpu.pipeline_mode<synchronous>, transform_indices = @transform_11, window_bounds = array<i64: 3, 64, 1>}, {pipeline_mode = #tpu.pipeline_mode<synchronous>, transform_indices = @transform_12, window_bounds = array<i64: 3, 48, 32>}, {pipeline_mode = #tpu.pipeline_mode<synchronous>, transform_indices = @transform_13, window_bounds = array<i64: 3, 48, 256>}, {pipeline_mode = #tpu.pipeline_mode<synchronous>, transform_indices = @transform_14, window_bounds = array<i64: 256, 16>}, {pipeline_mode = #tpu.pipeline_mode<synchronous>, transform_indices = @transform_15, window_bounds = array<i64: 3, 12, 48>}, {pipeline_mode = #tpu.pipeline_mode<synchronous>, transform_indices = @transform_16, window_bounds = array<i64: 12, 1>}, {transform_indices = @transform_17, window_bounds = array<i64: 1, 12, 16>}]} {
    %c0 = arith.constant 0 : index
    %c0_0 = arith.constant 0 : index
    %c0_1 = arith.constant 0 : index
    %0 = vector.load %arg1[%c0, %c0_0, %c0_1] : memref<1x32x256xf32, #tpu.memory_space<vmem>>, vector<1x32x256xf32>
    %1 = vector.shape_cast %0 : vector<1x32x256xf32> to vector<32x256xf32>
    %c0_2 = arith.constant 0 : index
    %c0_3 = arith.constant 0 : index
    %2 = vector.load %arg3[%c0_2, %c0_3] : memref<1x256xf32, #tpu.memory_space<vmem>>, vector<1x256xf32>
    %c0_4 = arith.constant 0 : index
    %c0_5 = arith.constant 0 : index
    %3 = vector.load %arg4[%c0_4, %c0_5] : memref<1x256xf32, #tpu.memory_space<vmem>>, vector<1x256xf32>
    %c0_6 = arith.constant 0 : index
    %c0_7 = arith.constant 0 : index
    %c0_8 = arith.constant 0 : index
    %4 = vector.load %arg5[%c0_6, %c0_7, %c0_8] : memref<3x32x32xbf16, #tpu.memory_space<vmem>>, vector<1x32x32xbf16>
    %5 = vector.shape_cast %4 : vector<1x32x32xbf16> to vector<32x32xbf16>
    %6 = arith.truncf %1 : vector<32x256xf32> to vector<32x256xbf16>
    %cst = arith.constant dense<0.000000e+00> : vector<32x256xf32>
    %7 = tpu.matmul %5, %6, %cst {dimension_numbers = #tpu.dot_dimension_numbers<[1], [0], [0], [1], [0, 0, 1, 1], [], []>} : vector<32x32xbf16>, vector<32x256xbf16>, vector<32x256xf32> -> vector<32x256xf32>
    %c0_9 = arith.constant 0 : index
    %c0_10 = arith.constant 0 : index
    %c0_11 = arith.constant 0 : index
    %8 = vector.load %arg6[%c0_9, %c0_10, %c0_11] : memref<3x32x1xf32, #tpu.memory_space<vmem>>, vector<1x32x1xf32>
    %9 = vector.shape_cast %8 : vector<1x32x1xf32> to vector<32x1xf32>
    %10 = vector.broadcast %9 : vector<32x1xf32> to vector<32x256xf32>
    %11 = arith.addf %7, %10 : vector<32x256xf32>
    %12 = arith.truncf %1 : vector<32x256xf32> to vector<32x256xbf16>
    %c1_i32 = arith.constant 1 : i32
    %13 = tpu.dynamic_rotate %1 by %c1_i32 dim 1 : vector<32x256xf32>, i32 -> vector<32x256xf32>
    %14 = vector.broadcast %2 : vector<1x256xf32> to vector<32x256xf32>
    %15 = arith.mulf %13, %14 : vector<32x256xf32>
    %16 = arith.truncf %15 : vector<32x256xf32> to vector<32x256xbf16>
    %c255_i32 = arith.constant 255 : i32
    %17 = tpu.dynamic_rotate %1 by %c255_i32 dim 1 : vector<32x256xf32>, i32 -> vector<32x256xf32>
    %18 = vector.broadcast %3 : vector<1x256xf32> to vector<32x256xf32>
    %19 = arith.mulf %17, %18 : vector<32x256xf32>
    %20 = arith.truncf %19 : vector<32x256xf32> to vector<32x256xbf16>
    %c0_12 = arith.constant 0 : index
    %c0_13 = arith.constant 0 : index
    %c0_14 = arith.constant 0 : index
    %c0_15 = arith.constant 0 : index
    %21 = vector.load %arg7[%c0_12, %c0_13, %c0_14, %c0_15] : memref<3x3x64x32xbf16, #tpu.memory_space<vmem>>, vector<1x1x64x32xbf16>
    %22 = vector.shape_cast %21 : vector<1x1x64x32xbf16> to vector<64x32xbf16>
    %cst_16 = arith.constant dense<0.000000e+00> : vector<64x256xf32>
    %23 = tpu.matmul %22, %16, %cst_16 {dimension_numbers = #tpu.dot_dimension_numbers<[1], [0], [0], [1], [0, 0, 1, 1], [], []>} : vector<64x32xbf16>, vector<32x256xbf16>, vector<64x256xf32> -> vector<64x256xf32>
    %c0_17 = arith.constant 0 : index
    %c1 = arith.constant 1 : index
    %c0_18 = arith.constant 0 : index
    %c0_19 = arith.constant 0 : index
    %24 = vector.load %arg7[%c0_17, %c1, %c0_18, %c0_19] : memref<3x3x64x32xbf16, #tpu.memory_space<vmem>>, vector<1x1x64x32xbf16>
    %25 = vector.shape_cast %24 : vector<1x1x64x32xbf16> to vector<64x32xbf16>
    %cst_20 = arith.constant dense<0.000000e+00> : vector<64x256xf32>
    %26 = tpu.matmul %25, %12, %cst_20 {dimension_numbers = #tpu.dot_dimension_numbers<[1], [0], [0], [1], [0, 0, 1, 1], [], []>} : vector<64x32xbf16>, vector<32x256xbf16>, vector<64x256xf32> -> vector<64x256xf32>
    %27 = arith.addf %23, %26 : vector<64x256xf32>
    %c0_21 = arith.constant 0 : index
    %c2 = arith.constant 2 : index
    %c0_22 = arith.constant 0 : index
    %c0_23 = arith.constant 0 : index
    %28 = vector.load %arg7[%c0_21, %c2, %c0_22, %c0_23] : memref<3x3x64x32xbf16, #tpu.memory_space<vmem>>, vector<1x1x64x32xbf16>
    %29 = vector.shape_cast %28 : vector<1x1x64x32xbf16> to vector<64x32xbf16>
    %cst_24 = arith.constant dense<0.000000e+00> : vector<64x256xf32>
    %30 = tpu.matmul %29, %20, %cst_24 {dimension_numbers = #tpu.dot_dimension_numbers<[1], [0], [0], [1], [0, 0, 1, 1], [], []>} : vector<64x32xbf16>, vector<32x256xbf16>, vector<64x256xf32> -> vector<64x256xf32>
    %31 = arith.addf %27, %30 : vector<64x256xf32>
    %c0_25 = arith.constant 0 : index
    %c0_26 = arith.constant 0 : index
    %c0_27 = arith.constant 0 : index
    %32 = vector.load %arg8[%c0_25, %c0_26, %c0_27] : memref<3x64x1xf32, #tpu.memory_space<vmem>>, vector<1x64x1xf32>
    %33 = vector.shape_cast %32 : vector<1x64x1xf32> to vector<64x1xf32>
    %34 = vector.broadcast %33 : vector<64x1xf32> to vector<64x256xf32>
    %35 = arith.addf %31, %34 : vector<64x256xf32>
    %36 = vector.extract_strided_slice %35 {offsets = [0, 0], sizes = [32, 256], strides = [1, 1]} : vector<64x256xf32> to vector<32x256xf32>
    %37 = arith.addf %36, %11 : vector<32x256xf32>
    %38 = vector.extract_strided_slice %35 {offsets = [32, 0], sizes = [32, 256], strides = [1, 1]} : vector<64x256xf32> to vector<32x256xf32>
    %39 = arith.negf %38 : vector<32x256xf32>
    %40 = math.exp %39 : vector<32x256xf32>
    %cst_28 = arith.constant 1.000000e+00 : f32
    %41 = vector.broadcast %cst_28 : f32 to vector<32x256xf32>
    %42 = arith.addf %41, %40 : vector<32x256xf32>
    %43 = arith.divf %41, %42 : vector<32x256xf32>
    %44 = arith.mulf %37, %43 : vector<32x256xf32>
    %45 = arith.truncf %44 : vector<32x256xf32> to vector<32x256xbf16>
    %c0_29 = arith.constant 0 : index
    %c0_30 = arith.constant 0 : index
    %c0_31 = arith.constant 0 : index
    %46 = vector.load %arg2[%c0_29, %c0_30, %c0_31] : memref<3x256x256xbf16, #tpu.memory_space<vmem>>, vector<1x256x256xbf16>
    %47 = vector.shape_cast %46 : vector<1x256x256xbf16> to vector<256x256xbf16>
    %cst_32 = arith.constant dense<0.000000e+00> : vector<32x256xf32>
    %48 = tpu.matmul %45, %47, %cst_32 {dimension_numbers = #tpu.dot_dimension_numbers<[1], [0], [0], [1], [0, 0, 1, 1], [], []>} : vector<32x256xbf16>, vector<256x256xbf16>, vector<32x256xf32> -> vector<32x256xf32>
    %49 = arith.truncf %48 : vector<32x256xf32> to vector<32x256xbf16>
    %c0_33 = arith.constant 0 : index
    %c0_34 = arith.constant 0 : index
    %c0_35 = arith.constant 0 : index
    %c0_36 = arith.constant 0 : index
    %50 = vector.load %arg9[%c0_33, %c0_34, %c0_35, %c0_36] : memref<3x3x32x32xbf16, #tpu.memory_space<vmem>>, vector<1x1x32x32xbf16>
    %51 = vector.shape_cast %50 : vector<1x1x32x32xbf16> to vector<32x32xbf16>
    %cst_37 = arith.constant dense<0.000000e+00> : vector<32x256xf32>
    %52 = tpu.matmul %51, %49, %cst_37 {dimension_numbers = #tpu.dot_dimension_numbers<[1], [0], [0], [1], [0, 0, 1, 1], [], []>} : vector<32x32xbf16>, vector<32x256xbf16>, vector<32x256xf32> -> vector<32x256xf32>
    %c1_38 = arith.constant 1 : index
    %c0_39 = arith.constant 0 : index
    %c0_40 = arith.constant 0 : index
    %53 = vector.load %arg2[%c1_38, %c0_39, %c0_40] : memref<3x256x256xbf16, #tpu.memory_space<vmem>>, vector<1x256x256xbf16>
    %54 = vector.shape_cast %53 : vector<1x256x256xbf16> to vector<256x256xbf16>
    %cst_41 = arith.constant dense<0.000000e+00> : vector<32x256xf32>
    %55 = tpu.matmul %45, %54, %cst_41 {dimension_numbers = #tpu.dot_dimension_numbers<[1], [0], [0], [1], [0, 0, 1, 1], [], []>} : vector<32x256xbf16>, vector<256x256xbf16>, vector<32x256xf32> -> vector<32x256xf32>
    %56 = arith.truncf %55 : vector<32x256xf32> to vector<32x256xbf16>
    %c0_42 = arith.constant 0 : index
    %c1_43 = arith.constant 1 : index
    %c0_44 = arith.constant 0 : index
    %c0_45 = arith.constant 0 : index
    %57 = vector.load %arg9[%c0_42, %c1_43, %c0_44, %c0_45] : memref<3x3x32x32xbf16, #tpu.memory_space<vmem>>, vector<1x1x32x32xbf16>
    %58 = vector.shape_cast %57 : vector<1x1x32x32xbf16> to vector<32x32xbf16>
    %cst_46 = arith.constant dense<0.000000e+00> : vector<32x256xf32>
    %59 = tpu.matmul %58, %56, %cst_46 {dimension_numbers = #tpu.dot_dimension_numbers<[1], [0], [0], [1], [0, 0, 1, 1], [], []>} : vector<32x32xbf16>, vector<32x256xbf16>, vector<32x256xf32> -> vector<32x256xf32>
    %60 = arith.addf %52, %59 : vector<32x256xf32>
    %c2_47 = arith.constant 2 : index
    %c0_48 = arith.constant 0 : index
    %c0_49 = arith.constant 0 : index
    %61 = vector.load %arg2[%c2_47, %c0_48, %c0_49] : memref<3x256x256xbf16, #tpu.memory_space<vmem>>, vector<1x256x256xbf16>
    %62 = vector.shape_cast %61 : vector<1x256x256xbf16> to vector<256x256xbf16>
    %cst_50 = arith.constant dense<0.000000e+00> : vector<32x256xf32>
    %63 = tpu.matmul %45, %62, %cst_50 {dimension_numbers = #tpu.dot_dimension_numbers<[1], [0], [0], [1], [0, 0, 1, 1], [], []>} : vector<32x256xbf16>, vector<256x256xbf16>, vector<32x256xf32> -> vector<32x256xf32>
    %64 = arith.truncf %63 : vector<32x256xf32> to vector<32x256xbf16>
    %c0_51 = arith.constant 0 : index
    %c2_52 = arith.constant 2 : index
    %c0_53 = arith.constant 0 : index
    %c0_54 = arith.constant 0 : index
    %65 = vector.load %arg9[%c0_51, %c2_52, %c0_53, %c0_54] : memref<3x3x32x32xbf16, #tpu.memory_space<vmem>>, vector<1x1x32x32xbf16>
    %66 = vector.shape_cast %65 : vector<1x1x32x32xbf16> to vector<32x32xbf16>
    %cst_55 = arith.constant dense<0.000000e+00> : vector<32x256xf32>
    %67 = tpu.matmul %66, %64, %cst_55 {dimension_numbers = #tpu.dot_dimension_numbers<[1], [0], [0], [1], [0, 0, 1, 1], [], []>} : vector<32x32xbf16>, vector<32x256xbf16>, vector<32x256xf32> -> vector<32x256xf32>
    %68 = arith.addf %60, %67 : vector<32x256xf32>
    %c0_56 = arith.constant 0 : index
    %c0_57 = arith.constant 0 : index
    %c0_58 = arith.constant 0 : index
    %69 = vector.load %arg10[%c0_56, %c0_57, %c0_58] : memref<3x32x1xf32, #tpu.memory_space<vmem>>, vector<1x32x1xf32>
    %70 = vector.shape_cast %69 : vector<1x32x1xf32> to vector<32x1xf32>
    %71 = vector.broadcast %70 : vector<32x1xf32> to vector<32x256xf32>
    %72 = arith.addf %68, %71 : vector<32x256xf32>
    %cst_59 = arith.constant 0.000000e+00 : f32
    %73 = vector.broadcast %cst_59 : f32 to vector<32x256xf32>
    %74 = arith.maximumf %72, %73 : vector<32x256xf32>
    %75 = arith.truncf %74 : vector<32x256xf32> to vector<32x256xbf16>
    %c1_i32_60 = arith.constant 1 : i32
    %76 = tpu.dynamic_rotate %74 by %c1_i32_60 dim 1 : vector<32x256xf32>, i32 -> vector<32x256xf32>
    %77 = vector.broadcast %2 : vector<1x256xf32> to vector<32x256xf32>
    %78 = arith.mulf %76, %77 : vector<32x256xf32>
    %79 = arith.truncf %78 : vector<32x256xf32> to vector<32x256xbf16>
    %c255_i32_61 = arith.constant 255 : i32
    %80 = tpu.dynamic_rotate %74 by %c255_i32_61 dim 1 : vector<32x256xf32>, i32 -> vector<32x256xf32>
    %81 = vector.broadcast %3 : vector<1x256xf32> to vector<32x256xf32>
    %82 = arith.mulf %80, %81 : vector<32x256xf32>
    %83 = arith.truncf %82 : vector<32x256xf32> to vector<32x256xbf16>
    %c0_62 = arith.constant 0 : index
    %c0_63 = arith.constant 0 : index
    %c0_64 = arith.constant 0 : index
    %c0_65 = arith.constant 0 : index
    %84 = vector.load %arg11[%c0_62, %c0_63, %c0_64, %c0_65] : memref<3x3x64x32xbf16, #tpu.memory_space<vmem>>, vector<1x1x64x32xbf16>
    %85 = vector.shape_cast %84 : vector<1x1x64x32xbf16> to vector<64x32xbf16>
    %cst_66 = arith.constant dense<0.000000e+00> : vector<64x256xf32>
    %86 = tpu.matmul %85, %79, %cst_66 {dimension_numbers = #tpu.dot_dimension_numbers<[1], [0], [0], [1], [0, 0, 1, 1], [], []>} : vector<64x32xbf16>, vector<32x256xbf16>, vector<64x256xf32> -> vector<64x256xf32>
    %c0_67 = arith.constant 0 : index
    %c1_68 = arith.constant 1 : index
    %c0_69 = arith.constant 0 : index
    %c0_70 = arith.constant 0 : index
    %87 = vector.load %arg11[%c0_67, %c1_68, %c0_69, %c0_70] : memref<3x3x64x32xbf16, #tpu.memory_space<vmem>>, vector<1x1x64x32xbf16>
    %88 = vector.shape_cast %87 : vector<1x1x64x32xbf16> to vector<64x32xbf16>
    %cst_71 = arith.constant dense<0.000000e+00> : vector<64x256xf32>
    %89 = tpu.matmul %88, %75, %cst_71 {dimension_numbers = #tpu.dot_dimension_numbers<[1], [0], [0], [1], [0, 0, 1, 1], [], []>} : vector<64x32xbf16>, vector<32x256xbf16>, vector<64x256xf32> -> vector<64x256xf32>
    %90 = arith.addf %86, %89 : vector<64x256xf32>
    %c0_72 = arith.constant 0 : index
    %c2_73 = arith.constant 2 : index
    %c0_74 = arith.constant 0 : index
    %c0_75 = arith.constant 0 : index
    %91 = vector.load %arg11[%c0_72, %c2_73, %c0_74, %c0_75] : memref<3x3x64x32xbf16, #tpu.memory_space<vmem>>, vector<1x1x64x32xbf16>
    %92 = vector.shape_cast %91 : vector<1x1x64x32xbf16> to vector<64x32xbf16>
    %cst_76 = arith.constant dense<0.000000e+00> : vector<64x256xf32>
    %93 = tpu.matmul %92, %83, %cst_76 {dimension_numbers = #tpu.dot_dimension_numbers<[1], [0], [0], [1], [0, 0, 1, 1], [], []>} : vector<64x32xbf16>, vector<32x256xbf16>, vector<64x256xf32> -> vector<64x256xf32>
    %94 = arith.addf %90, %93 : vector<64x256xf32>
    %c0_77 = arith.constant 0 : index
    %c0_78 = arith.constant 0 : index
    %c0_79 = arith.constant 0 : index
    %95 = vector.load %arg12[%c0_77, %c0_78, %c0_79] : memref<3x64x1xf32, #tpu.memory_space<vmem>>, vector<1x64x1xf32>
    %96 = vector.shape_cast %95 : vector<1x64x1xf32> to vector<64x1xf32>
    %97 = vector.broadcast %96 : vector<64x1xf32> to vector<64x256xf32>
    %98 = arith.addf %94, %97 : vector<64x256xf32>
    %99 = vector.extract_strided_slice %98 {offsets = [0, 0], sizes = [32, 256], strides = [1, 1]} : vector<64x256xf32> to vector<32x256xf32>
    %100 = arith.addf %99, %74 : vector<32x256xf32>
    %101 = vector.extract_strided_slice %98 {offsets = [32, 0], sizes = [32, 256], strides = [1, 1]} : vector<64x256xf32> to vector<32x256xf32>
    %102 = arith.negf %101 : vector<32x256xf32>
    %103 = math.exp %102 : vector<32x256xf32>
    %cst_80 = arith.constant 1.000000e+00 : f32
    %104 = vector.broadcast %cst_80 : f32 to vector<32x256xf32>
    %105 = arith.addf %104, %103 : vector<32x256xf32>
    %106 = arith.divf %104, %105 : vector<32x256xf32>
    %107 = arith.mulf %100, %106 : vector<32x256xf32>
    %c1_81 = arith.constant 1 : index
    %c0_82 = arith.constant 0 : index
    %c0_83 = arith.constant 0 : index
    %108 = vector.load %arg5[%c1_81, %c0_82, %c0_83] : memref<3x32x32xbf16, #tpu.memory_space<vmem>>, vector<1x32x32xbf16>
    %109 = vector.shape_cast %108 : vector<1x32x32xbf16> to vector<32x32xbf16>
    %110 = arith.truncf %107 : vector<32x256xf32> to vector<32x256xbf16>
    %cst_84 = arith.constant dense<0.000000e+00> : vector<32x256xf32>
    %111 = tpu.matmul %109, %110, %cst_84 {dimension_numbers = #tpu.dot_dimension_numbers<[1], [0], [0], [1], [0, 0, 1, 1], [], []>} : vector<32x32xbf16>, vector<32x256xbf16>, vector<32x256xf32> -> vector<32x256xf32>
    %c1_85 = arith.constant 1 : index
    %c0_86 = arith.constant 0 : index
    %c0_87 = arith.constant 0 : index
    %112 = vector.load %arg6[%c1_85, %c0_86, %c0_87] : memref<3x32x1xf32, #tpu.memory_space<vmem>>, vector<1x32x1xf32>
    %113 = vector.shape_cast %112 : vector<1x32x1xf32> to vector<32x1xf32>
    %114 = vector.broadcast %113 : vector<32x1xf32> to vector<32x256xf32>
    %115 = arith.addf %111, %114 : vector<32x256xf32>
    %116 = arith.truncf %107 : vector<32x256xf32> to vector<32x256xbf16>
    %c1_i32_88 = arith.constant 1 : i32
    %117 = tpu.dynamic_rotate %107 by %c1_i32_88 dim 1 : vector<32x256xf32>, i32 -> vector<32x256xf32>
    %118 = vector.broadcast %2 : vector<1x256xf32> to vector<32x256xf32>
    %119 = arith.mulf %117, %118 : vector<32x256xf32>
    %120 = arith.truncf %119 : vector<32x256xf32> to vector<32x256xbf16>
    %c255_i32_89 = arith.constant 255 : i32
    %121 = tpu.dynamic_rotate %107 by %c255_i32_89 dim 1 : vector<32x256xf32>, i32 -> vector<32x256xf32>
    %122 = vector.broadcast %3 : vector<1x256xf32> to vector<32x256xf32>
    %123 = arith.mulf %121, %122 : vector<32x256xf32>
    %124 = arith.truncf %123 : vector<32x256xf32> to vector<32x256xbf16>
    %c1_90 = arith.constant 1 : index
    %c0_91 = arith.constant 0 : index
    %c0_92 = arith.constant 0 : index
    %c0_93 = arith.constant 0 : index
    %125 = vector.load %arg7[%c1_90, %c0_91, %c0_92, %c0_93] : memref<3x3x64x32xbf16, #tpu.memory_space<vmem>>, vector<1x1x64x32xbf16>
    %126 = vector.shape_cast %125 : vector<1x1x64x32xbf16> to vector<64x32xbf16>
    %cst_94 = arith.constant dense<0.000000e+00> : vector<64x256xf32>
    %127 = tpu.matmul %126, %120, %cst_94 {dimension_numbers = #tpu.dot_dimension_numbers<[1], [0], [0], [1], [0, 0, 1, 1], [], []>} : vector<64x32xbf16>, vector<32x256xbf16>, vector<64x256xf32> -> vector<64x256xf32>
    %c1_95 = arith.constant 1 : index
    %c1_96 = arith.constant 1 : index
    %c0_97 = arith.constant 0 : index
    %c0_98 = arith.constant 0 : index
    %128 = vector.load %arg7[%c1_95, %c1_96, %c0_97, %c0_98] : memref<3x3x64x32xbf16, #tpu.memory_space<vmem>>, vector<1x1x64x32xbf16>
    %129 = vector.shape_cast %128 : vector<1x1x64x32xbf16> to vector<64x32xbf16>
    %cst_99 = arith.constant dense<0.000000e+00> : vector<64x256xf32>
    %130 = tpu.matmul %129, %116, %cst_99 {dimension_numbers = #tpu.dot_dimension_numbers<[1], [0], [0], [1], [0, 0, 1, 1], [], []>} : vector<64x32xbf16>, vector<32x256xbf16>, vector<64x256xf32> -> vector<64x256xf32>
    %131 = arith.addf %127, %130 : vector<64x256xf32>
    %c1_100 = arith.constant 1 : index
    %c2_101 = arith.constant 2 : index
    %c0_102 = arith.constant 0 : index
    %c0_103 = arith.constant 0 : index
    %132 = vector.load %arg7[%c1_100, %c2_101, %c0_102, %c0_103] : memref<3x3x64x32xbf16, #tpu.memory_space<vmem>>, vector<1x1x64x32xbf16>
    %133 = vector.shape_cast %132 : vector<1x1x64x32xbf16> to vector<64x32xbf16>
    %cst_104 = arith.constant dense<0.000000e+00> : vector<64x256xf32>
    %134 = tpu.matmul %133, %124, %cst_104 {dimension_numbers = #tpu.dot_dimension_numbers<[1], [0], [0], [1], [0, 0, 1, 1], [], []>} : vector<64x32xbf16>, vector<32x256xbf16>, vector<64x256xf32> -> vector<64x256xf32>
    %135 = arith.addf %131, %134 : vector<64x256xf32>
    %c1_105 = arith.constant 1 : index
    %c0_106 = arith.constant 0 : index
    %c0_107 = arith.constant 0 : index
    %136 = vector.load %arg8[%c1_105, %c0_106, %c0_107] : memref<3x64x1xf32, #tpu.memory_space<vmem>>, vector<1x64x1xf32>
    %137 = vector.shape_cast %136 : vector<1x64x1xf32> to vector<64x1xf32>
    %138 = vector.broadcast %137 : vector<64x1xf32> to vector<64x256xf32>
    %139 = arith.addf %135, %138 : vector<64x256xf32>
    %140 = vector.extract_strided_slice %139 {offsets = [0, 0], sizes = [32, 256], strides = [1, 1]} : vector<64x256xf32> to vector<32x256xf32>
    %141 = arith.addf %140, %115 : vector<32x256xf32>
    %142 = vector.extract_strided_slice %139 {offsets = [32, 0], sizes = [32, 256], strides = [1, 1]} : vector<64x256xf32> to vector<32x256xf32>
    %143 = arith.negf %142 : vector<32x256xf32>
    %144 = math.exp %143 : vector<32x256xf32>
    %cst_108 = arith.constant 1.000000e+00 : f32
    %145 = vector.broadcast %cst_108 : f32 to vector<32x256xf32>
    %146 = arith.addf %145, %144 : vector<32x256xf32>
    %147 = arith.divf %145, %146 : vector<32x256xf32>
    %148 = arith.mulf %141, %147 : vector<32x256xf32>
    %149 = arith.truncf %148 : vector<32x256xf32> to vector<32x256xbf16>
    %c0_109 = arith.constant 0 : index
    %c0_110 = arith.constant 0 : index
    %c0_111 = arith.constant 0 : index
    %150 = vector.load %arg2[%c0_109, %c0_110, %c0_111] : memref<3x256x256xbf16, #tpu.memory_space<vmem>>, vector<1x256x256xbf16>
    %151 = vector.shape_cast %150 : vector<1x256x256xbf16> to vector<256x256xbf16>
    %cst_112 = arith.constant dense<0.000000e+00> : vector<32x256xf32>
    %152 = tpu.matmul %149, %151, %cst_112 {dimension_numbers = #tpu.dot_dimension_numbers<[1], [0], [0], [1], [0, 0, 1, 1], [], []>} : vector<32x256xbf16>, vector<256x256xbf16>, vector<32x256xf32> -> vector<32x256xf32>
    %153 = arith.truncf %152 : vector<32x256xf32> to vector<32x256xbf16>
    %c1_113 = arith.constant 1 : index
    %c0_114 = arith.constant 0 : index
    %c0_115 = arith.constant 0 : index
    %c0_116 = arith.constant 0 : index
    %154 = vector.load %arg9[%c1_113, %c0_114, %c0_115, %c0_116] : memref<3x3x32x32xbf16, #tpu.memory_space<vmem>>, vector<1x1x32x32xbf16>
    %155 = vector.shape_cast %154 : vector<1x1x32x32xbf16> to vector<32x32xbf16>
    %cst_117 = arith.constant dense<0.000000e+00> : vector<32x256xf32>
    %156 = tpu.matmul %155, %153, %cst_117 {dimension_numbers = #tpu.dot_dimension_numbers<[1], [0], [0], [1], [0, 0, 1, 1], [], []>} : vector<32x32xbf16>, vector<32x256xbf16>, vector<32x256xf32> -> vector<32x256xf32>
    %c1_118 = arith.constant 1 : index
    %c0_119 = arith.constant 0 : index
    %c0_120 = arith.constant 0 : index
    %157 = vector.load %arg2[%c1_118, %c0_119, %c0_120] : memref<3x256x256xbf16, #tpu.memory_space<vmem>>, vector<1x256x256xbf16>
    %158 = vector.shape_cast %157 : vector<1x256x256xbf16> to vector<256x256xbf16>
    %cst_121 = arith.constant dense<0.000000e+00> : vector<32x256xf32>
    %159 = tpu.matmul %149, %158, %cst_121 {dimension_numbers = #tpu.dot_dimension_numbers<[1], [0], [0], [1], [0, 0, 1, 1], [], []>} : vector<32x256xbf16>, vector<256x256xbf16>, vector<32x256xf32> -> vector<32x256xf32>
    %160 = arith.truncf %159 : vector<32x256xf32> to vector<32x256xbf16>
    %c1_122 = arith.constant 1 : index
    %c1_123 = arith.constant 1 : index
    %c0_124 = arith.constant 0 : index
    %c0_125 = arith.constant 0 : index
    %161 = vector.load %arg9[%c1_122, %c1_123, %c0_124, %c0_125] : memref<3x3x32x32xbf16, #tpu.memory_space<vmem>>, vector<1x1x32x32xbf16>
    %162 = vector.shape_cast %161 : vector<1x1x32x32xbf16> to vector<32x32xbf16>
    %cst_126 = arith.constant dense<0.000000e+00> : vector<32x256xf32>
    %163 = tpu.matmul %162, %160, %cst_126 {dimension_numbers = #tpu.dot_dimension_numbers<[1], [0], [0], [1], [0, 0, 1, 1], [], []>} : vector<32x32xbf16>, vector<32x256xbf16>, vector<32x256xf32> -> vector<32x256xf32>
    %164 = arith.addf %156, %163 : vector<32x256xf32>
    %c2_127 = arith.constant 2 : index
    %c0_128 = arith.constant 0 : index
    %c0_129 = arith.constant 0 : index
    %165 = vector.load %arg2[%c2_127, %c0_128, %c0_129] : memref<3x256x256xbf16, #tpu.memory_space<vmem>>, vector<1x256x256xbf16>
    %166 = vector.shape_cast %165 : vector<1x256x256xbf16> to vector<256x256xbf16>
    %cst_130 = arith.constant dense<0.000000e+00> : vector<32x256xf32>
    %167 = tpu.matmul %149, %166, %cst_130 {dimension_numbers = #tpu.dot_dimension_numbers<[1], [0], [0], [1], [0, 0, 1, 1], [], []>} : vector<32x256xbf16>, vector<256x256xbf16>, vector<32x256xf32> -> vector<32x256xf32>
    %168 = arith.truncf %167 : vector<32x256xf32> to vector<32x256xbf16>
    %c1_131 = arith.constant 1 : index
    %c2_132 = arith.constant 2 : index
    %c0_133 = arith.constant 0 : index
    %c0_134 = arith.constant 0 : index
    %169 = vector.load %arg9[%c1_131, %c2_132, %c0_133, %c0_134] : memref<3x3x32x32xbf16, #tpu.memory_space<vmem>>, vector<1x1x32x32xbf16>
    %170 = vector.shape_cast %169 : vector<1x1x32x32xbf16> to vector<32x32xbf16>
    %cst_135 = arith.constant dense<0.000000e+00> : vector<32x256xf32>
    %171 = tpu.matmul %170, %168, %cst_135 {dimension_numbers = #tpu.dot_dimension_numbers<[1], [0], [0], [1], [0, 0, 1, 1], [], []>} : vector<32x32xbf16>, vector<32x256xbf16>, vector<32x256xf32> -> vector<32x256xf32>
    %172 = arith.addf %164, %171 : vector<32x256xf32>
    %c1_136 = arith.constant 1 : index
    %c0_137 = arith.constant 0 : index
    %c0_138 = arith.constant 0 : index
    %173 = vector.load %arg10[%c1_136, %c0_137, %c0_138] : memref<3x32x1xf32, #tpu.memory_space<vmem>>, vector<1x32x1xf32>
    %174 = vector.shape_cast %173 : vector<1x32x1xf32> to vector<32x1xf32>
    %175 = vector.broadcast %174 : vector<32x1xf32> to vector<32x256xf32>
    %176 = arith.addf %172, %175 : vector<32x256xf32>
    %cst_139 = arith.constant 0.000000e+00 : f32
    %177 = vector.broadcast %cst_139 : f32 to vector<32x256xf32>
    %178 = arith.maximumf %176, %177 : vector<32x256xf32>
    %179 = arith.truncf %178 : vector<32x256xf32> to vector<32x256xbf16>
    %c1_i32_140 = arith.constant 1 : i32
    %180 = tpu.dynamic_rotate %178 by %c1_i32_140 dim 1 : vector<32x256xf32>, i32 -> vector<32x256xf32>
    %181 = vector.broadcast %2 : vector<1x256xf32> to vector<32x256xf32>
    %182 = arith.mulf %180, %181 : vector<32x256xf32>
    %183 = arith.truncf %182 : vector<32x256xf32> to vector<32x256xbf16>
    %c255_i32_141 = arith.constant 255 : i32
    %184 = tpu.dynamic_rotate %178 by %c255_i32_141 dim 1 : vector<32x256xf32>, i32 -> vector<32x256xf32>
    %185 = vector.broadcast %3 : vector<1x256xf32> to vector<32x256xf32>
    %186 = arith.mulf %184, %185 : vector<32x256xf32>
    %187 = arith.truncf %186 : vector<32x256xf32> to vector<32x256xbf16>
    %c1_142 = arith.constant 1 : index
    %c0_143 = arith.constant 0 : index
    %c0_144 = arith.constant 0 : index
    %c0_145 = arith.constant 0 : index
    %188 = vector.load %arg11[%c1_142, %c0_143, %c0_144, %c0_145] : memref<3x3x64x32xbf16, #tpu.memory_space<vmem>>, vector<1x1x64x32xbf16>
    %189 = vector.shape_cast %188 : vector<1x1x64x32xbf16> to vector<64x32xbf16>
    %cst_146 = arith.constant dense<0.000000e+00> : vector<64x256xf32>
    %190 = tpu.matmul %189, %183, %cst_146 {dimension_numbers = #tpu.dot_dimension_numbers<[1], [0], [0], [1], [0, 0, 1, 1], [], []>} : vector<64x32xbf16>, vector<32x256xbf16>, vector<64x256xf32> -> vector<64x256xf32>
    %c1_147 = arith.constant 1 : index
    %c1_148 = arith.constant 1 : index
    %c0_149 = arith.constant 0 : index
    %c0_150 = arith.constant 0 : index
    %191 = vector.load %arg11[%c1_147, %c1_148, %c0_149, %c0_150] : memref<3x3x64x32xbf16, #tpu.memory_space<vmem>>, vector<1x1x64x32xbf16>
    %192 = vector.shape_cast %191 : vector<1x1x64x32xbf16> to vector<64x32xbf16>
    %cst_151 = arith.constant dense<0.000000e+00> : vector<64x256xf32>
    %193 = tpu.matmul %192, %179, %cst_151 {dimension_numbers = #tpu.dot_dimension_numbers<[1], [0], [0], [1], [0, 0, 1, 1], [], []>} : vector<64x32xbf16>, vector<32x256xbf16>, vector<64x256xf32> -> vector<64x256xf32>
    %194 = arith.addf %190, %193 : vector<64x256xf32>
    %c1_152 = arith.constant 1 : index
    %c2_153 = arith.constant 2 : index
    %c0_154 = arith.constant 0 : index
    %c0_155 = arith.constant 0 : index
    %195 = vector.load %arg11[%c1_152, %c2_153, %c0_154, %c0_155] : memref<3x3x64x32xbf16, #tpu.memory_space<vmem>>, vector<1x1x64x32xbf16>
    %196 = vector.shape_cast %195 : vector<1x1x64x32xbf16> to vector<64x32xbf16>
    %cst_156 = arith.constant dense<0.000000e+00> : vector<64x256xf32>
    %197 = tpu.matmul %196, %187, %cst_156 {dimension_numbers = #tpu.dot_dimension_numbers<[1], [0], [0], [1], [0, 0, 1, 1], [], []>} : vector<64x32xbf16>, vector<32x256xbf16>, vector<64x256xf32> -> vector<64x256xf32>
    %198 = arith.addf %194, %197 : vector<64x256xf32>
    %c1_157 = arith.constant 1 : index
    %c0_158 = arith.constant 0 : index
    %c0_159 = arith.constant 0 : index
    %199 = vector.load %arg12[%c1_157, %c0_158, %c0_159] : memref<3x64x1xf32, #tpu.memory_space<vmem>>, vector<1x64x1xf32>
    %200 = vector.shape_cast %199 : vector<1x64x1xf32> to vector<64x1xf32>
    %201 = vector.broadcast %200 : vector<64x1xf32> to vector<64x256xf32>
    %202 = arith.addf %198, %201 : vector<64x256xf32>
    %203 = vector.extract_strided_slice %202 {offsets = [0, 0], sizes = [32, 256], strides = [1, 1]} : vector<64x256xf32> to vector<32x256xf32>
    %204 = arith.addf %203, %178 : vector<32x256xf32>
    %205 = vector.extract_strided_slice %202 {offsets = [32, 0], sizes = [32, 256], strides = [1, 1]} : vector<64x256xf32> to vector<32x256xf32>
    %206 = arith.negf %205 : vector<32x256xf32>
    %207 = math.exp %206 : vector<32x256xf32>
    %cst_160 = arith.constant 1.000000e+00 : f32
    %208 = vector.broadcast %cst_160 : f32 to vector<32x256xf32>
    %209 = arith.addf %208, %207 : vector<32x256xf32>
    %210 = arith.divf %208, %209 : vector<32x256xf32>
    %211 = arith.mulf %204, %210 : vector<32x256xf32>
    %c2_161 = arith.constant 2 : index
    %c0_162 = arith.constant 0 : index
    %c0_163 = arith.constant 0 : index
    %212 = vector.load %arg5[%c2_161, %c0_162, %c0_163] : memref<3x32x32xbf16, #tpu.memory_space<vmem>>, vector<1x32x32xbf16>
    %213 = vector.shape_cast %212 : vector<1x32x32xbf16> to vector<32x32xbf16>
    %214 = arith.truncf %211 : vector<32x256xf32> to vector<32x256xbf16>
    %cst_164 = arith.constant dense<0.000000e+00> : vector<32x256xf32>
    %215 = tpu.matmul %213, %214, %cst_164 {dimension_numbers = #tpu.dot_dimension_numbers<[1], [0], [0], [1], [0, 0, 1, 1], [], []>} : vector<32x32xbf16>, vector<32x256xbf16>, vector<32x256xf32> -> vector<32x256xf32>
    %c2_165 = arith.constant 2 : index
    %c0_166 = arith.constant 0 : index
    %c0_167 = arith.constant 0 : index
    %216 = vector.load %arg6[%c2_165, %c0_166, %c0_167] : memref<3x32x1xf32, #tpu.memory_space<vmem>>, vector<1x32x1xf32>
    %217 = vector.shape_cast %216 : vector<1x32x1xf32> to vector<32x1xf32>
    %218 = vector.broadcast %217 : vector<32x1xf32> to vector<32x256xf32>
    %219 = arith.addf %215, %218 : vector<32x256xf32>
    %220 = arith.truncf %211 : vector<32x256xf32> to vector<32x256xbf16>
    %c1_i32_168 = arith.constant 1 : i32
    %221 = tpu.dynamic_rotate %211 by %c1_i32_168 dim 1 : vector<32x256xf32>, i32 -> vector<32x256xf32>
    %222 = vector.broadcast %2 : vector<1x256xf32> to vector<32x256xf32>
    %223 = arith.mulf %221, %222 : vector<32x256xf32>
    %224 = arith.truncf %223 : vector<32x256xf32> to vector<32x256xbf16>
    %c255_i32_169 = arith.constant 255 : i32
    %225 = tpu.dynamic_rotate %211 by %c255_i32_169 dim 1 : vector<32x256xf32>, i32 -> vector<32x256xf32>
    %226 = vector.broadcast %3 : vector<1x256xf32> to vector<32x256xf32>
    %227 = arith.mulf %225, %226 : vector<32x256xf32>
    %228 = arith.truncf %227 : vector<32x256xf32> to vector<32x256xbf16>
    %c2_170 = arith.constant 2 : index
    %c0_171 = arith.constant 0 : index
    %c0_172 = arith.constant 0 : index
    %c0_173 = arith.constant 0 : index
    %229 = vector.load %arg7[%c2_170, %c0_171, %c0_172, %c0_173] : memref<3x3x64x32xbf16, #tpu.memory_space<vmem>>, vector<1x1x64x32xbf16>
    %230 = vector.shape_cast %229 : vector<1x1x64x32xbf16> to vector<64x32xbf16>
    %cst_174 = arith.constant dense<0.000000e+00> : vector<64x256xf32>
    %231 = tpu.matmul %230, %224, %cst_174 {dimension_numbers = #tpu.dot_dimension_numbers<[1], [0], [0], [1], [0, 0, 1, 1], [], []>} : vector<64x32xbf16>, vector<32x256xbf16>, vector<64x256xf32> -> vector<64x256xf32>
    %c2_175 = arith.constant 2 : index
    %c1_176 = arith.constant 1 : index
    %c0_177 = arith.constant 0 : index
    %c0_178 = arith.constant 0 : index
    %232 = vector.load %arg7[%c2_175, %c1_176, %c0_177, %c0_178] : memref<3x3x64x32xbf16, #tpu.memory_space<vmem>>, vector<1x1x64x32xbf16>
    %233 = vector.shape_cast %232 : vector<1x1x64x32xbf16> to vector<64x32xbf16>
    %cst_179 = arith.constant dense<0.000000e+00> : vector<64x256xf32>
    %234 = tpu.matmul %233, %220, %cst_179 {dimension_numbers = #tpu.dot_dimension_numbers<[1], [0], [0], [1], [0, 0, 1, 1], [], []>} : vector<64x32xbf16>, vector<32x256xbf16>, vector<64x256xf32> -> vector<64x256xf32>
    %235 = arith.addf %231, %234 : vector<64x256xf32>
    %c2_180 = arith.constant 2 : index
    %c2_181 = arith.constant 2 : index
    %c0_182 = arith.constant 0 : index
    %c0_183 = arith.constant 0 : index
    %236 = vector.load %arg7[%c2_180, %c2_181, %c0_182, %c0_183] : memref<3x3x64x32xbf16, #tpu.memory_space<vmem>>, vector<1x1x64x32xbf16>
    %237 = vector.shape_cast %236 : vector<1x1x64x32xbf16> to vector<64x32xbf16>
    %cst_184 = arith.constant dense<0.000000e+00> : vector<64x256xf32>
    %238 = tpu.matmul %237, %228, %cst_184 {dimension_numbers = #tpu.dot_dimension_numbers<[1], [0], [0], [1], [0, 0, 1, 1], [], []>} : vector<64x32xbf16>, vector<32x256xbf16>, vector<64x256xf32> -> vector<64x256xf32>
    %239 = arith.addf %235, %238 : vector<64x256xf32>
    %c2_185 = arith.constant 2 : index
    %c0_186 = arith.constant 0 : index
    %c0_187 = arith.constant 0 : index
    %240 = vector.load %arg8[%c2_185, %c0_186, %c0_187] : memref<3x64x1xf32, #tpu.memory_space<vmem>>, vector<1x64x1xf32>
    %241 = vector.shape_cast %240 : vector<1x64x1xf32> to vector<64x1xf32>
    %242 = vector.broadcast %241 : vector<64x1xf32> to vector<64x256xf32>
    %243 = arith.addf %239, %242 : vector<64x256xf32>
    %244 = vector.extract_strided_slice %243 {offsets = [0, 0], sizes = [32, 256], strides = [1, 1]} : vector<64x256xf32> to vector<32x256xf32>
    %245 = arith.addf %244, %219 : vector<32x256xf32>
    %246 = vector.extract_strided_slice %243 {offsets = [32, 0], sizes = [32, 256], strides = [1, 1]} : vector<64x256xf32> to vector<32x256xf32>
    %247 = arith.negf %246 : vector<32x256xf32>
    %248 = math.exp %247 : vector<32x256xf32>
    %cst_188 = arith.constant 1.000000e+00 : f32
    %249 = vector.broadcast %cst_188 : f32 to vector<32x256xf32>
    %250 = arith.addf %249, %248 : vector<32x256xf32>
    %251 = arith.divf %249, %250 : vector<32x256xf32>
    %252 = arith.mulf %245, %251 : vector<32x256xf32>
    %253 = arith.truncf %252 : vector<32x256xf32> to vector<32x256xbf16>
    %c0_189 = arith.constant 0 : index
    %c0_190 = arith.constant 0 : index
    %c0_191 = arith.constant 0 : index
    %254 = vector.load %arg2[%c0_189, %c0_190, %c0_191] : memref<3x256x256xbf16, #tpu.memory_space<vmem>>, vector<1x256x256xbf16>
    %255 = vector.shape_cast %254 : vector<1x256x256xbf16> to vector<256x256xbf16>
    %cst_192 = arith.constant dense<0.000000e+00> : vector<32x256xf32>
    %256 = tpu.matmul %253, %255, %cst_192 {dimension_numbers = #tpu.dot_dimension_numbers<[1], [0], [0], [1], [0, 0, 1, 1], [], []>} : vector<32x256xbf16>, vector<256x256xbf16>, vector<32x256xf32> -> vector<32x256xf32>
    %257 = arith.truncf %256 : vector<32x256xf32> to vector<32x256xbf16>
    %c2_193 = arith.constant 2 : index
    %c0_194 = arith.constant 0 : index
    %c0_195 = arith.constant 0 : index
    %c0_196 = arith.constant 0 : index
    %258 = vector.load %arg9[%c2_193, %c0_194, %c0_195, %c0_196] : memref<3x3x32x32xbf16, #tpu.memory_space<vmem>>, vector<1x1x32x32xbf16>
    %259 = vector.shape_cast %258 : vector<1x1x32x32xbf16> to vector<32x32xbf16>
    %cst_197 = arith.constant dense<0.000000e+00> : vector<32x256xf32>
    %260 = tpu.matmul %259, %257, %cst_197 {dimension_numbers = #tpu.dot_dimension_numbers<[1], [0], [0], [1], [0, 0, 1, 1], [], []>} : vector<32x32xbf16>, vector<32x256xbf16>, vector<32x256xf32> -> vector<32x256xf32>
    %c1_198 = arith.constant 1 : index
    %c0_199 = arith.constant 0 : index
    %c0_200 = arith.constant 0 : index
    %261 = vector.load %arg2[%c1_198, %c0_199, %c0_200] : memref<3x256x256xbf16, #tpu.memory_space<vmem>>, vector<1x256x256xbf16>
    %262 = vector.shape_cast %261 : vector<1x256x256xbf16> to vector<256x256xbf16>
    %cst_201 = arith.constant dense<0.000000e+00> : vector<32x256xf32>
    %263 = tpu.matmul %253, %262, %cst_201 {dimension_numbers = #tpu.dot_dimension_numbers<[1], [0], [0], [1], [0, 0, 1, 1], [], []>} : vector<32x256xbf16>, vector<256x256xbf16>, vector<32x256xf32> -> vector<32x256xf32>
    %264 = arith.truncf %263 : vector<32x256xf32> to vector<32x256xbf16>
    %c2_202 = arith.constant 2 : index
    %c1_203 = arith.constant 1 : index
    %c0_204 = arith.constant 0 : index
    %c0_205 = arith.constant 0 : index
    %265 = vector.load %arg9[%c2_202, %c1_203, %c0_204, %c0_205] : memref<3x3x32x32xbf16, #tpu.memory_space<vmem>>, vector<1x1x32x32xbf16>
    %266 = vector.shape_cast %265 : vector<1x1x32x32xbf16> to vector<32x32xbf16>
    %cst_206 = arith.constant dense<0.000000e+00> : vector<32x256xf32>
    %267 = tpu.matmul %266, %264, %cst_206 {dimension_numbers = #tpu.dot_dimension_numbers<[1], [0], [0], [1], [0, 0, 1, 1], [], []>} : vector<32x32xbf16>, vector<32x256xbf16>, vector<32x256xf32> -> vector<32x256xf32>
    %268 = arith.addf %260, %267 : vector<32x256xf32>
    %c2_207 = arith.constant 2 : index
    %c0_208 = arith.constant 0 : index
    %c0_209 = arith.constant 0 : index
    %269 = vector.load %arg2[%c2_207, %c0_208, %c0_209] : memref<3x256x256xbf16, #tpu.memory_space<vmem>>, vector<1x256x256xbf16>
    %270 = vector.shape_cast %269 : vector<1x256x256xbf16> to vector<256x256xbf16>
    %cst_210 = arith.constant dense<0.000000e+00> : vector<32x256xf32>
    %271 = tpu.matmul %253, %270, %cst_210 {dimension_numbers = #tpu.dot_dimension_numbers<[1], [0], [0], [1], [0, 0, 1, 1], [], []>} : vector<32x256xbf16>, vector<256x256xbf16>, vector<32x256xf32> -> vector<32x256xf32>
    %272 = arith.truncf %271 : vector<32x256xf32> to vector<32x256xbf16>
    %c2_211 = arith.constant 2 : index
    %c2_212 = arith.constant 2 : index
    %c0_213 = arith.constant 0 : index
    %c0_214 = arith.constant 0 : index
    %273 = vector.load %arg9[%c2_211, %c2_212, %c0_213, %c0_214] : memref<3x3x32x32xbf16, #tpu.memory_space<vmem>>, vector<1x1x32x32xbf16>
    %274 = vector.shape_cast %273 : vector<1x1x32x32xbf16> to vector<32x32xbf16>
    %cst_215 = arith.constant dense<0.000000e+00> : vector<32x256xf32>
    %275 = tpu.matmul %274, %272, %cst_215 {dimension_numbers = #tpu.dot_dimension_numbers<[1], [0], [0], [1], [0, 0, 1, 1], [], []>} : vector<32x32xbf16>, vector<32x256xbf16>, vector<32x256xf32> -> vector<32x256xf32>
    %276 = arith.addf %268, %275 : vector<32x256xf32>
    %c2_216 = arith.constant 2 : index
    %c0_217 = arith.constant 0 : index
    %c0_218 = arith.constant 0 : index
    %277 = vector.load %arg10[%c2_216, %c0_217, %c0_218] : memref<3x32x1xf32, #tpu.memory_space<vmem>>, vector<1x32x1xf32>
    %278 = vector.shape_cast %277 : vector<1x32x1xf32> to vector<32x1xf32>
    %279 = vector.broadcast %278 : vector<32x1xf32> to vector<32x256xf32>
    %280 = arith.addf %276, %279 : vector<32x256xf32>
    %cst_219 = arith.constant 0.000000e+00 : f32
    %281 = vector.broadcast %cst_219 : f32 to vector<32x256xf32>
    %282 = arith.maximumf %280, %281 : vector<32x256xf32>
    %283 = arith.truncf %282 : vector<32x256xf32> to vector<32x256xbf16>
    %c1_i32_220 = arith.constant 1 : i32
    %284 = tpu.dynamic_rotate %282 by %c1_i32_220 dim 1 : vector<32x256xf32>, i32 -> vector<32x256xf32>
    %285 = vector.broadcast %2 : vector<1x256xf32> to vector<32x256xf32>
    %286 = arith.mulf %284, %285 : vector<32x256xf32>
    %287 = arith.truncf %286 : vector<32x256xf32> to vector<32x256xbf16>
    %c255_i32_221 = arith.constant 255 : i32
    %288 = tpu.dynamic_rotate %282 by %c255_i32_221 dim 1 : vector<32x256xf32>, i32 -> vector<32x256xf32>
    %289 = vector.broadcast %3 : vector<1x256xf32> to vector<32x256xf32>
    %290 = arith.mulf %288, %289 : vector<32x256xf32>
    %291 = arith.truncf %290 : vector<32x256xf32> to vector<32x256xbf16>
    %c2_222 = arith.constant 2 : index
    %c0_223 = arith.constant 0 : index
    %c0_224 = arith.constant 0 : index
    %c0_225 = arith.constant 0 : index
    %292 = vector.load %arg11[%c2_222, %c0_223, %c0_224, %c0_225] : memref<3x3x64x32xbf16, #tpu.memory_space<vmem>>, vector<1x1x64x32xbf16>
    %293 = vector.shape_cast %292 : vector<1x1x64x32xbf16> to vector<64x32xbf16>
    %cst_226 = arith.constant dense<0.000000e+00> : vector<64x256xf32>
    %294 = tpu.matmul %293, %287, %cst_226 {dimension_numbers = #tpu.dot_dimension_numbers<[1], [0], [0], [1], [0, 0, 1, 1], [], []>} : vector<64x32xbf16>, vector<32x256xbf16>, vector<64x256xf32> -> vector<64x256xf32>
    %c2_227 = arith.constant 2 : index
    %c1_228 = arith.constant 1 : index
    %c0_229 = arith.constant 0 : index
    %c0_230 = arith.constant 0 : index
    %295 = vector.load %arg11[%c2_227, %c1_228, %c0_229, %c0_230] : memref<3x3x64x32xbf16, #tpu.memory_space<vmem>>, vector<1x1x64x32xbf16>
    %296 = vector.shape_cast %295 : vector<1x1x64x32xbf16> to vector<64x32xbf16>
    %cst_231 = arith.constant dense<0.000000e+00> : vector<64x256xf32>
    %297 = tpu.matmul %296, %283, %cst_231 {dimension_numbers = #tpu.dot_dimension_numbers<[1], [0], [0], [1], [0, 0, 1, 1], [], []>} : vector<64x32xbf16>, vector<32x256xbf16>, vector<64x256xf32> -> vector<64x256xf32>
    %298 = arith.addf %294, %297 : vector<64x256xf32>
    %c2_232 = arith.constant 2 : index
    %c2_233 = arith.constant 2 : index
    %c0_234 = arith.constant 0 : index
    %c0_235 = arith.constant 0 : index
    %299 = vector.load %arg11[%c2_232, %c2_233, %c0_234, %c0_235] : memref<3x3x64x32xbf16, #tpu.memory_space<vmem>>, vector<1x1x64x32xbf16>
    %300 = vector.shape_cast %299 : vector<1x1x64x32xbf16> to vector<64x32xbf16>
    %cst_236 = arith.constant dense<0.000000e+00> : vector<64x256xf32>
    %301 = tpu.matmul %300, %291, %cst_236 {dimension_numbers = #tpu.dot_dimension_numbers<[1], [0], [0], [1], [0, 0, 1, 1], [], []>} : vector<64x32xbf16>, vector<32x256xbf16>, vector<64x256xf32> -> vector<64x256xf32>
    %302 = arith.addf %298, %301 : vector<64x256xf32>
    %c2_237 = arith.constant 2 : index
    %c0_238 = arith.constant 0 : index
    %c0_239 = arith.constant 0 : index
    %303 = vector.load %arg12[%c2_237, %c0_238, %c0_239] : memref<3x64x1xf32, #tpu.memory_space<vmem>>, vector<1x64x1xf32>
    %304 = vector.shape_cast %303 : vector<1x64x1xf32> to vector<64x1xf32>
    %305 = vector.broadcast %304 : vector<64x1xf32> to vector<64x256xf32>
    %306 = arith.addf %302, %305 : vector<64x256xf32>
    %307 = vector.extract_strided_slice %306 {offsets = [0, 0], sizes = [32, 256], strides = [1, 1]} : vector<64x256xf32> to vector<32x256xf32>
    %308 = arith.addf %307, %282 : vector<32x256xf32>
    %309 = vector.extract_strided_slice %306 {offsets = [32, 0], sizes = [32, 256], strides = [1, 1]} : vector<64x256xf32> to vector<32x256xf32>
    %310 = arith.negf %309 : vector<32x256xf32>
    %311 = math.exp %310 : vector<32x256xf32>
    %cst_240 = arith.constant 1.000000e+00 : f32
    %312 = vector.broadcast %cst_240 : f32 to vector<32x256xf32>
    %313 = arith.addf %312, %311 : vector<32x256xf32>
    %314 = arith.divf %312, %313 : vector<32x256xf32>
    %315 = arith.mulf %308, %314 : vector<32x256xf32>
    %316 = arith.truncf %315 : vector<32x256xf32> to vector<32x256xbf16>
    %c0_241 = arith.constant 0 : index
    %c0_242 = arith.constant 0 : index
    %c0_243 = arith.constant 0 : index
    %317 = vector.load %arg13[%c0_241, %c0_242, %c0_243] : memref<3x48x32xbf16, #tpu.memory_space<vmem>>, vector<1x48x32xbf16>
    %318 = vector.shape_cast %317 : vector<1x48x32xbf16> to vector<48x32xbf16>
    %cst_244 = arith.constant dense<0.000000e+00> : vector<48x256xf32>
    %319 = tpu.matmul %318, %316, %cst_244 {dimension_numbers = #tpu.dot_dimension_numbers<[1], [0], [0], [1], [0, 0, 1, 1], [], []>} : vector<48x32xbf16>, vector<32x256xbf16>, vector<48x256xf32> -> vector<48x256xf32>
    %c0_245 = arith.constant 0 : index
    %c0_246 = arith.constant 0 : index
    %c0_247 = arith.constant 0 : index
    %320 = vector.load %arg14[%c0_245, %c0_246, %c0_247] : memref<3x48x256xf32, #tpu.memory_space<vmem>>, vector<1x48x256xf32>
    %321 = vector.shape_cast %320 : vector<1x48x256xf32> to vector<48x256xf32>
    %322 = arith.mulf %319, %321 : vector<48x256xf32>
    %c0_248 = arith.constant 0 : index
    %c0_249 = arith.constant 0 : index
    %323 = vector.load %arg15[%c0_248, %c0_249] : memref<256x16xf32, #tpu.memory_space<vmem>>, vector<256x16xf32>
    %cst_250 = arith.constant dense<0.000000e+00> : vector<48x16xf32>
    %324 = tpu.matmul %322, %323, %cst_250 {dimension_numbers = #tpu.dot_dimension_numbers<[1], [0], [0], [1], [0, 0, 1, 1], [], []>} : vector<48x256xf32>, vector<256x16xf32>, vector<48x16xf32> -> vector<48x16xf32>
    %c0_251 = arith.constant 0 : index
    %c0_252 = arith.constant 0 : index
    %c0_253 = arith.constant 0 : index
    %325 = vector.load %arg16[%c0_251, %c0_252, %c0_253] : memref<3x12x48xf32, #tpu.memory_space<vmem>>, vector<1x12x48xf32>
    %326 = vector.shape_cast %325 : vector<1x12x48xf32> to vector<12x48xf32>
    %cst_254 = arith.constant dense<0.000000e+00> : vector<12x16xf32>
    %327 = tpu.matmul %326, %324, %cst_254 {dimension_numbers = #tpu.dot_dimension_numbers<[1], [0], [0], [1], [0, 0, 1, 1], [], []>} : vector<12x48xf32>, vector<48x16xf32>, vector<12x16xf32> -> vector<12x16xf32>
    %c1_255 = arith.constant 1 : index
    %c0_256 = arith.constant 0 : index
    %c0_257 = arith.constant 0 : index
    %328 = vector.load %arg13[%c1_255, %c0_256, %c0_257] : memref<3x48x32xbf16, #tpu.memory_space<vmem>>, vector<1x48x32xbf16>
    %329 = vector.shape_cast %328 : vector<1x48x32xbf16> to vector<48x32xbf16>
    %cst_258 = arith.constant dense<0.000000e+00> : vector<48x256xf32>
    %330 = tpu.matmul %329, %316, %cst_258 {dimension_numbers = #tpu.dot_dimension_numbers<[1], [0], [0], [1], [0, 0, 1, 1], [], []>} : vector<48x32xbf16>, vector<32x256xbf16>, vector<48x256xf32> -> vector<48x256xf32>
    %c1_259 = arith.constant 1 : index
    %c0_260 = arith.constant 0 : index
    %c0_261 = arith.constant 0 : index
    %331 = vector.load %arg14[%c1_259, %c0_260, %c0_261] : memref<3x48x256xf32, #tpu.memory_space<vmem>>, vector<1x48x256xf32>
    %332 = vector.shape_cast %331 : vector<1x48x256xf32> to vector<48x256xf32>
    %333 = arith.mulf %330, %332 : vector<48x256xf32>
    %c0_262 = arith.constant 0 : index
    %c0_263 = arith.constant 0 : index
    %334 = vector.load %arg15[%c0_262, %c0_263] : memref<256x16xf32, #tpu.memory_space<vmem>>, vector<256x16xf32>
    %cst_264 = arith.constant dense<0.000000e+00> : vector<48x16xf32>
    %335 = tpu.matmul %333, %334, %cst_264 {dimension_numbers = #tpu.dot_dimension_numbers<[1], [0], [0], [1], [0, 0, 1, 1], [], []>} : vector<48x256xf32>, vector<256x16xf32>, vector<48x16xf32> -> vector<48x16xf32>
    %c1_265 = arith.constant 1 : index
    %c0_266 = arith.constant 0 : index
    %c0_267 = arith.constant 0 : index
    %336 = vector.load %arg16[%c1_265, %c0_266, %c0_267] : memref<3x12x48xf32, #tpu.memory_space<vmem>>, vector<1x12x48xf32>
    %337 = vector.shape_cast %336 : vector<1x12x48xf32> to vector<12x48xf32>
    %cst_268 = arith.constant dense<0.000000e+00> : vector<12x16xf32>
    %338 = tpu.matmul %337, %335, %cst_268 {dimension_numbers = #tpu.dot_dimension_numbers<[1], [0], [0], [1], [0, 0, 1, 1], [], []>} : vector<12x48xf32>, vector<48x16xf32>, vector<12x16xf32> -> vector<12x16xf32>
    %339 = arith.addf %327, %338 : vector<12x16xf32>
    %c2_269 = arith.constant 2 : index
    %c0_270 = arith.constant 0 : index
    %c0_271 = arith.constant 0 : index
    %340 = vector.load %arg13[%c2_269, %c0_270, %c0_271] : memref<3x48x32xbf16, #tpu.memory_space<vmem>>, vector<1x48x32xbf16>
    %341 = vector.shape_cast %340 : vector<1x48x32xbf16> to vector<48x32xbf16>
    %cst_272 = arith.constant dense<0.000000e+00> : vector<48x256xf32>
    %342 = tpu.matmul %341, %316, %cst_272 {dimension_numbers = #tpu.dot_dimension_numbers<[1], [0], [0], [1], [0, 0, 1, 1], [], []>} : vector<48x32xbf16>, vector<32x256xbf16>, vector<48x256xf32> -> vector<48x256xf32>
    %c2_273 = arith.constant 2 : index
    %c0_274 = arith.constant 0 : index
    %c0_275 = arith.constant 0 : index
    %343 = vector.load %arg14[%c2_273, %c0_274, %c0_275] : memref<3x48x256xf32, #tpu.memory_space<vmem>>, vector<1x48x256xf32>
    %344 = vector.shape_cast %343 : vector<1x48x256xf32> to vector<48x256xf32>
    %345 = arith.mulf %342, %344 : vector<48x256xf32>
    %c0_276 = arith.constant 0 : index
    %c0_277 = arith.constant 0 : index
    %346 = vector.load %arg15[%c0_276, %c0_277] : memref<256x16xf32, #tpu.memory_space<vmem>>, vector<256x16xf32>
    %cst_278 = arith.constant dense<0.000000e+00> : vector<48x16xf32>
    %347 = tpu.matmul %345, %346, %cst_278 {dimension_numbers = #tpu.dot_dimension_numbers<[1], [0], [0], [1], [0, 0, 1, 1], [], []>} : vector<48x256xf32>, vector<256x16xf32>, vector<48x16xf32> -> vector<48x16xf32>
    %c2_279 = arith.constant 2 : index
    %c0_280 = arith.constant 0 : index
    %c0_281 = arith.constant 0 : index
    %348 = vector.load %arg16[%c2_279, %c0_280, %c0_281] : memref<3x12x48xf32, #tpu.memory_space<vmem>>, vector<1x12x48xf32>
    %349 = vector.shape_cast %348 : vector<1x12x48xf32> to vector<12x48xf32>
    %cst_282 = arith.constant dense<0.000000e+00> : vector<12x16xf32>
    %350 = tpu.matmul %349, %347, %cst_282 {dimension_numbers = #tpu.dot_dimension_numbers<[1], [0], [0], [1], [0, 0, 1, 1], [], []>} : vector<12x48xf32>, vector<48x16xf32>, vector<12x16xf32> -> vector<12x16xf32>
    %351 = arith.addf %339, %350 : vector<12x16xf32>
    %c0_283 = arith.constant 0 : index
    %c0_284 = arith.constant 0 : index
    %352 = vector.load %arg17[%c0_283, %c0_284] : memref<12x1xf32, #tpu.memory_space<vmem>>, vector<12x1xf32>
    %353 = vector.broadcast %352 : vector<12x1xf32> to vector<12x16xf32>
    %354 = arith.addf %351, %353 : vector<12x16xf32>
    %c0_285 = arith.constant 0 : index
    %c0_286 = arith.constant 0 : index
    %c0_287 = arith.constant 0 : index
    %355 = vector.load %arg18[%c0_285, %c0_286, %c0_287] : memref<1x12x16xf32, #tpu.memory_space<vmem>>, vector<1x12x16xf32>
    %356 = vector.shape_cast %355 : vector<1x12x16xf32> to vector<12x16xf32>
    %357 = vector.shape_cast %354 : vector<12x16xf32> to vector<1x12x16xf32>
    tpu.vector_store %arg18[%c0_285, %c0_286, %c0_287], %357 {strides = array<i32>} : memref<1x12x16xf32, #tpu.memory_space<vmem>>, vector<1x12x16xf32>,
    return
  }
  func.func @transform_0(%arg0: i32) -> (i32, i32, i32) {
    %c0_i32 = arith.constant 0 : i32
    %c0_i32_0 = arith.constant 0 : i32
    %c0_i32_1 = arith.constant 0 : i32
    return %arg0, %c0_i32, %c0_i32_0 : i32, i32, i32
  }
  func.func @transform_1(%arg0: i32) -> (i32, i32, i32) {
    %c0_i32 = arith.constant 0 : i32
    %c0_i32_0 = arith.constant 0 : i32
    %c0_i32_1 = arith.constant 0 : i32
    %c0_i32_2 = arith.constant 0 : i32
    return %c0_i32, %c0_i32_0, %c0_i32_1 : i32, i32, i32
  }
  func.func @transform_2(%arg0: i32) -> (i32, i32) {
    %c0_i32 = arith.constant 0 : i32
    %c0_i32_0 = arith.constant 0 : i32
    %c0_i32_1 = arith.constant 0 : i32
    return %c0_i32, %c0_i32_0 : i32, i32
  }
  func.func @transform_3(%arg0: i32) -> (i32, i32) {
    %c0_i32 = arith.constant 0 : i32
    %c0_i32_0 = arith.constant 0 : i32
    %c0_i32_1 = arith.constant 0 : i32
    return %c0_i32, %c0_i32_0 : i32, i32
  }
  func.func @transform_4(%arg0: i32) -> (i32, i32, i32) {
    %c0_i32 = arith.constant 0 : i32
    %c0_i32_0 = arith.constant 0 : i32
    %c0_i32_1 = arith.constant 0 : i32
    %c0_i32_2 = arith.constant 0 : i32
    return %c0_i32, %c0_i32_0, %c0_i32_1 : i32, i32, i32
  }
  func.func @transform_5(%arg0: i32) -> (i32, i32, i32) {
    %c0_i32 = arith.constant 0 : i32
    %c0_i32_0 = arith.constant 0 : i32
    %c0_i32_1 = arith.constant 0 : i32
    %c0_i32_2 = arith.constant 0 : i32
    return %c0_i32, %c0_i32_0, %c0_i32_1 : i32, i32, i32
  }
  func.func @transform_6(%arg0: i32) -> (i32, i32, i32, i32) {
    %c0_i32 = arith.constant 0 : i32
    %c0_i32_0 = arith.constant 0 : i32
    %c0_i32_1 = arith.constant 0 : i32
    %c0_i32_2 = arith.constant 0 : i32
    %c0_i32_3 = arith.constant 0 : i32
    return %c0_i32, %c0_i32_0, %c0_i32_1, %c0_i32_2 : i32, i32, i32, i32
  }
  func.func @transform_7(%arg0: i32) -> (i32, i32, i32) {
    %c0_i32 = arith.constant 0 : i32
    %c0_i32_0 = arith.constant 0 : i32
    %c0_i32_1 = arith.constant 0 : i32
    %c0_i32_2 = arith.constant 0 : i32
    return %c0_i32, %c0_i32_0, %c0_i32_1 : i32, i32, i32
  }
  func.func @transform_8(%arg0: i32) -> (i32, i32, i32, i32) {
    %c0_i32 = arith.constant 0 : i32
    %c0_i32_0 = arith.constant 0 : i32
    %c0_i32_1 = arith.constant 0 : i32
    %c0_i32_2 = arith.constant 0 : i32
    %c0_i32_3 = arith.constant 0 : i32
    return %c0_i32, %c0_i32_0, %c0_i32_1, %c0_i32_2 : i32, i32, i32, i32
  }
  func.func @transform_9(%arg0: i32) -> (i32, i32, i32) {
    %c0_i32 = arith.constant 0 : i32
    %c0_i32_0 = arith.constant 0 : i32
    %c0_i32_1 = arith.constant 0 : i32
    %c0_i32_2 = arith.constant 0 : i32
    return %c0_i32, %c0_i32_0, %c0_i32_1 : i32, i32, i32
  }
  func.func @transform_10(%arg0: i32) -> (i32, i32, i32, i32) {
    %c0_i32 = arith.constant 0 : i32
    %c0_i32_0 = arith.constant 0 : i32
    %c0_i32_1 = arith.constant 0 : i32
    %c0_i32_2 = arith.constant 0 : i32
    %c0_i32_3 = arith.constant 0 : i32
    return %c0_i32, %c0_i32_0, %c0_i32_1, %c0_i32_2 : i32, i32, i32, i32
  }
  func.func @transform_11(%arg0: i32) -> (i32, i32, i32) {
    %c0_i32 = arith.constant 0 : i32
    %c0_i32_0 = arith.constant 0 : i32
    %c0_i32_1 = arith.constant 0 : i32
    %c0_i32_2 = arith.constant 0 : i32
    return %c0_i32, %c0_i32_0, %c0_i32_1 : i32, i32, i32
  }
  func.func @transform_12(%arg0: i32) -> (i32, i32, i32) {
    %c0_i32 = arith.constant 0 : i32
    %c0_i32_0 = arith.constant 0 : i32
    %c0_i32_1 = arith.constant 0 : i32
    %c0_i32_2 = arith.constant 0 : i32
    return %c0_i32, %c0_i32_0, %c0_i32_1 : i32, i32, i32
  }
  func.func @transform_13(%arg0: i32) -> (i32, i32, i32) {
    %c0_i32 = arith.constant 0 : i32
    %c0_i32_0 = arith.constant 0 : i32
    %c0_i32_1 = arith.constant 0 : i32
    %c0_i32_2 = arith.constant 0 : i32
    return %c0_i32, %c0_i32_0, %c0_i32_1 : i32, i32, i32
  }
  func.func @transform_14(%arg0: i32) -> (i32, i32) {
    %c0_i32 = arith.constant 0 : i32
    %c0_i32_0 = arith.constant 0 : i32
    %c0_i32_1 = arith.constant 0 : i32
    return %c0_i32, %c0_i32_0 : i32, i32
  }
  func.func @transform_15(%arg0: i32) -> (i32, i32, i32) {
    %c0_i32 = arith.constant 0 : i32
    %c0_i32_0 = arith.constant 0 : i32
    %c0_i32_1 = arith.constant 0 : i32
    %c0_i32_2 = arith.constant 0 : i32
    return %c0_i32, %c0_i32_0, %c0_i32_1 : i32, i32, i32
  }
  func.func @transform_16(%arg0: i32) -> (i32, i32) {
    %c0_i32 = arith.constant 0 : i32
    %c0_i32_0 = arith.constant 0 : i32
    %c0_i32_1 = arith.constant 0 : i32
    return %c0_i32, %c0_i32_0 : i32, i32
  }
  func.func @transform_17(%arg0: i32) -> (i32, i32, i32) {
    %c0_i32 = arith.constant 0 : i32
    %c0_i32_0 = arith.constant 0 : i32
    %c0_i32_1 = arith.constant 0 : i32
    return %arg0, %c0_i32, %c0_i32_0 : i32, i32, i32
  }
}

</mosaic_0001>

<bundles_post_ra>
// kernel: gated_stgcn_forward.1
= control target key start
LH: loop header
LB: loop body
LE: loop exit
PB: predicated region body
PF: predicated region fallthrough
CT: control target
= control target key end

     0   :  { %s9279_s24 = smov 0   ;;  %s12010_s0 = inlined_call_operand.vmem [shape: f32[2,32,256], index: 0, kind: input, shape index: {}]   ;;  %s12011_s1 = inlined_call_operand.vmem [shape: bf16[3,256,256], index: 1, kind: input, shape index: {}]   ;;  %s12012_s2 = inlined_call_operand.vmem [shape: f32[1,256], index: 2, kind: input, shape index: {}]   ;;  %s12013_s3 = inlined_call_operand.vmem [shape: f32[1,256], index: 3, kind: input, shape index: {}]   ;;  %s12014_s4 = inlined_call_operand.vmem [shape: bf16[3,32,32], index: 4, kind: input, shape index: {}]   ;;  %s12015_s5 = inlined_call_operand.vmem [shape: f32[3,32,1], index: 5, kind: input, shape index: {}]   ;;  %s12016_s6 = inlined_call_operand.vmem [shape: bf16[3,3,64,32], index: 6, kind: input, shape index: {}]   ;;  %s12017_s7 = inlined_call_operand.vmem [shape: f32[3,64,1], index: 7, kind: input, shape index: {}]   ;;  %s12018_s8 = inlined_call_operand.vmem [shape: bf16[3,3,32,32], index: 8, kind: input, shape index: {}]   ;;  %s12019_s9 = inlined_call_operand.vmem [shape: f32[3,32,1], index: 9, kind: input, shape index: {}]   ;;  %s12020_s10 = inlined_call_operand.vmem [shape: bf16[3,3,64,32], index: 10, kind: input, shape index: {}]   ;;  %s12021_s11 = inlined_call_operand.vmem [shape: f32[3,64,1], index: 11, kind: input, shape index: {}]   ;;  %s12022_s12 = inlined_call_operand.vmem [shape: bf16[3,48,32], index: 12, kind: input, shape index: {}]   ;;  %s12023_s13 = inlined_call_operand.vmem [shape: f32[3,48,256], index: 13, kind: input, shape index: {}]   ;;  %s12024_s14 = inlined_call_operand.vmem [shape: f32[256,16], index: 14, kind: input, shape index: {}]   ;;  %s12025_s15 = inlined_call_operand.vmem [shape: f32[3,12,48], index: 15, kind: input, shape index: {}]   ;;  %s12026_s16 = inlined_call_operand.vmem [shape: f32[12,1], index: 16, kind: input, shape index: {}]   ;;  %s12027_s17 = inlined_call_operand.vmem [shape: f32[2,12,16], index: 17, kind: output, shape index: {}]  }
   0x1   :  { %12031 = sst [smem:[#allocation2_spill]] %s12010_s0 }
   0x2   :  { %12032 = sst [smem:[#allocation3_spill]] %s12011_s1 }
   0x3 LB: > { %s7173_s25 = sadd.s32 4294967295, %s9184_s24   ;;  %p7177_p0 = scmp.ge.s32.totalorder %s9184_s24, 1  ;;  %s9184_s24 = sphi %s9279_s24, %s27_s24  }
   0x4   : > { %p487_p1 = scmp.lt.s32.totalorder %s9184_s24, 3 }
   0x6   : > { %p488_p2 = pnand %p7177_p0, %p487_p1 }
   0x7   : > { %p539_p3 = scmp.lt.s32.totalorder (!%p488_p2), %s7173_s25, 1  ;;  %v9186_v0 = vmov (!%p488_p2), 0   ;;  %s12033_s29 = sld [smem:[#allocation2_spill]] (!%p488_p2)  ;;  %vm602_vm0 = vcmask (!%p488_p2), 261120   ;;  %v8546_v13 = vld [vmem:[%s12016_s6 + $0x20] sm:$0xff] (!%p488_p2)   ;;  %v8547_v14 = vld [vmem:[%s12016_s6 + $0x28] sm:$0xff] (!%p488_p2)   ;;  %v678_v19 = vlaneseq (!%p488_p2) }
   0x8   : > { %491 = sbr.rel (%p488_p2) target bundleno = 5941 (0x1735), region = 88  ;;  %841 = vmatprep.mubr.bf16.mxu0 (!%p488_p2), %v9186_v0  ;;  %641 = vmatprep.mubr.bf16.mxu1 (!%p488_p2), %v9186_v0  ;;  %s9187_s30 = smov (!%p488_p2), 1   ;;  %v8548_v15 = vld [vmem:[%s12016_s6 + $0x30] sm:$0xff] (!%p488_p2)   ;;  %v8549_v16 = vld [vmem:[%s12016_s6 + $0x38] sm:$0xff] (!%p488_p2)   ;;  %v8554_v17 = vld [vmem:[%s12014_s4] sm:$0xff] (!%p488_p2)   ;;  %vm6637_vm3 = vcmask (!%p488_p2), 392192  }
   0x9   : > { %8545 = vset.pattern.permute.xlu1 (!%p488_p2), %v9186_v0  ;;  %8544 = vset.pattern.permute.xlu0 (!%p488_p2), %v9186_v0  ;;  %s12029_s21 = smov (!%p488_p2), 127   ;;  %v8556_v18 = vld [vmem:[%s12014_s4 + $0x8] sm:$0xff] (!%p488_p2)   ;;  %v1121_v21 = vld [vmem:[%s12017_s7 + $0x20] sm:$0xff] (!%p488_p2)  ;;  %v9348_v22 = vshrl.u32 (!%p488_p2), %v678_v19, 7  ;;  %v9356_v25 = vand.u32 (!%p488_p2), 127, %v678_v19  ;;  %s12034_s18 = sld [smem:[#allocation3_spill]] (!%p488_p2) }
   0xa   : > { %v1122_v20 = vld [vmem:[%s12017_s7 + $0x28] sm:$0xff] (!%p488_p2)  ;;  %v568_v23 = vld [vmem:[%s12015_s5] sm:$0xff] (!%p488_p2)  ;;  %v1123_v34 = vld [vmem:[%s12017_s7 + $0x30] sm:$0xff] (!%p488_p2)  ;;  %s12035_s27 = smov (!%p488_p2), 127   ;;  %vm7116_vm4 = vcmask (!%p488_p2), 125952   ;;  %vm7114_vm5 = vcmask (!%p488_p2), 130048  }
   0xb   : > { %v569_v24 = vld [vmem:[%s12015_s5 + $0x8] sm:$0xff] (!%p488_p2)  ;;  %v692_v28 = vsub.s32 (!%p488_p2), 0, %v9348_v22  ;;  %v696_v29 = vsub.s32 (!%p488_p2), 1, %v9348_v22  ;;  %v1117_v30 = vld [vmem:[%s12017_s7] sm:$0xff] (!%p488_p2)  ;;  %v1124_v35 = vld [vmem:[%s12017_s7 + $0x38] sm:$0xff] (!%p488_p2)  ;;  %vm680_vm1 = vcmp.lt.s32.totalorder (!%p488_p2), %v9356_v25, 1 }
   0xc   : > { %v1118_v31 = vld [vmem:[%s12017_s7 + $0x8] sm:$0xff] (!%p488_p2)  ;;  %v570_v38 = vld [vmem:[%s12015_s5 + $0x10] sm:$0xff] (!%p488_p2)  ;;  %v571_v39 = vld [vmem:[%s12015_s5 + $0x18] sm:$0xff] (!%p488_p2)  ;;  %vm728_vm2 = vcmp.lt.s32.totalorder (!%p488_p2), %v9356_v25, 127 }
   0xd   : > { %v1119_v40 = vld [vmem:[%s12017_s7 + $0x10] sm:$0xff] (!%p488_p2)  ;;  %v1120_v41 = vld [vmem:[%s12017_s7 + $0x18] sm:$0xff] (!%p488_p2)  ;;  %v2227_v42 = vld [vmem:[%s12019_s9] sm:$0xff] (!%p488_p2) }
   0xe   : > { %v2228_v43 = vld [vmem:[%s12019_s9 + $0x8] sm:$0xff] (!%p488_p2)  ;;  %v2229_v44 = vld [vmem:[%s12019_s9 + $0x10] sm:$0xff] (!%p488_p2)  ;;  %v2230_v45 = vld [vmem:[%s12019_s9 + $0x18] sm:$0xff] (!%p488_p2) }
   0xf   : > { %s12037_s25 = smov (!%p539_p3, %s7173_s25), 1  ;;  %v8560_v26 = vld [vmem:[%s12034_s18] ss:$8 sps:$4 sm:$0xff]   ;;  %v8562_v27 = vld [vmem:[%s12034_s18 + $0x4] ss:$8 sps:$4 sm:$0xff]   ;;  %v8780_v25 = vld [vmem:[%s12020_s10 + $0xd0] sm:$0xff]  }
  0x10   : > { %s7864_s26 = sshll.u32 %s12037_s25, 6  ;;  %v8565_v32 = vld [vmem:[%s12034_s18 + $0x14] ss:$8 sps:$4 sm:$0xff]   ;;  %v8563_v33 = vld [vmem:[%s12034_s18 + $0x10] ss:$8 sps:$4 sm:$0xff]  }
  0x11   : > { %s543_s0 = scalar_lea.vmem %s12033_s29, %s7864_s26  ;;  %v8568_v36 = vld [vmem:[%s12034_s18 + $0x24] ss:$8 sps:$4 sm:$0xff]   ;;  %v8566_v37 = vld [vmem:[%s12034_s18 + $0x20] ss:$8 sps:$4 sm:$0xff]   ;;  %s7865_s26 = sshll.u32 %s12037_s25, 4 }
  0x12   : > { %v551_v1 = vld [vmem:[%s543_s0 + $0x8] sm:$0xff]  ;;  %v550_v2 = vld [vmem:[%s543_s0] sm:$0xff]  ;;  %v553_v3 = vld [vmem:[%s543_s0 + $0x18] sm:$0xff] }
  0x13   : > { %670 = vrot.lane.b32.xlu1 %v551_v1, %s9187_s30  ;;  %662 = vrot.lane.b32.xlu0 %v550_v2, %s9187_s30  ;;  %v552_v4 = vld [vmem:[%s543_s0 + $0x10] sm:$0xff]  ;;  %v565_v6 = vpack.c.bf16 %v553_v3, %v551_v1  ;;  %v554_v7 = vld [vmem:[%s543_s0 + $0x20] sm:$0xff] }
  0x14   : > { %v556_v5 = vld [vmem:[%s543_s0 + $0x30] sm:$0xff]  ;;  %v557_v8 = vld [vmem:[%s543_s0 + $0x38] sm:$0xff]  ;;  %v555_v9 = vld [vmem:[%s543_s0 + $0x28] sm:$0xff]  ;;  %v564_v10 = vpack.c.bf16 %v552_v4, %v550_v2  ;;  %s548_s0 = scalar_lea.vmem %s12027_s17, %s7865_s26 }
  0x15   : > { %809 = vmatprep.subr.bf16.mxu0 %v565_v6  ;;  %v567_v11 = vpack.c.bf16 %v557_v8, %v555_v9  ;;  %609 = vmatprep.subr.bf16.mxu1 %v565_v6  ;;  %v566_v12 = vpack.c.bf16 %v556_v5, %v554_v7  ;;  %v558_v46 = vld [vmem:[%s12012_s2] sm:$0x3] }
  0x16   : > { %810 = vmatpush1.bf16.msra.mxu0 %v564_v10  ;;  %610 = vmatpush1.bf16.msra.mxu1 %v564_v10  ;;  %v9420_v49 = vrot.slane %v558_v46, %v692_v28  ;;  %v9424_v50 = vrot.slane %v558_v46, %v696_v29 }
  0x17   : > { %672 = vrot.lane.b32.xlu1 %v553_v3, %s9187_s30  ;;  %664 = vrot.lane.b32.xlu0 %v552_v4, %s9187_s30 }
  0x18   : > { %811 = vmatprep.subr.bf16.mxu0 %v567_v11  ;;  %611 = vmatprep.subr.bf16.mxu1 %v567_v11 }
  0x1a   : > { %812 = vmatpush1.bf16.msra.mxu0 %v566_v12  ;;  %612 = vmatpush1.bf16.msra.mxu1 %v566_v12  ;;  %v559_v12 = vld [vmem:[%s12013_s3] sm:$0x3] }
  0x1b   : > { %668 = vrot.lane.b32.xlu1 %v556_v5, %s9187_s30  ;;  %666 = vrot.lane.b32.xlu0 %v554_v7, %s9187_s30  ;;  %v9463_v19 = vrot.slane %v559_v12, %v696_v29 }
  0x1c   : > { %1441 = vmatprep.subr.bf16.mxu1 %v8562_v27 }
  0x1d   : > { %7198 = vmatmul.mubr.msk.bf16.vlgmr.msra.gmra.mrb[0].mxu0 %vm602_vm0, %v8546_v13  ;;  %7184 = vmatmul.mubr.msk.bf16.vlgmr.msra.gmra.mrb[0].mxu1 %vm602_vm0, %v8554_v17  ;;  %v8550_v17 = vld [vmem:[%s12016_s6] sm:$0xff]  }
  0x1e   : > { %851 = vmatprep.mubr.bf16.mxu0 %v9186_v0  ;;  %651 = vmatprep.mubr.bf16.mxu1 %v9186_v0 }
  0x1f   : > { %676 = vrot.lane.b32.xlu1 %v557_v8, %s9187_s30  ;;  %674 = vrot.lane.b32.xlu0 %v555_v9, %s9187_s30 }
  0x20   : > { %1442 = vmatpush1.bf16.msra.mxu1 %v8560_v26 }
  0x21   : > { %1443 = vmatprep.subr.bf16.mxu1 %v8565_v32 }
  0x23   : > { %714 = vrot.lane.b32.xlu1 %v552_v4, %s12029_s21  ;;  %712 = vrot.lane.b32.xlu0 %v550_v2, %s12029_s21 }
  0x24   : > { %1444 = vmatpush1.bf16.msra.mxu1 %v8563_v33 }
  0x25   : > { %7199 = vmatmul.mubr.msk.bf16.gmra.mrb[4].mxu0 %vm602_vm0, %v8547_v14  ;;  %7185 = vmatmul.mubr.msk.bf16.gmra.mrb[4].mxu1 %vm602_vm0, %v8556_v18  ;;  %v9459_v18 = vrot.slane %v559_v12, %v692_v28  ;;  %v8584_v12 = vld [vmem:[%s12034_s18 + $0x80] ss:$8 sps:$4 sm:$0xff]  }
  0x26   : > { %861 = vmatprep.mubr.bf16.mxu0 %v9186_v0  ;;  %1445 = vmatprep.subr.bf16.mxu1 %v8568_v36 }
  0x27   : > { %722 = vrot.lane.b32.xlu1 %v553_v3, %s12029_s21  ;;  %720 = vrot.lane.b32.xlu0 %v551_v1, %s12029_s21 }
  0x28   : > { %1446 = vmatpush1.bf16.msra.mxu1 %v8566_v37 }
  0x2b   : > { %718 = vrot.lane.b32.xlu1 %v556_v5, %s12029_s21  ;;  %716 = vrot.lane.b32.xlu0 %v554_v7, %s12029_s21 }
  0x2d   : > { %7200 = vmatmul.mubr.msk.bf16.gmra.mrb[8].mxu0 %vm602_vm0, %v8548_v15 }
  0x2e   : > { %871 = vmatprep.mubr.bf16.mxu0 %v9186_v0 }
  0x2f   : > { %726 = vrot.lane.b32.xlu1 %v557_v8, %s12029_s21  ;;  %724 = vrot.lane.b32.xlu0 %v555_v9, %s12029_s21 }
  0x33   : > { %1152 = vperm.xlu1 %8545, %v1122_v20   ;;  %1147 = vperm.xlu0 %8544, %v1121_v21  }
  0x35   : > { %7201 = vmatmul.mubr.msk.bf16.gmra.mrb[12].mxu0 %vm602_vm0, %v8549_v16 }
  0x36   : > { %946 = vmatprep.mubr.bf16.mxu0 %v9186_v0 }
  0x37   : > { %574 = vperm.xlu1 %8545, %v568_v23   ;;  %579 = vperm.xlu0 %8544, %v569_v24  }
  0x3b   : > { %1127 = vperm.xlu1 %8545, %v1117_v30   ;;  %1132 = vperm.xlu0 %8544, %v1118_v31  }
  0x3f   : > { %1157 = vperm.xlu1 %8545, %v1123_v34   ;;  %1162 = vperm.xlu0 %8544, %v1124_v35   ;;  %v8551_v35 = vld [vmem:[%s12016_s6 + $0x8] sm:$0xff]  }
  0x43   : > { %584 = vperm.xlu1 %8545, %v570_v38   ;;  %589 = vperm.xlu0 %8544, %v571_v39  }
  0x47   : > { %1137 = vperm.xlu1 %8545, %v1119_v40   ;;  %1142 = vperm.xlu0 %8544, %v1120_v41  }
  0x4b   : > { %2233 = vperm.xlu1 %8545, %v2227_v42   ;;  %2238 = vperm.xlu0 %8544, %v2228_v43  }
  0x4f   : > { %2243 = vperm.xlu1 %8545, %v2229_v44   ;;  %2248 = vperm.xlu0 %8544, %v2230_v45  }
  0x85   : > { %v671_v47 = vpop.permute.xlu1 %670  ;;  %v663_v48 = vpop.permute.xlu0 %662 }
  0x86   : > { %v681_v51 = vsel %vm680_vm1, %v663_v48, %v671_v47  ;;  %v685_v52 = vsel %vm680_vm1, %v671_v47, %v663_v48  ;;  %v8552_v48 = vld [vmem:[%s12016_s6 + $0x10] sm:$0xff]  }
  0x87   : > { %v700_v57 = vmul.f32 %v9420_v49, %v685_v52  ;;  %v701_v58 = vmul.f32 %v9424_v50, %v681_v51  ;;  %v8553_v51 = vld [vmem:[%s12016_s6 + $0x18] sm:$0xff]   ;;  %v8555_v52 = vld [vmem:[%s12016_s6 + $0x40] sm:$0xff]  }
  0x89   : > { %v673_v53 = vpop.permute.xlu1 %672  ;;  %v665_v54 = vpop.permute.xlu0 %664 }
  0x8a   : > { %v682_v55 = vsel %vm680_vm1, %v665_v54, %v673_v53  ;;  %v686_v56 = vsel %vm680_vm1, %v673_v53, %v665_v54  ;;  %v8557_v53 = vld [vmem:[%s12016_s6 + $0x48] sm:$0xff]   ;;  %v8558_v54 = vld [vmem:[%s12016_s6 + $0x50] sm:$0xff]  }
  0x8b   : > { %v702_v59 = vmul.f32 %v9420_v49, %v686_v56  ;;  %v703_v60 = vmul.f32 %v9424_v50, %v682_v55  ;;  %v8559_v55 = vld [vmem:[%s12016_s6 + $0x58] sm:$0xff]  }
  0x8d   : > { %v708_v61 = vpack.c.bf16 %v702_v59, %v700_v57  ;;  %v669_v62 = vpop.permute.xlu1 %668  ;;  %v667_v63 = vpop.permute.xlu0 %666  ;;  %v709_v1 = vpack.c.bf16 %v703_v60, %v701_v58  ;;  %v8571_v59 = vld [vmem:[%s12034_s18 + $0x34] ss:$8 sps:$4 sm:$0xff]   ;;  %v8569_v60 = vld [vmem:[%s12034_s18 + $0x30] ss:$8 sps:$4 sm:$0xff]  }
  0x8e   : > { %1447 = vmatprep.subr.bf16.mxu1 %v8571_v59 }
  0x8f   : > { %914 = vmatprep.subr.bf16.mxu0 %v709_v1  ;;  %1448 = vmatpush1.bf16.msra.mxu1 %v8569_v60 }
  0x90   : > { %915 = vmatpush1.bf16.msra.mxu0 %v708_v61 }
  0x91   : > { %v677_v2 = vpop.permute.xlu1 %676  ;;  %v675_v3 = vpop.permute.xlu0 %674 }
  0x92   : > { %v684_v4 = vsel %vm680_vm1, %v669_v62, %v677_v2  ;;  %v688_v5 = vsel %vm680_vm1, %v677_v2, %v669_v62  ;;  %v683_v6 = vsel %vm680_vm1, %v667_v63, %v675_v3  ;;  %v687_v7 = vsel %vm680_vm1, %v675_v3, %v667_v63  ;;  %v8574_v62 = vld [vmem:[%s12034_s18 + $0x44] ss:$8 sps:$4 sm:$0xff]   ;;  %v8572_v63 = vld [vmem:[%s12034_s18 + $0x40] ss:$8 sps:$4 sm:$0xff]   ;;  %v8577_v2 = vld [vmem:[%s12034_s18 + $0x54] ss:$8 sps:$4 sm:$0xff]  }
  0x93   : > { %v706_v8 = vmul.f32 %v9420_v49, %v688_v5  ;;  %v707_v9 = vmul.f32 %v9424_v50, %v684_v4  ;;  %v704_v10 = vmul.f32 %v9420_v49, %v687_v7  ;;  %v705_v11 = vmul.f32 %v9424_v50, %v683_v6  ;;  %1449 = vmatprep.subr.bf16.mxu1 %v8574_v62  ;;  %v8575_v4 = vld [vmem:[%s12034_s18 + $0x50] ss:$8 sps:$4 sm:$0xff]   ;;  %v8580_v7 = vld [vmem:[%s12034_s18 + $0x64] ss:$8 sps:$4 sm:$0xff]  }
  0x94   : > { %1450 = vmatpush1.bf16.msra.mxu1 %v8572_v63 }
  0x95   : > { %v710_v13 = vpack.c.bf16 %v706_v8, %v704_v10  ;;  %v711_v14 = vpack.c.bf16 %v707_v9, %v705_v11  ;;  %v715_v15 = vpop.permute.xlu1 %714  ;;  %v713_v16 = vpop.permute.xlu0 %712  ;;  %1451 = vmatprep.subr.bf16.mxu1 %v8577_v2  ;;  %v8578_v8 = vld [vmem:[%s12034_s18 + $0x60] ss:$8 sps:$4 sm:$0xff]   ;;  %v8583_v9 = vld [vmem:[%s12034_s18 + $0x74] ss:$8 sps:$4 sm:$0xff]   ;;  %v8581_v10 = vld [vmem:[%s12034_s18 + $0x70] ss:$8 sps:$4 sm:$0xff]  }
  0x96   : > { %v8586_v11 = vld [vmem:[%s12034_s18 + $0x84] ss:$8 sps:$4 sm:$0xff]  }
  0x97   : > { %916 = vmatprep.subr.bf16.mxu0 %v711_v14  ;;  %v8587_v14 = vld [vmem:[%s12034_s18 + $0x90] ss:$8 sps:$4 sm:$0xff]  }
  0x98   : > { %917 = vmatpush1.bf16.msra.mxu0 %v710_v13  ;;  %1452 = vmatpush1.bf16.msra.mxu1 %v8575_v4  ;;  %v8589_v13 = vld [vmem:[%s12034_s18 + $0x94] ss:$8 sps:$4 sm:$0xff]  }
  0x99   : > { %v723_v20 = vpop.permute.xlu1 %722  ;;  %v721_v21 = vpop.permute.xlu0 %720  ;;  %1453 = vmatprep.subr.bf16.mxu1 %v8580_v7 }
  0x9a   : > { %v730_v23 = vsel %vm728_vm2, %v715_v15, %v723_v20  ;;  %v734_v24 = vsel %vm728_vm2, %v723_v20, %v715_v15  ;;  %v729_v26 = vsel %vm728_vm2, %v713_v16, %v721_v21  ;;  %v733_v27 = vsel %vm728_vm2, %v721_v21, %v713_v16  ;;  %v8592_v15 = vld [vmem:[%s12034_s18 + $0xa4] ss:$8 sps:$4 sm:$0xff]   ;;  %v8590_v16 = vld [vmem:[%s12034_s18 + $0xa0] ss:$8 sps:$4 sm:$0xff]   ;;  %v8593_v20 = vld [vmem:[%s12034_s18 + $0xb0] ss:$8 sps:$4 sm:$0xff]  }
  0x9b   : > { %7206 = vmatmul.mubr.msk.bf16.vlgmr.msra.gmra.mrb[0].mxu0 %vm602_vm0, %v8550_v17  ;;  %v750_v22 = vmul.f32 %v9459_v18, %v730_v23  ;;  %v751_v28 = vmul.f32 %v9463_v19, %v734_v24  ;;  %v748_v29 = vmul.f32 %v9459_v18, %v729_v26  ;;  %v749_v30 = vmul.f32 %v9463_v19, %v733_v27  ;;  %v8595_v17 = vld [vmem:[%s12034_s18 + $0xb4] ss:$8 sps:$4 sm:$0xff]   ;;  %v8598_v21 = vld [vmem:[%s12034_s18 + $0xc4] ss:$8 sps:$4 sm:$0xff]   ;;  %v8596_v23 = vld [vmem:[%s12034_s18 + $0xc0] ss:$8 sps:$4 sm:$0xff]  }
  0x9c   : > { %956 = vmatprep.mubr.bf16.mxu0 %v9186_v0  ;;  %1454 = vmatpush1.bf16.msra.mxu1 %v8578_v8  ;;  %v8601_v24 = vld [vmem:[%s12034_s18 + $0xd4] ss:$8 sps:$4 sm:$0xff]   ;;  %v8599_v26 = vld [vmem:[%s12034_s18 + $0xd0] ss:$8 sps:$4 sm:$0xff]   ;;  %v8604_v27 = vld [vmem:[%s12034_s18 + $0xe4] ss:$8 sps:$4 sm:$0xff]  }
  0x9d   : > { %v756_v31 = vpack.c.bf16 %v750_v22, %v748_v29  ;;  %v719_v32 = vpop.permute.xlu1 %718  ;;  %v717_v33 = vpop.permute.xlu0 %716  ;;  %v757_v34 = vpack.c.bf16 %v751_v28, %v749_v30  ;;  %1455 = vmatprep.subr.bf16.mxu1 %v8583_v9  ;;  %v8602_v22 = vld [vmem:[%s12034_s18 + $0xe0] ss:$8 sps:$4 sm:$0xff]   ;;  %v8605_v28 = vld [vmem:[%s12034_s18 + $0xf0] ss:$8 sps:$4 sm:$0xff]   ;;  %v8607_v29 = vld [vmem:[%s12034_s18 + $0xf4] ss:$8 sps:$4 sm:$0xff]  }
  0x9e   : > { %v8610_v30 = vld [vmem:[%s12034_s18 + $0x104] ss:$8 sps:$4 sm:$0xff]  }
  0x9f   : > { %1028 = vmatprep.subr.bf16.mxu0 %v757_v34 }
  0xa0   : > { %1029 = vmatpush1.bf16.msra.mxu0 %v756_v31  ;;  %1456 = vmatpush1.bf16.msra.mxu1 %v8581_v10 }
  0xa1   : > { %v727_v36 = vpop.permute.xlu1 %726  ;;  %v725_v37 = vpop.permute.xlu0 %724  ;;  %1457 = vmatprep.subr.bf16.mxu1 %v8586_v11 }
  0xa2   : > { %v732_v38 = vsel %vm728_vm2, %v719_v32, %v727_v36  ;;  %v736_v39 = vsel %vm728_vm2, %v727_v36, %v719_v32  ;;  %v731_v40 = vsel %vm728_vm2, %v717_v33, %v725_v37  ;;  %v735_v41 = vsel %vm728_vm2, %v725_v37, %v717_v33 }
  0xa3   : > { %7207 = vmatmul.mubr.msk.bf16.gmra.mrb[4].mxu0 %vm602_vm0, %v8551_v35  ;;  %v754_v42 = vmul.f32 %v9459_v18, %v732_v38  ;;  %v755_v43 = vmul.f32 %v9463_v19, %v736_v39  ;;  %v752_v44 = vmul.f32 %v9459_v18, %v731_v40  ;;  %v753_v45 = vmul.f32 %v9463_v19, %v735_v41 }
  0xa4   : > { %966 = vmatprep.mubr.bf16.mxu0 %v9186_v0  ;;  %1458 = vmatpush1.bf16.msra.mxu1 %v8584_v12 }
  0xa5   : > { %v758_v46 = vpack.c.bf16 %v754_v42, %v752_v44  ;;  %v759_v47 = vpack.c.bf16 %v755_v43, %v753_v45  ;;  %1459 = vmatprep.subr.bf16.mxu1 %v8589_v13 }
  0xa7   : > { %1030 = vmatprep.subr.bf16.mxu0 %v759_v47 }
  0xa8   : > { %1031 = vmatpush1.bf16.msra.mxu0 %v758_v46  ;;  %1460 = vmatpush1.bf16.msra.mxu1 %v8587_v14 }
  0xa9   : > { %1461 = vmatprep.subr.bf16.mxu1 %v8592_v15 }
  0xab   : > { %7208 = vmatmul.mubr.msk.bf16.gmra.mrb[8].mxu0 %vm602_vm0, %v8552_v48 }
  0xac   : > { %976 = vmatprep.mubr.bf16.mxu0 %v9186_v0  ;;  %1462 = vmatpush1.bf16.msra.mxu1 %v8590_v16 }
  0xad   : > { %1463 = vmatprep.subr.bf16.mxu1 %v8595_v17 }
  0xb0   : > { %1464 = vmatpush1.bf16.msra.mxu1 %v8593_v20 }
  0xb1   : > { %1465 = vmatprep.subr.bf16.mxu1 %v8598_v21 }
  0xb2   : > { %v1153_v31 = vpop.permute.xlu1 %1152  ;;  %v1148_v32 = vpop.permute.xlu0 %1147 }
  0xb3   : > { %7209 = vmatmul.mubr.msk.bf16.gmra.mrb[12].mxu0 %vm602_vm0, %v8553_v51 }
  0xb4   : > { %1060 = vmatprep.mubr.bf16.mxu0 %v9186_v0  ;;  %1466 = vmatpush1.bf16.msra.mxu1 %v8596_v23 }
  0xb5   : > { %1467 = vmatprep.subr.bf16.mxu1 %v8601_v24 }
  0xb6   : > { %v575_v33 = vpop.permute.xlu1 %574  ;;  %v580_v34 = vpop.permute.xlu0 %579 }
  0xb8   : > { %1468 = vmatpush1.bf16.msra.mxu1 %v8599_v26 }
  0xb9   : > { %1469 = vmatprep.subr.bf16.mxu1 %v8604_v27 }
  0xba   : > { %v9623_v35 = vpop.permute.xlu1 %1127  ;;  %v9625_v36 = vpop.permute.xlu0 %1132 }
  0xbb   : > { %7222 = vmatmul.mubr.msk.bf16.vlgmr.msra.gmra.mrb[0].mxu0 %vm602_vm0, %v8555_v52 }
  0xbc   : > { %1070 = vmatprep.mubr.bf16.mxu0 %v9186_v0  ;;  %1470 = vmatpush1.bf16.msra.mxu1 %v8602_v22 }
  0xbd   : > { %1471 = vmatprep.subr.bf16.mxu1 %v8607_v29 }
  0xbe   : > { %v1158_v37 = vpop.permute.xlu1 %1157  ;;  %v1163_v40 = vpop.permute.xlu0 %1162 }
  0xc0   : > { %1472 = vmatpush1.bf16.msra.mxu1 %v8605_v28 }
  0xc1   : > { %1695 = vmatprep.subr.bf16.mxu1 %v8610_v30 }
  0xc2   : > { %v585_v48 = vpop.permute.xlu1 %584 }
  0xc3   : > { %7223 = vmatmul.mubr.msk.bf16.gmra.mrb[4].mxu0 %vm602_vm0, %v8557_v53 }
  0xc4   : > { %1080 = vmatprep.mubr.bf16.mxu0 %v9186_v0 }
  0xcb   : > { %7224 = vmatmul.mubr.msk.bf16.gmra.mrb[8].mxu0 %vm602_vm0, %v8558_v54  ;;  %v590_v54 = vpop.permute.xlu0 %589 }
  0xcc   : > { %1090 = vmatprep.mubr.bf16.mxu0 %v9186_v0 }
  0xd3   : > { %7225 = vmatmul.mubr.msk.bf16.gmra.mrb[12].mxu0 %vm602_vm0, %v8559_v55 }
  0xd4   : > { %1805 = vmatprep.mubr.bf16.mxu0 %v9186_v0 }
  0xf0   : > { %v9526_v56 = vpop.f32.mrb[0].mxu1 }
  0xf1   : > { %v9528_v57 = vpop.f32.mrb[1].mxu1  ;;  %v644_v38 = vadd.f32 %v9526_v56, %v575_v33 }
  0xf2   : > { %v9530_v58 = vpop.f32.mrb[2].mxu1  ;;  %v646_v39 = vadd.f32 %v9528_v57, %v575_v33 }
  0xf3   : > { %v9538_v61 = vpop.f32.mrb[3].mxu1  ;;  %v648_v41 = vadd.f32 %v9530_v58, %v580_v34 }
  0xf4   : > { %v650_v43 = vadd.f32 %v9538_v61, %v580_v34 }
  0xf8   : > { %v9546_v1 = vpop.f32.mrb[4].mxu1 }
  0xf9   : > { %v9551_v3 = vpop.f32.mrb[5].mxu1  ;;  %v654_v55 = vadd.f32 %v9546_v1, %v585_v48 }
  0xfa   : > { %v9556_v5 = vpop.f32.mrb[6].mxu1  ;;  %v656_v56 = vadd.f32 %v9551_v3, %v585_v48 }
  0xfb   : > { %v9558_v6 = vpop.f32.mrb[7].mxu1  ;;  %v658_v57 = vadd.f32 %v9556_v5, %v590_v54 }
  0xfc   : > { %v660_v59 = vadd.f32 %v9558_v6, %v590_v54 }
 0x18e   : > { %v1062_v42 = vpop.f32.mrb[0].mxu0 }
 0x18f   : > { %v9631_v44 = vadd.f32 %v1062_v42, %v644_v38  ;;  %v1064_v45 = vpop.f32.mrb[1].mxu0 }
 0x190   : > { %v9633_v46 = vadd.f32 %v1064_v45, %v646_v39  ;;  %v1066_v47 = vpop.f32.mrb[2].mxu0 }
 0x191   : > { %v9635_v51 = vadd.f32 %v1066_v47, %v648_v41  ;;  %v1068_v52 = vpop.f32.mrb[3].mxu0  ;;  %v8219_v54 = vadd.f32 %v9631_v44, %v9623_v35 }
 0x192   : > { %v9637_v53 = vadd.f32 %v1068_v52, %v650_v43 }
 0x196   : > { %v1072_v58 = vpop.f32.mrb[4].mxu0 }
 0x197   : > { %v9643_v60 = vadd.f32 %v1072_v58, %v654_v55  ;;  %v1074_v61 = vpop.f32.mrb[5].mxu0 }
 0x198   : > { %v9645_v62 = vadd.f32 %v1074_v61, %v656_v56  ;;  %v1076_v63 = vpop.f32.mrb[6].mxu0 }
 0x199   : > { %v9647_v2 = vadd.f32 %v1076_v63, %v658_v57  ;;  %v1078_v4 = vpop.f32.mrb[7].mxu0  ;;  %v8222_v57 = vadd.f32 %v9633_v46, %v9623_v35  ;;  %v8608_v46 = vld [vmem:[%s12034_s18 + $0x100] ss:$8 sps:$4 sm:$0xff]  }
 0x19a   : > { %v9649_v7 = vadd.f32 %v1078_v4, %v660_v59  ;;  %v8225_v59 = vadd.f32 %v9635_v51, %v9625_v36  ;;  %v8228_v4 = vadd.f32 %v9637_v53, %v9625_v36  ;;  %v8613_v36 = vld [vmem:[%s12034_s18 + $0x114] ss:$8 sps:$4 sm:$0xff]  }
 0x19e   : > { %v1082_v8 = vpop.f32.mrb[8].mxu0 }
 0x19f   : > { %v1173_v1 = vadd.f32 %v1148_v32, %v1082_v8  ;;  %v1084_v9 = vpop.f32.mrb[9].mxu0 }
 0x1a0   : > { %v1174_v3 = vadd.f32 %v1148_v32, %v1084_v9  ;;  %v1086_v10 = vpop.f32.mrb[10].mxu0  ;;  %v1138_v9 = vpop.permute.xlu1 %1137 }
 0x1a1   : > { %v7226_v5 = vmul.f32 -1.442695, %v1173_v1  ;;  %v1175_v11 = vadd.f32 %v1153_v31, %v1086_v10  ;;  %v1088_v12 = vpop.f32.mrb[11].mxu0  ;;  %v8231_v51 = vadd.f32 %v9643_v60, %v1138_v9  ;;  %v8611_v60 = vld [vmem:[%s12034_s18 + $0x110] ss:$8 sps:$4 sm:$0xff]  }
 0x1a2   : > { %v7227_v6 = vmul.f32 -1.442695, %v1174_v3  ;;  %v1176_v13 = vadd.f32 %v1153_v31, %v1088_v12 }
 0x1a3   : > { %8795 = vpow2.f32 %v7226_v5  ;;  %v7228_v14 = vmul.f32 -1.442695, %v1175_v11  ;;  %v1143_v5 = vpop.permute.xlu0 %1142  ;;  %v8234_v11 = vadd.f32 %v9645_v62, %v1138_v9  ;;  %v8616_v62 = vld [vmem:[%s12034_s18 + $0x124] ss:$8 sps:$4 sm:$0xff]  }
 0x1a4   : > { %8797 = vpow2.f32 %v7227_v6  ;;  %v7229_v15 = vmul.f32 -1.442695, %v1176_v13  ;;  %v8237_v6 = vadd.f32 %v9647_v2, %v1143_v5  ;;  %v8670_v9 = vld [vmem:[%s12034_s18 + $0x244] ss:$8 sps:$4 sm:$0xff]  }
 0x1a5   : > { %8799 = vpow2.f32 %v7228_v14 }
 0x1a6   : > { %8801 = vpow2.f32 %v7229_v15  ;;  %v1092_v16 = vpop.f32.mrb[12].mxu0  ;;  %v8240_v15 = vadd.f32 %v9649_v7, %v1143_v5  ;;  %v8614_v7 = vld [vmem:[%s12034_s18 + $0x120] ss:$8 sps:$4 sm:$0xff]   ;;  %v8673_v5 = vld [vmem:[%s12034_s18 + $0x254] ss:$8 sps:$4 sm:$0xff]  }
 0x1a7   : > { %v1177_v17 = vadd.f32 %v1158_v37, %v1092_v16  ;;  %v1094_v20 = vpop.f32.mrb[13].mxu0 }
 0x1a8   : > { %v1178_v21 = vadd.f32 %v1158_v37, %v1094_v20  ;;  %v1096_v23 = vpop.f32.mrb[14].mxu0 }
 0x1a9   : > { %v7230_v24 = vmul.f32 -1.442695, %v1177_v17  ;;  %v1179_v26 = vadd.f32 %v1163_v40, %v1096_v23  ;;  %v1098_v27 = vpop.f32.mrb[15].mxu0 }
 0x1aa   : > { %v7231_v22 = vmul.f32 -1.442695, %v1178_v21  ;;  %v1180_v28 = vadd.f32 %v1163_v40, %v1098_v27  ;;  %v8622_v27 = vld [vmem:[%s12034_s18 + $0x144] ss:$8 sps:$4 sm:$0xff]  }
 0x1ab   : > { %8803 = vpow2.f32 %v7230_v24  ;;  %v7232_v29 = vmul.f32 -1.442695, %v1179_v26  ;;  %v8619_v24 = vld [vmem:[%s12034_s18 + $0x134] ss:$8 sps:$4 sm:$0xff]   ;;  %v8617_v26 = vld [vmem:[%s12034_s18 + $0x130] ss:$8 sps:$4 sm:$0xff]  }
 0x1ac   : > { %8805 = vpow2.f32 %v7231_v22  ;;  %v7233_v30 = vmul.f32 -1.442695, %v1180_v28  ;;  %v8620_v22 = vld [vmem:[%s12034_s18 + $0x140] ss:$8 sps:$4 sm:$0xff]   ;;  %v8625_v28 = vld [vmem:[%s12034_s18 + $0x154] ss:$8 sps:$4 sm:$0xff]  }
 0x1ad   : > { %v8796_v31 = vpop.eup %8795  ;;  %8807 = vpow2.f32 %v7232_v29  ;;  %v8623_v29 = vld [vmem:[%s12034_s18 + $0x150] ss:$8 sps:$4 sm:$0xff]  }
 0x1ae   : > { %v8798_v32 = vpop.eup %8797  ;;  %v1213_v33 = vadd.f32 1.0, %v8796_v31  ;;  %8809 = vpow2.f32 %v7233_v30  ;;  %v8628_v30 = vld [vmem:[%s12034_s18 + $0x164] ss:$8 sps:$4 sm:$0xff]   ;;  %v8626_v31 = vld [vmem:[%s12034_s18 + $0x160] ss:$8 sps:$4 sm:$0xff]  }
 0x1af   : > { %v8800_v34 = vpop.eup %8799  ;;  %v1214_v38 = vadd.f32 1.0, %v8798_v32  ;;  %v8631_v32 = vld [vmem:[%s12034_s18 + $0x174] ss:$8 sps:$4 sm:$0xff]  }
 0x1b0   : > { %v8802_v39 = vpop.eup %8801  ;;  %8811 = vrcp.f32 %v1213_v33  ;;  %v1215_v37 = vadd.f32 1.0, %v8800_v34  ;;  %v8629_v33 = vld [vmem:[%s12034_s18 + $0x170] ss:$8 sps:$4 sm:$0xff]   ;;  %v8634_v34 = vld [vmem:[%s12034_s18 + $0x184] ss:$8 sps:$4 sm:$0xff]  }
 0x1b1   : > { %8813 = vrcp.f32 %v1214_v38  ;;  %v1216_v41 = vadd.f32 1.0, %v8802_v39  ;;  %v8632_v38 = vld [vmem:[%s12034_s18 + $0x180] ss:$8 sps:$4 sm:$0xff]   ;;  %v8637_v39 = vld [vmem:[%s12034_s18 + $0x194] ss:$8 sps:$4 sm:$0xff]  }
 0x1b2   : > { %8815 = vrcp.f32 %v1215_v37  ;;  %v8635_v37 = vld [vmem:[%s12034_s18 + $0x190] ss:$8 sps:$4 sm:$0xff]  }
 0x1b3   : > { %8817 = vrcp.f32 %v1216_v41  ;;  %v8640_v41 = vld [vmem:[%s12034_s18 + $0x1a4] ss:$8 sps:$4 sm:$0xff]  }
 0x1b5   : > { %v8804_v42 = vpop.eup %8803 }
 0x1b6   : > { %v8806_v40 = vpop.eup %8805  ;;  %v1217_v43 = vadd.f32 1.0, %v8804_v42  ;;  %v8638_v42 = vld [vmem:[%s12034_s18 + $0x1a0] ss:$8 sps:$4 sm:$0xff]  }
 0x1b7   : > { %v8808_v45 = vpop.eup %8807  ;;  %v1218_v47 = vadd.f32 1.0, %v8806_v40  ;;  %v8643_v40 = vld [vmem:[%s12034_s18 + $0x1b4] ss:$8 sps:$4 sm:$0xff]  }
 0x1b8   : > { %v8810_v48 = vpop.eup %8809  ;;  %8819 = vrcp.f32 %v1217_v43  ;;  %v1219_v52 = vadd.f32 1.0, %v8808_v45  ;;  %v8641_v43 = vld [vmem:[%s12034_s18 + $0x1b0] ss:$8 sps:$4 sm:$0xff]   ;;  %v8646_v45 = vld [vmem:[%s12034_s18 + $0x1c4] ss:$8 sps:$4 sm:$0xff]  }
 0x1b9   : > { %8821 = vrcp.f32 %v1218_v47  ;;  %v1220_v55 = vadd.f32 1.0, %v8810_v48  ;;  %v8644_v47 = vld [vmem:[%s12034_s18 + $0x1c0] ss:$8 sps:$4 sm:$0xff]   ;;  %v8649_v48 = vld [vmem:[%s12034_s18 + $0x1d4] ss:$8 sps:$4 sm:$0xff]  }
 0x1ba   : > { %v8812_v56 = vpop.eup %8811  ;;  %8823 = vrcp.f32 %v1219_v52  ;;  %v8647_v52 = vld [vmem:[%s12034_s18 + $0x1d0] ss:$8 sps:$4 sm:$0xff]  }
 0x1bb   : > { %v8814_v58 = vpop.eup %8813  ;;  %8825 = vrcp.f32 %v1220_v55  ;;  %v1237_v61 = vmul.f32 %v8812_v56, %v8219_v54  ;;  %v8652_v54 = vld [vmem:[%s12034_s18 + $0x1e4] ss:$8 sps:$4 sm:$0xff]   ;;  %v8650_v55 = vld [vmem:[%s12034_s18 + $0x1e0] ss:$8 sps:$4 sm:$0xff]   ;;  %v8655_v56 = vld [vmem:[%s12034_s18 + $0x1f4] ss:$8 sps:$4 sm:$0xff]  }
 0x1bc   : > { %v8816_v63 = vpop.eup %8815  ;;  %v1238_v8 = vmul.f32 %v8814_v58, %v8222_v57  ;;  %v8653_v57 = vld [vmem:[%s12034_s18 + $0x1f0] ss:$8 sps:$4 sm:$0xff]   ;;  %v8658_v58 = vld [vmem:[%s12034_s18 + $0x204] ss:$8 sps:$4 sm:$0xff]  }
 0x1bd   : > { %v8818_v1 = vpop.eup %8817  ;;  %v1239_v44 = vmul.f32 %v8816_v63, %v8225_v59  ;;  %v8656_v59 = vld [vmem:[%s12034_s18 + $0x200] ss:$8 sps:$4 sm:$0xff]   ;;  %v8659_v63 = vld [vmem:[%s12034_s18 + $0x210] ss:$8 sps:$4 sm:$0xff]  }
 0x1be   : > { %v1240_v3 = vmul.f32 %v8818_v1, %v8228_v4  ;;  %v8664_v4 = vld [vmem:[%s12034_s18 + $0x224] ss:$8 sps:$4 sm:$0xff]   ;;  %v8667_v1 = vld [vmem:[%s12034_s18 + $0x234] ss:$8 sps:$4 sm:$0xff]  }
 0x1bf   : > { %v9659_v10 = vpack.c.bf16 %v1239_v44, %v1237_v61  ;;  %v8661_v61 = vld [vmem:[%s12034_s18 + $0x214] ss:$8 sps:$4 sm:$0xff]   ;;  %v8665_v44 = vld [vmem:[%s12034_s18 + $0x230] ss:$8 sps:$4 sm:$0xff]  }
 0x1c0   : > { %v9661_v35 = vpack.c.bf16 %v1240_v3, %v1238_v8  ;;  %v8662_v8 = vld [vmem:[%s12034_s18 + $0x220] ss:$8 sps:$4 sm:$0xff]  }
 0x1c1   : > { %v8668_v3 = vld [vmem:[%s12034_s18 + $0x240] ss:$8 sps:$4 sm:$0xff]  }
 0x1c2   : > { %v8820_v53 = vpop.eup %8819  ;;  %1473 = vmatprep.mubr.bf16.mxu1 %v9661_v35 }
 0x1c3   : > { %v8822_v12 = vpop.eup %8821  ;;  %1474 = vmatmul.mubr.bf16.vlgmr.msra.gmra.mrb[8].mxu1 %v9659_v10  ;;  %v1241_v13 = vmul.f32 %v8820_v53, %v8231_v51  ;;  %v8674_v51 = vld [vmem:[%s12034_s18 + $0x260] ss:$8 sps:$4 sm:$0xff]   ;;  %v8677_v53 = vld [vmem:[%s12034_s18 + $0x270] ss:$8 sps:$4 sm:$0xff]  }
 0x1c4   : > { %v8824_v14 = vpop.eup %8823  ;;  %1696 = vmatpush1.bf16.msra.mxu1 %v8608_v46  ;;  %v1242_v16 = vmul.f32 %v8822_v12, %v8234_v11  ;;  %v8676_v46 = vld [vmem:[%s12034_s18 + $0x264] ss:$8 sps:$4 sm:$0xff]   ;;  %v8680_v12 = vld [vmem:[%s12034_s18 + $0x280] ss:$8 sps:$4 sm:$0xff]  }
 0x1c5   : > { %v8826_v17 = vpop.eup %8825  ;;  %1697 = vmatprep.subr.bf16.mxu1 %v8613_v36  ;;  %v1243_v20 = vmul.f32 %v8824_v14, %v8237_v6  ;;  %v8679_v36 = vld [vmem:[%s12034_s18 + $0x274] ss:$8 sps:$4 sm:$0xff]   ;;  %v8682_v11 = vld [vmem:[%s12034_s18 + $0x284] ss:$8 sps:$4 sm:$0xff]  }
 0x1c6   : > { %v1244_v2 = vmul.f32 %v8826_v17, %v8240_v15  ;;  %v8685_v6 = vld [vmem:[%s12034_s18 + $0x294] ss:$8 sps:$4 sm:$0xff]   ;;  %v8688_v14 = vld [vmem:[%s12034_s18 + $0x2a4] ss:$8 sps:$4 sm:$0xff]   ;;  %v8686_v15 = vld [vmem:[%s12034_s18 + $0x2a0] ss:$8 sps:$4 sm:$0xff]  }
 0x1c7   : > { %v9681_v21 = vpack.c.bf16 %v1243_v20, %v1241_v13  ;;  %v8683_v13 = vld [vmem:[%s12034_s18 + $0x290] ss:$8 sps:$4 sm:$0xff]   ;;  %v8694_v17 = vld [vmem:[%s12034_s18 + $0x2c4] ss:$8 sps:$4 sm:$0xff]   ;;  %v8697_v20 = vld [vmem:[%s12034_s18 + $0x2d4] ss:$8 sps:$4 sm:$0xff]  }
 0x1c8   : > { %1698 = vmatpush1.bf16.msra.mxu1 %v8611_v60  ;;  %v9683_v23 = vpack.c.bf16 %v1244_v2, %v1242_v16  ;;  %v8691_v60 = vld [vmem:[%s12034_s18 + $0x2b4] ss:$8 sps:$4 sm:$0xff]   ;;  %v8689_v16 = vld [vmem:[%s12034_s18 + $0x2b0] ss:$8 sps:$4 sm:$0xff]  }
 0x1c9   : > { %1699 = vmatprep.subr.bf16.mxu1 %v8616_v62  ;;  %v8692_v62 = vld [vmem:[%s12034_s18 + $0x2c0] ss:$8 sps:$4 sm:$0xff]   ;;  %v8695_v2 = vld [vmem:[%s12034_s18 + $0x2d0] ss:$8 sps:$4 sm:$0xff]  }
 0x1ca   : > { %1483 = vmatprep.mubr.bf16.mxu1 %v9683_v23 }
 0x1cb   : > { %1484 = vmatmul.mubr.bf16.gmra.mrb[12].mxu1 %v9681_v21 }
 0x1cc   : > { %1700 = vmatpush1.bf16.msra.mxu1 %v8614_v7  ;;  %1727 = vmatprep.mubr.bf16.mxu1 %v9661_v35  ;;  %v8700_v7 = vld [vmem:[%s12034_s18 + $0x2e4] ss:$8 sps:$4 sm:$0xff]  }
 0x1cd   : > { %1701 = vmatprep.subr.bf16.mxu1 %v8619_v24  ;;  %v8698_v24 = vld [vmem:[%s12034_s18 + $0x2e0] ss:$8 sps:$4 sm:$0xff]  }
 0x1d0   : > { %1702 = vmatpush1.bf16.msra.mxu1 %v8617_v26  ;;  %v8703_v26 = vld [vmem:[%s12034_s18 + $0x2f4] ss:$8 sps:$4 sm:$0xff]  }
 0x1d1   : > { %1703 = vmatprep.subr.bf16.mxu1 %v8622_v27  ;;  %v8701_v27 = vld [vmem:[%s12034_s18 + $0x2f0] ss:$8 sps:$4 sm:$0xff]  }
 0x1d4   : > { %1704 = vmatpush1.bf16.msra.mxu1 %v8620_v22 }
 0x1d5   : > { %1705 = vmatprep.subr.bf16.mxu1 %v8625_v28 }
 0x1d8   : > { %1706 = vmatpush1.bf16.msra.mxu1 %v8623_v29 }
 0x1d9   : > { %1707 = vmatprep.subr.bf16.mxu1 %v8628_v30 }
 0x1dc   : > { %1708 = vmatpush1.bf16.msra.mxu1 %v8626_v31 }
 0x1dd   : > { %1709 = vmatprep.subr.bf16.mxu1 %v8631_v32 }
 0x1e0   : > { %1710 = vmatpush1.bf16.msra.mxu1 %v8629_v33 }
 0x1e1   : > { %1711 = vmatprep.subr.bf16.mxu1 %v8634_v34 }
 0x1e4   : > { %1712 = vmatpush1.bf16.msra.mxu1 %v8632_v38 }
 0x1e5   : > { %1713 = vmatprep.subr.bf16.mxu1 %v8637_v39 }
 0x1e8   : > { %1714 = vmatpush1.bf16.msra.mxu1 %v8635_v37 }
 0x1e9   : > { %1715 = vmatprep.subr.bf16.mxu1 %v8640_v41 }
 0x1ec   : > { %1716 = vmatpush1.bf16.msra.mxu1 %v8638_v42 }
 0x1ed   : > { %1717 = vmatprep.subr.bf16.mxu1 %v8643_v40 }
 0x1f0   : > { %1718 = vmatpush1.bf16.msra.mxu1 %v8641_v43 }
 0x1f1   : > { %1719 = vmatprep.subr.bf16.mxu1 %v8646_v45 }
 0x1f4   : > { %1720 = vmatpush1.bf16.msra.mxu1 %v8644_v47 }
 0x1f5   : > { %1721 = vmatprep.subr.bf16.mxu1 %v8649_v48 }
 0x1f8   : > { %1722 = vmatpush1.bf16.msra.mxu1 %v8647_v52 }
 0x1f9   : > { %1723 = vmatprep.subr.bf16.mxu1 %v8652_v54 }
 0x1fc   : > { %1724 = vmatpush1.bf16.msra.mxu1 %v8650_v55 }
 0x1fd   : > { %1725 = vmatprep.subr.bf16.mxu1 %v8655_v56  ;;  %v8704_v56 = vld [vmem:[%s12018_s8 + $0x10] sm:$0xff]  }
 0x200   : > { %1726 = vmatpush1.bf16.msra.mxu1 %v8653_v57  ;;  %v8705_v57 = vld [vmem:[%s12018_s8 + $0x18] sm:$0xff]  }
 0x201   : > { %2088 = vmatprep.subr.bf16.mxu1 %v8658_v58  ;;  %v8706_v58 = vld [vmem:[%s12018_s8] sm:$0xff]  }
 0x203   : > { %1728 = vmatmul.mubr.bf16.vlgmr.msra.gmra.mrb[16].mxu1 %v9659_v10 }
 0x204   : > { %1737 = vmatprep.mubr.bf16.mxu1 %v9683_v23  ;;  %2089 = vmatpush1.bf16.msra.mxu1 %v8656_v59  ;;  %v8707_v59 = vld [vmem:[%s12018_s8 + $0x8] sm:$0xff]  }
 0x205   : > { %2090 = vmatprep.subr.bf16.mxu1 %v8661_v61 }
 0x208   : > { %2091 = vmatpush1.bf16.msra.mxu1 %v8659_v63 }
 0x209   : > { %2092 = vmatprep.subr.bf16.mxu1 %v8664_v4 }
 0x20b   : > { %1738 = vmatmul.mubr.bf16.gmra.mrb[20].mxu1 %v9681_v21 }
 0x20c   : > { %2093 = vmatpush1.bf16.msra.mxu1 %v8662_v8  ;;  %2120 = vmatprep.mubr.bf16.mxu1 %v9661_v35  ;;  %v8671_v35 = vld [vmem:[%s12034_s18 + $0x250] ss:$8 sps:$4 sm:$0xff]  }
 0x20d   : > { %2094 = vmatprep.subr.bf16.mxu1 %v8667_v1 }
 0x210   : > { %2095 = vmatpush1.bf16.msra.mxu1 %v8665_v44 }
 0x211   : > { %2096 = vmatprep.subr.bf16.mxu1 %v8670_v9 }
 0x214   : > { %2097 = vmatpush1.bf16.msra.mxu1 %v8668_v3 }
 0x215   : > { %2098 = vmatprep.subr.bf16.mxu1 %v8673_v5 }
 0x218   : > { %2099 = vmatpush1.bf16.msra.mxu1 %v8671_v35 }
 0x219   : > { %2100 = vmatprep.subr.bf16.mxu1 %v8676_v46 }
 0x21c   : > { %2101 = vmatpush1.bf16.msra.mxu1 %v8674_v51 }
 0x21d   : > { %2102 = vmatprep.subr.bf16.mxu1 %v8679_v36  ;;  %v8708_v36 = vld [vmem:[%s12018_s8 + $0x20] sm:$0xff]  }
 0x220   : > { %2103 = vmatpush1.bf16.msra.mxu1 %v8677_v53  ;;  %v8709_v53 = vld [vmem:[%s12018_s8 + $0x28] sm:$0xff]  }
 0x221   : > { %2104 = vmatprep.subr.bf16.mxu1 %v8682_v11  ;;  %v2234_v11 = vpop.permute.xlu1 %2233 }
 0x224   : > { %2105 = vmatpush1.bf16.msra.mxu1 %v8680_v12 }
 0x225   : > { %2106 = vmatprep.subr.bf16.mxu1 %v8685_v6 }
 0x228   : > { %2107 = vmatpush1.bf16.msra.mxu1 %v8683_v13 }
 0x229   : > { %2108 = vmatprep.subr.bf16.mxu1 %v8688_v14  ;;  %v2239_v14 = vpop.permute.xlu0 %2238 }
 0x22c   : > { %2109 = vmatpush1.bf16.msra.mxu1 %v8686_v15 }
 0x22d   : > { %2110 = vmatprep.subr.bf16.mxu1 %v8691_v60 }
 0x230   : > { %2111 = vmatpush1.bf16.msra.mxu1 %v8689_v16 }
 0x231   : > { %2112 = vmatprep.subr.bf16.mxu1 %v8694_v17 }
 0x234   : > { %2113 = vmatpush1.bf16.msra.mxu1 %v8692_v62 }
 0x235   : > { %2114 = vmatprep.subr.bf16.mxu1 %v8697_v20 }
 0x238   : > { %2115 = vmatpush1.bf16.msra.mxu1 %v8695_v2 }
 0x239   : > { %2116 = vmatprep.subr.bf16.mxu1 %v8700_v7 }
 0x23c   : > { %2117 = vmatpush1.bf16.msra.mxu1 %v8698_v24 }
 0x23d   : > { %2118 = vmatprep.subr.bf16.mxu1 %v8703_v26  ;;  %v2244_v26 = vpop.permute.xlu1 %2243 }
 0x240   : > { %2119 = vmatpush1.bf16.msra.mxu1 %v8701_v27 }
 0x243   : > { %2121 = vmatmul.mubr.bf16.vlgmr.msra.gmra.mrb[24].mxu1 %v9659_v10 }
 0x244   : > { %2130 = vmatprep.mubr.bf16.mxu1 %v9683_v23 }
 0x24b   : > { %2131 = vmatmul.mubr.bf16.gmra.mrb[28].mxu1 %v9681_v21 }
 0x24c   : > { %2910 = vmatprep.mubr.bf16.mxu1 %v9186_v0 }
 0x296   : > { %v1475_v22 = vpop.f32.mrb[8].mxu1 }
 0x297   : > { %v1477_v28 = vpop.f32.mrb[9].mxu1 }
 0x298   : > { %v1479_v29 = vpop.f32.mrb[10].mxu1 }
 0x299   : > { %v1494_v30 = vpack.c.bf16 %v1479_v29, %v1475_v22  ;;  %v1481_v31 = vpop.f32.mrb[11].mxu1 }
 0x29a   : > { %v1495_v32 = vpack.c.bf16 %v1481_v31, %v1477_v28  ;;  %v2249_v31 = vpop.permute.xlu0 %2248 }
 0x29e   : > { %v1485_v33 = vpop.f32.mrb[12].mxu1 }
 0x29f   : > { %v1487_v34 = vpop.f32.mrb[13].mxu1 }
 0x2a0   : > { %v1489_v38 = vpop.f32.mrb[14].mxu1 }
 0x2a1   : > { %v1496_v39 = vpack.c.bf16 %v1489_v38, %v1485_v33  ;;  %v1491_v37 = vpop.f32.mrb[15].mxu1 }
 0x2a2   : > { %v1497_v41 = vpack.c.bf16 %v1491_v37, %v1487_v34 }
 0x2d6   : > { %v1729_v42 = vpop.f32.mrb[16].mxu1 }
 0x2d7   : > { %v1731_v10 = vpop.f32.mrb[17].mxu1 }
 0x2d8   : > { %v1733_v40 = vpop.f32.mrb[18].mxu1 }
 0x2d9   : > { %v1748_v23 = vpack.c.bf16 %v1733_v40, %v1729_v42  ;;  %v1735_v43 = vpop.f32.mrb[19].mxu1 }
 0x2da   : > { %v1749_v21 = vpack.c.bf16 %v1735_v43, %v1731_v10  ;;  %v8710_v43 = vld [vmem:[%s12020_s10 + $0x20] sm:$0xff]  }
 0x2dc   : > { %1773 = vmatprep.subr.bf16.mxu0 %v1749_v21  ;;  %v8711_v21 = vld [vmem:[%s12020_s10 + $0x28] sm:$0xff]  }
 0x2dd   : > { %1774 = vmatpush1.bf16.msra.mxu0 %v1748_v23 }
 0x2de   : > { %v1739_v45 = vpop.f32.mrb[20].mxu1 }
 0x2df   : > { %v1741_v47 = vpop.f32.mrb[21].mxu1 }
 0x2e0   : > { %v1743_v48 = vpop.f32.mrb[22].mxu1 }
 0x2e1   : > { %v1750_v52 = vpack.c.bf16 %v1743_v48, %v1739_v45  ;;  %v1745_v54 = vpop.f32.mrb[23].mxu1  ;;  %v2704_v45 = vld [vmem:[%s12021_s11 + $0x20] sm:$0xff]  ;;  %v2705_v48 = vld [vmem:[%s12021_s11 + $0x28] sm:$0xff] }
 0x2e2   : > { %v1751_v55 = vpack.c.bf16 %v1745_v54, %v1741_v47  ;;  %v8712_v47 = vld [vmem:[%s12020_s10 + $0x30] sm:$0xff]   ;;  %v2707_v54 = vld [vmem:[%s12021_s11 + $0x38] sm:$0xff] }
 0x2e4   : > { %1775 = vmatprep.subr.bf16.mxu0 %v1751_v55  ;;  %v2700_v55 = vld [vmem:[%s12021_s11] sm:$0xff] }
 0x2e5   : > { %1776 = vmatpush1.bf16.msra.mxu0 %v1750_v52  ;;  %v2706_v52 = vld [vmem:[%s12021_s11 + $0x30] sm:$0xff] }
 0x2e6   : > { %1842 = vmatprep.subr.bf16.mxu0 %v1495_v32 }
 0x2e8   : > { %7336 = vmatmul.mubr.msk.bf16.vlgmr.msra.gmra.mrb[16].mxu0 %vm602_vm0, %v8704_v56  ;;  %v8713_v56 = vld [vmem:[%s12020_s10 + $0x38] sm:$0xff]  }
 0x2e9   : > { %1843 = vmatpush1.bf16.msra.mxu0 %v1494_v30  ;;  %1815 = vmatprep.mubr.bf16.mxu0 %v9186_v0 }
 0x2ea   : > { %1844 = vmatprep.subr.bf16.mxu0 %v1497_v41 }
 0x2ed   : > { %1845 = vmatpush1.bf16.msra.mxu0 %v1496_v39 }
 0x2f0   : > { %7337 = vmatmul.mubr.msk.bf16.gmra.mrb[20].mxu0 %vm602_vm0, %v8705_v57  ;;  %v2701_v57 = vld [vmem:[%s12021_s11 + $0x8] sm:$0xff] }
 0x2f1   : > { %1874 = vmatprep.mubr.bf16.mxu0 %v9186_v0 }
 0x2f8   : > { %7340 = vmatmul.mubr.msk.bf16.vlgmr.msra.gmra.mrb[16].mxu0 %vm602_vm0, %v8706_v58  ;;  %v2702_v58 = vld [vmem:[%s12021_s11 + $0x10] sm:$0xff] }
 0x2f9   : > { %1884 = vmatprep.mubr.bf16.mxu0 %v9186_v0 }
 0x300   : > { %7341 = vmatmul.mubr.msk.bf16.gmra.mrb[20].mxu0 %vm602_vm0, %v8707_v59  ;;  %v2703_v59 = vld [vmem:[%s12021_s11 + $0x18] sm:$0xff] }
 0x301   : > { %2198 = vmatprep.mubr.bf16.mxu0 %v9186_v0 }
 0x316   : > { %v2122_v61 = vpop.f32.mrb[24].mxu1 }
 0x317   : > { %v2124_v63 = vpop.f32.mrb[25].mxu1 }
 0x318   : > { %v2126_v4 = vpop.f32.mrb[26].mxu1 }
 0x319   : > { %v2141_v8 = vpack.c.bf16 %v2126_v4, %v2122_v61  ;;  %v2128_v1 = vpop.f32.mrb[27].mxu1 }
 0x31a   : > { %v2142_v44 = vpack.c.bf16 %v2128_v1, %v2124_v63 }
 0x31c   : > { %2166 = vmatprep.subr.bf16.mxu0 %v2142_v44 }
 0x31d   : > { %2167 = vmatpush1.bf16.msra.mxu0 %v2141_v8 }
 0x31e   : > { %v2132_v9 = vpop.f32.mrb[28].mxu1 }
 0x31f   : > { %v2134_v3 = vpop.f32.mrb[29].mxu1 }
 0x320   : > { %v2136_v5 = vpop.f32.mrb[30].mxu1 }
 0x321   : > { %v2143_v35 = vpack.c.bf16 %v2136_v5, %v2132_v9  ;;  %v2138_v46 = vpop.f32.mrb[31].mxu1 }
 0x322   : > { %v2144_v51 = vpack.c.bf16 %v2138_v46, %v2134_v3 }
 0x324   : > { %2168 = vmatprep.subr.bf16.mxu0 %v2144_v51 }
 0x325   : > { %2169 = vmatpush1.bf16.msra.mxu0 %v2143_v35 }
 0x328   : > { %7412 = vmatmul.mubr.msk.bf16.vlgmr.msra.gmra.mrb[16].mxu0 %vm602_vm0, %v8708_v36 }
 0x329   : > { %2208 = vmatprep.mubr.bf16.mxu0 %v9186_v0 }
 0x330   : > { %7413 = vmatmul.mubr.msk.bf16.gmra.mrb[20].mxu0 %vm602_vm0, %v8709_v53 }
 0x331   : > { %2424 = vmatprep.mubr.bf16.mxu0 %v9186_v0 }
 0x3fb   : > { %v2200_v12 = vpop.f32.mrb[16].mxu0 }
 0x3fc   : > { %v2251_v6 = vadd.f32 %v2234_v11, %v2200_v12  ;;  %v2202_v13 = vpop.f32.mrb[17].mxu0 }
 0x3fd   : > { %v2252_v15 = vadd.f32 %v2234_v11, %v2202_v13  ;;  %v2204_v60 = vpop.f32.mrb[18].mxu0 }
 0x3fe   : > { %v9903_v16 = vmax.f32 %v2251_v6, 0.0  ;;  %v2253_v17 = vadd.f32 %v2239_v14, %v2204_v60  ;;  %v2206_v62 = vpop.f32.mrb[19].mxu0 }
 0x3ff   : > { %v2254_v20 = vadd.f32 %v2239_v14, %v2206_v62  ;;  %v9909_v7 = vmax.f32 %v2252_v15, 0.0 }
 0x400   : > { %v9905_v2 = vmax.f32 %v2253_v17, 0.0  ;;  %2271 = vrot.lane.b32.xlu1 %v9903_v16, %s9187_s30 }
 0x401   : > { %v9911_v24 = vmax.f32 %v2254_v20, 0.0 }
 0x402   : > { %2273 = vrot.lane.b32.xlu0 %v9905_v2, %s9187_s30  ;;  %v2267_v30 = vpack.c.bf16 %v9905_v2, %v9903_v16 }
 0x403   : > { %v2210_v27 = vpop.f32.mrb[20].mxu0  ;;  %v2268_v22 = vpack.c.bf16 %v9911_v24, %v9909_v7 }
 0x404   : > { %v2255_v28 = vadd.f32 %v2244_v26, %v2210_v27  ;;  %2279 = vrot.lane.b32.xlu1 %v9909_v7, %s9187_s30  ;;  %v2212_v29 = vpop.f32.mrb[21].mxu0 }
 0x405   : > { %v2256_v32 = vadd.f32 %v2244_v26, %v2212_v29  ;;  %v2214_v33 = vpop.f32.mrb[22].mxu0  ;;  %2392 = vmatprep.subr.bf16.mxu0 %v2268_v22 }
 0x406   : > { %v9921_v34 = vmax.f32 %v2255_v28, 0.0  ;;  %v2257_v38 = vadd.f32 %v2249_v31, %v2214_v33  ;;  %2281 = vrot.lane.b32.xlu0 %v9911_v24, %s9187_s30  ;;  %v2216_v39 = vpop.f32.mrb[23].mxu0  ;;  %2393 = vmatpush1.bf16.msra.mxu0 %v2267_v30 }
 0x407   : > { %v2258_v37 = vadd.f32 %v2249_v31, %v2216_v39  ;;  %v9929_v42 = vmax.f32 %v2256_v32, 0.0  ;;  %v8714_v32 = vld [vmem:[%s12020_s10] sm:$0xff]  }
 0x408   : > { %v9925_v41 = vmax.f32 %v2257_v38, 0.0  ;;  %2275 = vrot.lane.b32.xlu1 %v9921_v34, %s9187_s30 }
 0x409   : > { %v9931_v10 = vmax.f32 %v2258_v37, 0.0 }
 0x40a   : > { %2277 = vrot.lane.b32.xlu0 %v9925_v41, %s9187_s30  ;;  %v2269_v23 = vpack.c.bf16 %v9925_v41, %v9921_v34 }
 0x40b   : > { %v2270_v40 = vpack.c.bf16 %v9931_v10, %v9929_v42 }
 0x40c   : > { %2283 = vrot.lane.b32.xlu1 %v9929_v42, %s9187_s30 }
 0x40d   : > { %2394 = vmatprep.subr.bf16.mxu0 %v2270_v40 }
 0x40e   : > { %2285 = vrot.lane.b32.xlu0 %v9931_v10, %s9187_s30  ;;  %2395 = vmatpush1.bf16.msra.mxu0 %v2269_v23 }
 0x410   : > { %2307 = vrot.lane.b32.xlu1 %v9903_v16, %s12035_s27 }
 0x411   : > { %7426 = vmatmul.mubr.msk.bf16.vlgmr.msra.gmra.mrb[24].mxu0 %vm602_vm0, %v8710_v43 }
 0x412   : > { %2309 = vrot.lane.b32.xlu0 %v9905_v2, %s12035_s27  ;;  %2434 = vmatprep.mubr.bf16.mxu0 %v9186_v0 }
 0x414   : > { %2315 = vrot.lane.b32.xlu1 %v9909_v7, %s12035_s27 }
 0x416   : > { %2317 = vrot.lane.b32.xlu0 %v9911_v24, %s12035_s27 }
 0x418   : > { %2311 = vrot.lane.b32.xlu1 %v9921_v34, %s12035_s27 }
 0x419   : > { %7427 = vmatmul.mubr.msk.bf16.gmra.mrb[28].mxu0 %vm602_vm0, %v8711_v21 }
 0x41a   : > { %2313 = vrot.lane.b32.xlu0 %v9925_v41, %s12035_s27  ;;  %2444 = vmatprep.mubr.bf16.mxu0 %v9186_v0 }
 0x41c   : > { %2319 = vrot.lane.b32.xlu1 %v9929_v42, %s12035_s27 }
 0x41e   : > { %2321 = vrot.lane.b32.xlu0 %v9931_v10, %s12035_s27 }
 0x420   : > { %2730 = vperm.xlu1 %8545, %v2704_v45  }
 0x421   : > { %7428 = vmatmul.mubr.msk.bf16.gmra.mrb[32].mxu0 %vm602_vm0, %v8712_v47 }
 0x422   : > { %2735 = vperm.xlu0 %8544, %v2705_v48   ;;  %2454 = vmatprep.mubr.bf16.mxu0 %v9186_v0 }
 0x424   : > { %2740 = vperm.xlu1 %8545, %v2706_v52  }
 0x426   : > { %2745 = vperm.xlu0 %8544, %v2707_v54  }
 0x428   : > { %2710 = vperm.xlu1 %8545, %v2700_v55  }
 0x429   : > { %7429 = vmatmul.mubr.msk.bf16.gmra.mrb[36].mxu0 %vm602_vm0, %v8713_v56  ;;  %v8715_v56 = vld [vmem:[%s12020_s10 + $0x8] sm:$0xff]  }
 0x42a   : > { %2715 = vperm.xlu0 %8544, %v2701_v57   ;;  %2529 = vmatprep.mubr.bf16.mxu0 %v9186_v0 }
 0x42c   : > { %2720 = vperm.xlu1 %8545, %v2702_v58  }
 0x42e   : > { %2725 = vperm.xlu0 %8544, %v2703_v59  }
 0x472   : > { %v2272_v61 = vpop.permute.xlu1 %2271 }
 0x474   : > { %v2274_v63 = vpop.permute.xlu0 %2273 }
 0x476   : > { %v2280_v4 = vpop.permute.xlu1 %2279 }
 0x477   : > { %v2287_v8 = vsel %vm680_vm1, %v2272_v61, %v2280_v4  ;;  %v2291_v1 = vsel %vm680_vm1, %v2280_v4, %v2272_v61 }
 0x478   : > { %v2282_v44 = vpop.permute.xlu0 %2281  ;;  %v2295_v5 = vmul.f32 %v2291_v1, %v9420_v49  ;;  %v2296_v35 = vmul.f32 %v2287_v8, %v9424_v50 }
 0x479   : > { %v2288_v9 = vsel %vm680_vm1, %v2274_v63, %v2282_v44  ;;  %v2292_v3 = vsel %vm680_vm1, %v2282_v44, %v2274_v63 }
 0x47a   : > { %v2297_v46 = vmul.f32 %v2292_v3, %v9420_v49  ;;  %v2298_v51 = vmul.f32 %v2288_v9, %v9424_v50  ;;  %v2276_v36 = vpop.permute.xlu1 %2275 }
 0x47c   : > { %v2303_v53 = vpack.c.bf16 %v2297_v46, %v2295_v5  ;;  %v2278_v11 = vpop.permute.xlu0 %2277  ;;  %v2304_v12 = vpack.c.bf16 %v2298_v51, %v2296_v35  ;;  %v8716_v5 = vld [vmem:[%s12020_s10 + $0x10] sm:$0xff]   ;;  %v8987_v35 = vld [vmem:[%s12034_s18 + $0x4] ss:$8 sps:$4 sm:$0xff]   ;;  %v8717_v46 = vld [vmem:[%s12020_s10 + $0x18] sm:$0xff]  }
 0x47d   : > { %v8718_v51 = vld [vmem:[%s12020_s10 + $0x40] sm:$0xff]  }
 0x47e   : > { %v2284_v6 = vpop.permute.xlu1 %2283  ;;  %2497 = vmatprep.subr.bf16.mxu0 %v2304_v12  ;;  %v8990_v12 = vld [vmem:[%s12034_s18 + $0x10] ss:$8 sps:$4 sm:$0xff]  }
 0x47f   : > { %v2289_v13 = vsel %vm680_vm1, %v2276_v36, %v2284_v6  ;;  %v2293_v14 = vsel %vm680_vm1, %v2284_v6, %v2276_v36  ;;  %2498 = vmatpush1.bf16.msra.mxu0 %v2303_v53  ;;  %v8988_v36 = vld [vmem:[%s12034_s18] ss:$8 sps:$4 sm:$0xff]   ;;  %v8989_v53 = vld [vmem:[%s12034_s18 + $0x14] ss:$8 sps:$4 sm:$0xff]   ;;  %v8991_v6 = vld [vmem:[%s12034_s18 + $0x24] ss:$8 sps:$4 sm:$0xff]  }
 0x480   : > { %v2286_v15 = vpop.permute.xlu0 %2285  ;;  %v2299_v62 = vmul.f32 %v2293_v14, %v9420_v49  ;;  %v2300_v20 = vmul.f32 %v2289_v13, %v9424_v50  ;;  %v8992_v13 = vld [vmem:[%s12034_s18 + $0x20] ss:$8 sps:$4 sm:$0xff]   ;;  %v8993_v14 = vld [vmem:[%s12034_s18 + $0x34] ss:$8 sps:$4 sm:$0xff]  }
 0x481   : > { %v2290_v60 = vsel %vm680_vm1, %v2278_v11, %v2286_v15  ;;  %v2294_v17 = vsel %vm680_vm1, %v2286_v15, %v2278_v11  ;;  %v8719_v11 = vld [vmem:[%s12020_s10 + $0x48] sm:$0xff]   ;;  %v8720_v15 = vld [vmem:[%s12020_s10 + $0x50] sm:$0xff]  }
 0x482   : > { %v2301_v26 = vmul.f32 %v2294_v17, %v9420_v49  ;;  %v2302_v27 = vmul.f32 %v2290_v60, %v9424_v50  ;;  %v2308_v22 = vpop.permute.xlu1 %2307  ;;  %v8994_v60 = vld [vmem:[%s12034_s18 + $0x30] ss:$8 sps:$4 sm:$0xff]   ;;  %v8995_v17 = vld [vmem:[%s12034_s18 + $0x44] ss:$8 sps:$4 sm:$0xff]  }
 0x484   : > { %v2305_v28 = vpack.c.bf16 %v2301_v26, %v2299_v62  ;;  %v2310_v29 = vpop.permute.xlu0 %2309  ;;  %v2306_v30 = vpack.c.bf16 %v2302_v27, %v2300_v20  ;;  %v8996_v62 = vld [vmem:[%s12034_s18 + $0x40] ss:$8 sps:$4 sm:$0xff]   ;;  %v8997_v20 = vld [vmem:[%s12034_s18 + $0x54] ss:$8 sps:$4 sm:$0xff]   ;;  %v8998_v27 = vld [vmem:[%s12034_s18 + $0x50] ss:$8 sps:$4 sm:$0xff]  }
 0x485   : > { %v8721_v26 = vld [vmem:[%s12020_s10 + $0x58] sm:$0xff]  }
 0x486   : > { %v2316_v31 = vpop.permute.xlu1 %2315  ;;  %2499 = vmatprep.subr.bf16.mxu0 %v2306_v30  ;;  %v9002_v30 = vld [vmem:[%s12034_s18 + $0x70] ss:$8 sps:$4 sm:$0xff]  }
 0x487   : > { %v2323_v33 = vsel %vm728_vm2, %v2308_v22, %v2316_v31  ;;  %v2327_v38 = vsel %vm728_vm2, %v2316_v31, %v2308_v22  ;;  %2500 = vmatpush1.bf16.msra.mxu0 %v2305_v28  ;;  %v8999_v22 = vld [vmem:[%s12034_s18 + $0x64] ss:$8 sps:$4 sm:$0xff]   ;;  %v9000_v28 = vld [vmem:[%s12034_s18 + $0x60] ss:$8 sps:$4 sm:$0xff]  }
 0x488   : > { %v2318_v39 = vpop.permute.xlu0 %2317  ;;  %v2331_v23 = vmul.f32 %v2323_v33, %v9459_v18  ;;  %v2332_v43 = vmul.f32 %v2327_v38, %v9463_v19  ;;  %v9003_v31 = vld [vmem:[%s12034_s18 + $0x84] ss:$8 sps:$4 sm:$0xff]   ;;  %v9005_v33 = vld [vmem:[%s12034_s18 + $0x94] ss:$8 sps:$4 sm:$0xff]   ;;  %v9006_v38 = vld [vmem:[%s12034_s18 + $0x90] ss:$8 sps:$4 sm:$0xff]  }
 0x489   : > { %v2324_v37 = vsel %vm728_vm2, %v2310_v29, %v2318_v39  ;;  %v2328_v40 = vsel %vm728_vm2, %v2318_v39, %v2310_v29  ;;  %v9001_v29 = vld [vmem:[%s12034_s18 + $0x74] ss:$8 sps:$4 sm:$0xff]   ;;  %v9007_v39 = vld [vmem:[%s12034_s18 + $0xa4] ss:$8 sps:$4 sm:$0xff]  }
 0x48a   : > { %v2333_v21 = vmul.f32 %v2324_v37, %v9459_v18  ;;  %v2334_v45 = vmul.f32 %v2328_v40, %v9463_v19  ;;  %v2312_v47 = vpop.permute.xlu1 %2311  ;;  %7434 = vmatmul.mubr.msk.bf16.vlgmr.msra.gmra.mrb[24].mxu0 %vm602_vm0, %v8714_v32  ;;  %v9004_v32 = vld [vmem:[%s12034_s18 + $0x80] ss:$8 sps:$4 sm:$0xff]   ;;  %v9009_v40 = vld [vmem:[%s12034_s18 + $0xb4] ss:$8 sps:$4 sm:$0xff]  }
 0x48b   : > { %2539 = vmatprep.mubr.bf16.mxu0 %v9186_v0  ;;  %v9008_v37 = vld [vmem:[%s12034_s18 + $0xa0] ss:$8 sps:$4 sm:$0xff]  }
 0x48c   : > { %v2339_v48 = vpack.c.bf16 %v2333_v21, %v2331_v23  ;;  %v2314_v52 = vpop.permute.xlu0 %2313  ;;  %v2340_v54 = vpack.c.bf16 %v2334_v45, %v2332_v43  ;;  %v9010_v23 = vld [vmem:[%s12034_s18 + $0xb0] ss:$8 sps:$4 sm:$0xff]   ;;  %v9011_v43 = vld [vmem:[%s12034_s18 + $0xc4] ss:$8 sps:$4 sm:$0xff]   ;;  %v9012_v21 = vld [vmem:[%s12034_s18 + $0xc0] ss:$8 sps:$4 sm:$0xff]  }
 0x48d   : > { %v9013_v45 = vld [vmem:[%s12034_s18 + $0xd4] ss:$8 sps:$4 sm:$0xff]  }
 0x48e   : > { %v2320_v55 = vpop.permute.xlu1 %2319  ;;  %2611 = vmatprep.subr.bf16.mxu0 %v2340_v54  ;;  %v9017_v54 = vld [vmem:[%s12034_s18 + $0xf4] ss:$8 sps:$4 sm:$0xff]  }
 0x48f   : > { %v2325_v57 = vsel %vm728_vm2, %v2312_v47, %v2320_v55  ;;  %v2329_v58 = vsel %vm728_vm2, %v2320_v55, %v2312_v47  ;;  %2612 = vmatpush1.bf16.msra.mxu0 %v2339_v48  ;;  %v9014_v47 = vld [vmem:[%s12034_s18 + $0xd0] ss:$8 sps:$4 sm:$0xff]   ;;  %v9015_v48 = vld [vmem:[%s12034_s18 + $0xe4] ss:$8 sps:$4 sm:$0xff]  }
 0x490   : > { %v2322_v59 = vpop.permute.xlu0 %2321  ;;  %v2335_v4 = vmul.f32 %v2325_v57, %v9459_v18  ;;  %v2336_v8 = vmul.f32 %v2329_v58, %v9463_v19  ;;  %v9018_v55 = vld [vmem:[%s12034_s18 + $0xf0] ss:$8 sps:$4 sm:$0xff]  }
 0x491   : > { %v2326_v61 = vsel %vm728_vm2, %v2314_v52, %v2322_v59  ;;  %v2330_v63 = vsel %vm728_vm2, %v2322_v59, %v2314_v52  ;;  %v9016_v52 = vld [vmem:[%s12034_s18 + $0xe0] ss:$8 sps:$4 sm:$0xff]  }
 0x492   : > { %v2337_v1 = vmul.f32 %v2326_v61, %v9459_v18  ;;  %v2338_v44 = vmul.f32 %v2330_v63, %v9463_v19  ;;  %7435 = vmatmul.mubr.msk.bf16.gmra.mrb[28].mxu0 %vm602_vm0, %v8715_v56 }
 0x493   : > { %2549 = vmatprep.mubr.bf16.mxu0 %v9186_v0 }
 0x494   : > { %v2341_v9 = vpack.c.bf16 %v2337_v1, %v2335_v4  ;;  %v2342_v3 = vpack.c.bf16 %v2338_v44, %v2336_v8 }
 0x496   : > { %2613 = vmatprep.subr.bf16.mxu0 %v2342_v3 }
 0x497   : > { %2614 = vmatpush1.bf16.msra.mxu0 %v2341_v9 }
 0x498   : > { %3494 = vmatprep.subr.bf16.mxu0 %v8987_v35 }
 0x49a   : > { %7436 = vmatmul.mubr.msk.bf16.gmra.mrb[32].mxu0 %vm602_vm0, %v8716_v5 }
 0x49b   : > { %2559 = vmatprep.mubr.bf16.mxu0 %v9186_v0 }
 0x49f   : > { %v2731_v1 = vpop.permute.xlu1 %2730 }
 0x4a1   : > { %v2736_v5 = vpop.permute.xlu0 %2735 }
 0x4a2   : > { %7437 = vmatmul.mubr.msk.bf16.gmra.mrb[36].mxu0 %vm602_vm0, %v8717_v46 }
 0x4a3   : > { %2643 = vmatprep.mubr.bf16.mxu0 %v9186_v0 }
 0x4aa   : > { %7450 = vmatmul.mubr.msk.bf16.vlgmr.msra.gmra.mrb[24].mxu0 %vm602_vm0, %v8718_v51 }
 0x4ab   : > { %2653 = vmatprep.mubr.bf16.mxu0 %v9186_v0  ;;  %3495 = vmatpush1.bf16.msra.mxu0 %v8988_v36 }
 0x4ac   : > { %3496 = vmatprep.subr.bf16.mxu0 %v8989_v53 }
 0x4af   : > { %3497 = vmatpush1.bf16.msra.mxu0 %v8990_v12 }
 0x4b0   : > { %3498 = vmatprep.subr.bf16.mxu0 %v8991_v6 }
 0x4b2   : > { %7451 = vmatmul.mubr.msk.bf16.gmra.mrb[28].mxu0 %vm602_vm0, %v8719_v11 }
 0x4b3   : > { %2663 = vmatprep.mubr.bf16.mxu0 %v9186_v0  ;;  %3499 = vmatpush1.bf16.msra.mxu0 %v8992_v13 }
 0x4b4   : > { %3500 = vmatprep.subr.bf16.mxu0 %v8993_v14  ;;  %v2741_v14 = vpop.permute.xlu1 %2740 }
 0x4b7   : > { %3501 = vmatpush1.bf16.msra.mxu0 %v8994_v60 }
 0x4b8   : > { %3502 = vmatprep.subr.bf16.mxu0 %v8995_v17 }
 0x4ba   : > { %7452 = vmatmul.mubr.msk.bf16.gmra.mrb[32].mxu0 %vm602_vm0, %v8720_v15 }
 0x4bb   : > { %2673 = vmatprep.mubr.bf16.mxu0 %v9186_v0  ;;  %3503 = vmatpush1.bf16.msra.mxu0 %v8996_v62  ;;  %v2746_v62 = vpop.permute.xlu0 %2745 }
 0x4bc   : > { %3504 = vmatprep.subr.bf16.mxu0 %v8997_v20 }
 0x4bf   : > { %3505 = vmatpush1.bf16.msra.mxu0 %v8998_v27 }
 0x4c0   : > { %3506 = vmatprep.subr.bf16.mxu0 %v8999_v22 }
 0x4c2   : > { %7453 = vmatmul.mubr.msk.bf16.gmra.mrb[36].mxu0 %vm602_vm0, %v8721_v26 }
 0x4c3   : > { %3507 = vmatpush1.bf16.msra.mxu0 %v9000_v28 }
 0x4c4   : > { %3508 = vmatprep.subr.bf16.mxu0 %v9001_v29 }
 0x4c7   : > { %3509 = vmatpush1.bf16.msra.mxu0 %v9002_v30 }
 0x4c8   : > { %3510 = vmatprep.subr.bf16.mxu0 %v9003_v31 }
 0x4cb   : > { %3511 = vmatpush1.bf16.msra.mxu0 %v9004_v32 }
 0x4cc   : > { %3512 = vmatprep.subr.bf16.mxu0 %v9005_v33 }
 0x4cf   : > { %3513 = vmatpush1.bf16.msra.mxu0 %v9006_v38 }
 0x4d0   : > { %3514 = vmatprep.subr.bf16.mxu0 %v9007_v39 }
 0x4d3   : > { %3515 = vmatpush1.bf16.msra.mxu0 %v9008_v37 }
 0x4d4   : > { %3516 = vmatprep.subr.bf16.mxu0 %v9009_v40 }
 0x4d7   : > { %3517 = vmatpush1.bf16.msra.mxu0 %v9010_v23 }
 0x4d8   : > { %3518 = vmatprep.subr.bf16.mxu0 %v9011_v43 }
 0x4db   : > { %3519 = vmatpush1.bf16.msra.mxu0 %v9012_v21 }
 0x4dc   : > { %3520 = vmatprep.subr.bf16.mxu0 %v9013_v45  ;;  %v2711_v45 = vpop.permute.xlu1 %2710 }
 0x4df   : > { %3521 = vmatpush1.bf16.msra.mxu0 %v9014_v47 }
 0x4e0   : > { %3522 = vmatprep.subr.bf16.mxu0 %v9015_v48 }
 0x4e3   : > { %3523 = vmatpush1.bf16.msra.mxu0 %v9016_v52 }
 0x4e4   : > { %3524 = vmatprep.subr.bf16.mxu0 %v9017_v54  ;;  %v2716_v54 = vpop.permute.xlu0 %2715 }
 0x4e7   : > { %3525 = vmatpush1.bf16.msra.mxu0 %v9018_v55 }
 0x57d   : > { %v2645_v56 = vpop.f32.mrb[24].mxu0 }
 0x57e   : > { %v2647_v57 = vpop.f32.mrb[25].mxu0  ;;  %v2748_v48 = vadd.f32 %v2711_v45, %v2645_v56 }
 0x57f   : > { %v2649_v58 = vpop.f32.mrb[26].mxu0  ;;  %v2749_v55 = vadd.f32 %v2711_v45, %v2647_v57  ;;  %v7522_v45 = vld [vmem:[%s12017_s7 + $0x40] sm:$0xff] }
 0x580   : > { %v10186_v59 = vpop.f32.mrb[27].mxu0 }
 0x585   : > { %v10188_v61 = vpop.f32.mrb[28].mxu0 }
 0x586   : > { %v10190_v63 = vpop.f32.mrb[29].mxu0 }
 0x587   : > { %v10192_v4 = vpop.f32.mrb[30].mxu0 }
 0x588   : > { %v10194_v8 = vpop.f32.mrb[31].mxu0 }
 0x58d   : > { %v2665_v44 = vpop.f32.mrb[32].mxu0 }
 0x58e   : > { %v2756_v9 = vadd.f32 %v2731_v1, %v2665_v44  ;;  %v2667_v3 = vpop.f32.mrb[33].mxu0 }
 0x58f   : > { %v2757_v35 = vadd.f32 %v2731_v1, %v2667_v3  ;;  %v2669_v46 = vpop.f32.mrb[34].mxu0 }
 0x590   : > { %v7454_v51 = vmul.f32 -1.442695, %v2756_v9  ;;  %v2758_v36 = vadd.f32 %v2736_v5, %v2669_v46  ;;  %v2671_v53 = vpop.f32.mrb[35].mxu0  ;;  %v2750_v9 = vadd.f32 %v2716_v54, %v2649_v58 }
 0x591   : > { %v7455_v11 = vmul.f32 -1.442695, %v2757_v35  ;;  %v2759_v12 = vadd.f32 %v2736_v5, %v2671_v53  ;;  %v2751_v35 = vadd.f32 %v2716_v54, %v10186_v59  ;;  %v7469_v54 = vld [vmem:[%s12015_s5 + $0x38] sm:$0xff] }
 0x592   : > { %8827 = vpow2.f32 %v7454_v51  ;;  %v7456_v6 = vmul.f32 -1.442695, %v2758_v36  ;;  %v2764_v51 = vadd.f32 %v2748_v48, %v9903_v16  ;;  %v2766_v57 = vadd.f32 %v2750_v9, %v9905_v2  ;;  %v7468_v48 = vld [vmem:[%s12015_s5 + $0x30] sm:$0xff]  ;;  %v8727_v9 = vld [vmem:[%s12016_s6 + $0x98] sm:$0xff]  }
 0x593   : > { %8829 = vpow2.f32 %v7455_v11  ;;  %v7457_v13 = vmul.f32 -1.442695, %v2759_v12  ;;  %v2765_v11 = vadd.f32 %v2749_v55, %v9909_v7  ;;  %v7524_v55 = vld [vmem:[%s12017_s7 + $0x50] sm:$0xff] }
 0x594   : > { %8831 = vpow2.f32 %v7456_v6  ;;  %v2721_v6 = vpop.permute.xlu1 %2720 }
 0x595   : > { %8833 = vpow2.f32 %v7457_v13  ;;  %v2675_v15 = vpop.f32.mrb[36].mxu0  ;;  %v2767_v13 = vadd.f32 %v2751_v35, %v9911_v24  ;;  %v2753_v7 = vadd.f32 %v2721_v6, %v10190_v63  ;;  %v7565_v35 = vld [vmem:[%s12019_s9 + $0x38] sm:$0xff] }
 0x596   : > { %v2760_v60 = vadd.f32 %v2741_v14, %v2675_v15  ;;  %v2677_v17 = vpop.f32.mrb[37].mxu0  ;;  %v2752_v15 = vadd.f32 %v2721_v6, %v10188_v61 }
 0x597   : > { %v2761_v20 = vadd.f32 %v2741_v14, %v2677_v17  ;;  %v2679_v26 = vpop.f32.mrb[38].mxu0 }
 0x598   : > { %v7458_v27 = vmul.f32 -1.442695, %v2760_v60  ;;  %v2762_v22 = vadd.f32 %v2746_v62, %v2679_v26  ;;  %v2681_v28 = vpop.f32.mrb[39].mxu0  ;;  %v2726_v60 = vpop.permute.xlu0 %2725  ;;  %v2768_v24 = vadd.f32 %v2752_v15, %v9921_v34 }
 0x599   : > { %v7459_v29 = vmul.f32 -1.442695, %v2761_v20  ;;  %v2763_v30 = vadd.f32 %v2746_v62, %v2681_v28  ;;  %v2754_v62 = vadd.f32 %v2726_v60, %v10192_v4  ;;  %v2755_v20 = vadd.f32 %v2726_v60, %v10194_v8 }
 0x59a   : > { %8835 = vpow2.f32 %v7458_v27  ;;  %v7460_v31 = vmul.f32 -1.442695, %v2762_v22  ;;  %v2769_v27 = vadd.f32 %v2753_v7, %v9929_v42 }
 0x59b   : > { %8837 = vpow2.f32 %v7459_v29  ;;  %v7461_v32 = vmul.f32 -1.442695, %v2763_v30  ;;  %v2770_v63 = vadd.f32 %v2754_v62, %v9925_v41  ;;  %v2771_v29 = vadd.f32 %v2755_v20, %v9931_v10  ;;  %v8722_v41 = vld [vmem:[%s12014_s4 + $0x10] sm:$0xff]   ;;  %v8723_v10 = vld [vmem:[%s12014_s4 + $0x18] sm:$0xff]  }
 0x59c   : > { %v8828_v33 = vpop.eup %8827  ;;  %8839 = vpow2.f32 %v7460_v31 }
 0x59d   : > { %v8830_v38 = vpop.eup %8829  ;;  %v2796_v39 = vadd.f32 1.0, %v8828_v33  ;;  %8841 = vpow2.f32 %v7461_v32  ;;  %v7526_v33 = vld [vmem:[%s12017_s7 + $0x60] sm:$0xff] }
 0x59e   : > { %v8832_v37 = vpop.eup %8831  ;;  %v2797_v40 = vadd.f32 1.0, %v8830_v38  ;;  %v8724_v38 = vld [vmem:[%s12016_s6 + $0x80] sm:$0xff]  }
 0x59f   : > { %v8834_v23 = vpop.eup %8833  ;;  %8843 = vrcp.f32 %v2796_v39  ;;  %v2798_v43 = vadd.f32 1.0, %v8832_v37  ;;  %v7527_v39 = vld [vmem:[%s12017_s7 + $0x68] sm:$0xff]  ;;  %v7528_v37 = vld [vmem:[%s12017_s7 + $0x70] sm:$0xff] }
 0x5a0   : > { %8845 = vrcp.f32 %v2797_v40  ;;  %v2799_v21 = vadd.f32 1.0, %v8834_v23  ;;  %v7529_v40 = vld [vmem:[%s12017_s7 + $0x78] sm:$0xff]  ;;  %v7466_v23 = vld [vmem:[%s12015_s5 + $0x20] sm:$0xff] }
 0x5a1   : > { %8847 = vrcp.f32 %v2798_v43  ;;  %v8725_v43 = vld [vmem:[%s12016_s6 + $0x88] sm:$0xff]  }
 0x5a2   : > { %8849 = vrcp.f32 %v2799_v21  ;;  %v7467_v21 = vld [vmem:[%s12015_s5 + $0x28] sm:$0xff] }
 0x5a4   : > { %v8836_v47 = vpop.eup %8835 }
 0x5a5   : > { %v8838_v52 = vpop.eup %8837  ;;  %v2800_v1 = vadd.f32 1.0, %v8836_v47  ;;  %v7523_v47 = vld [vmem:[%s12017_s7 + $0x48] sm:$0xff] }
 0x5a6   : > { %v8840_v44 = vpop.eup %8839  ;;  %v2801_v3 = vadd.f32 1.0, %v8838_v52  ;;  %v8726_v52 = vld [vmem:[%s12016_s6 + $0x90] sm:$0xff]  }
 0x5a7   : > { %v8842_v5 = vpop.eup %8841  ;;  %8851 = vrcp.f32 %v2800_v1  ;;  %v2802_v46 = vadd.f32 1.0, %v8840_v44  ;;  %v7525_v1 = vld [vmem:[%s12017_s7 + $0x58] sm:$0xff]  ;;  %v7562_v44 = vld [vmem:[%s12019_s9 + $0x20] sm:$0xff] }
 0x5a8   : > { %8853 = vrcp.f32 %v2801_v3  ;;  %v2803_v36 = vadd.f32 1.0, %v8842_v5  ;;  %v7563_v3 = vld [vmem:[%s12019_s9 + $0x28] sm:$0xff]  ;;  %v7564_v5 = vld [vmem:[%s12019_s9 + $0x30] sm:$0xff] }
 0x5a9   : > { %v8844_v53 = vpop.eup %8843  ;;  %8855 = vrcp.f32 %v2802_v46 }
 0x5aa   : > { %v8846_v56 = vpop.eup %8845  ;;  %8857 = vrcp.f32 %v2803_v36  ;;  %v2820_v12 = vmul.f32 %v8844_v53, %v2764_v51 }
 0x5ab   : > { %v8848_v58 = vpop.eup %8847  ;;  %v2821_v59 = vmul.f32 %v8846_v56, %v2765_v11 }
 0x5ac   : > { %v8850_v14 = vpop.eup %8849  ;;  %2931 = vrot.lane.b32.xlu1 %v2820_v12, %s9187_s30  ;;  %v2822_v16 = vmul.f32 %v8848_v58, %v2766_v57 }
 0x5ad   : > { %v2823_v17 = vmul.f32 %v8850_v14, %v2767_v13 }
 0x5ae   : > { %2933 = vrot.lane.b32.xlu0 %v2822_v16, %s9187_s30  ;;  %v2833_v2 = vpack.c.bf16 %v2822_v16, %v2820_v12 }
 0x5af   : > { %v2834_v26 = vpack.c.bf16 %v2823_v17, %v2821_v59 }
 0x5b0   : > { %2939 = vrot.lane.b32.xlu1 %v2821_v59, %s9187_s30 }
 0x5b1   : > { %v8852_v61 = vpop.eup %8851  ;;  %2878 = vmatprep.subr.bf16.mxu1 %v2834_v26 }
 0x5b2   : > { %v8854_v22 = vpop.eup %8853  ;;  %2941 = vrot.lane.b32.xlu0 %v2823_v17, %s9187_s30  ;;  %2879 = vmatpush1.bf16.msra.mxu1 %v2833_v2  ;;  %v2824_v4 = vmul.f32 %v8852_v61, %v2768_v24 }
 0x5b3   : > { %v8856_v28 = vpop.eup %8855  ;;  %v2825_v8 = vmul.f32 %v8854_v22, %v2769_v27 }
 0x5b4   : > { %v8858_v30 = vpop.eup %8857  ;;  %2935 = vrot.lane.b32.xlu1 %v2824_v4, %s9187_s30  ;;  %v2826_v34 = vmul.f32 %v8856_v28, %v2770_v63 }
 0x5b5   : > { %v2827_v31 = vmul.f32 %v8858_v30, %v2771_v29  ;;  %v8728_v30 = vld [vmem:[%s12016_s6 + $0x60] sm:$0xff]  }
 0x5b6   : > { %2937 = vrot.lane.b32.xlu0 %v2826_v34, %s9187_s30  ;;  %v2835_v42 = vpack.c.bf16 %v2826_v34, %v2824_v4 }
 0x5b7   : > { %v2836_v32 = vpack.c.bf16 %v2827_v31, %v2825_v8 }
 0x5b8   : > { %2943 = vrot.lane.b32.xlu1 %v2825_v8, %s9187_s30 }
 0x5b9   : > { %2880 = vmatprep.subr.bf16.mxu1 %v2836_v32 }
 0x5ba   : > { %2945 = vrot.lane.b32.xlu0 %v2827_v31, %s9187_s30  ;;  %2881 = vmatpush1.bf16.msra.mxu1 %v2835_v42 }
 0x5bb   : > { %3053 = vmatprep.subr.bf16.mxu1 %v2834_v26 }
 0x5bc   : > { %2967 = vrot.lane.b32.xlu1 %v2820_v12, %s12035_s27 }
 0x5bd   : > { %7472 = vmatmul.mubr.msk.bf16.vlgmr.msra.gmra.mrb[32].mxu1 %vm602_vm0, %v8722_v41 }
 0x5be   : > { %2969 = vrot.lane.b32.xlu0 %v2822_v16, %s12035_s27  ;;  %3054 = vmatpush1.bf16.msra.mxu1 %v2833_v2 }
 0x5bf   : > { %3055 = vmatprep.subr.bf16.mxu1 %v2836_v32  ;;  %2920 = vmatprep.mubr.bf16.mxu1 %v9186_v0 }
 0x5c0   : > { %2975 = vrot.lane.b32.xlu1 %v2821_v59, %s12035_s27 }
 0x5c2   : > { %2977 = vrot.lane.b32.xlu0 %v2823_v17, %s12035_s27  ;;  %3056 = vmatpush1.bf16.msra.mxu1 %v2835_v42 }
 0x5c4   : > { %2971 = vrot.lane.b32.xlu1 %v2824_v4, %s12035_s27 }
 0x5c5   : > { %7473 = vmatmul.mubr.msk.bf16.gmra.mrb[36].mxu1 %vm602_vm0, %v8723_v10 }
 0x5c6   : > { %2973 = vrot.lane.b32.xlu0 %v2826_v34, %s12035_s27  ;;  %3085 = vmatprep.mubr.bf16.mxu1 %v9186_v0 }
 0x5c8   : > { %2979 = vrot.lane.b32.xlu1 %v2825_v8, %s12035_s27 }
 0x5ca   : > { %2981 = vrot.lane.b32.xlu0 %v2827_v31, %s12035_s27 }
 0x5cc   : > { %3392 = vperm.xlu1 %8545, %v7526_v33  }
 0x5cd   : > { %7494 = vmatmul.mubr.msk.bf16.vlgmr.msra.gmra.mrb[32].mxu1 %vm602_vm0, %v8724_v38 }
 0x5ce   : > { %3397 = vperm.xlu0 %8544, %v7527_v39   ;;  %3095 = vmatprep.mubr.bf16.mxu1 %v9186_v0 }
 0x5d0   : > { %3402 = vperm.xlu1 %8545, %v7528_v37  }
 0x5d2   : > { %3407 = vperm.xlu0 %8544, %v7529_v40  }
 0x5d4   : > { %2844 = vperm.xlu1 %8545, %v7466_v23  }
 0x5d5   : > { %7495 = vmatmul.mubr.msk.bf16.gmra.mrb[36].mxu1 %vm602_vm0, %v8725_v43 }
 0x5d6   : > { %2849 = vperm.xlu0 %8544, %v7467_v21   ;;  %3105 = vmatprep.mubr.bf16.mxu1 %v9186_v0 }
 0x5d8   : > { %3372 = vperm.xlu1 %8545, %v7522_v45   ;;  %v8729_v45 = vld [vmem:[%s12016_s6 + $0x68] sm:$0xff]  }
 0x5da   : > { %3377 = vperm.xlu0 %8544, %v7523_v47  }
 0x5dc   : > { %2854 = vperm.xlu1 %8545, %v7468_v48  }
 0x5dd   : > { %7496 = vmatmul.mubr.msk.bf16.gmra.mrb[40].mxu1 %vm602_vm0, %v8726_v52 }
 0x5de   : > { %2859 = vperm.xlu0 %8544, %v7469_v54   ;;  %3115 = vmatprep.mubr.bf16.mxu1 %v9186_v0 }
 0x5e0   : > { %3382 = vperm.xlu1 %8545, %v7524_v55  }
 0x5e2   : > { %3387 = vperm.xlu0 %8544, %v7525_v1  }
 0x5e4   : > { %3902 = vperm.xlu1 %8545, %v7562_v44  }
 0x5e5   : > { %7497 = vmatmul.mubr.msk.bf16.gmra.mrb[44].mxu1 %vm602_vm0, %v8727_v9 }
 0x5e6   : > { %3907 = vperm.xlu0 %8544, %v7563_v3   ;;  %3190 = vmatprep.mubr.bf16.mxu1 %v9186_v0 }
 0x5e8   : > { %3912 = vperm.xlu1 %8545, %v7564_v5  }
 0x5ea   : > { %3917 = vperm.xlu0 %8544, %v7565_v35  }
 0x61e   : > { %v2932_v46 = vpop.permute.xlu1 %2931 }
 0x620   : > { %v2934_v51 = vpop.permute.xlu0 %2933 }
 0x622   : > { %v2940_v36 = vpop.permute.xlu1 %2939 }
 0x623   : > { %v2947_v53 = vsel %vm680_vm1, %v2932_v46, %v2940_v36  ;;  %v2951_v11 = vsel %vm680_vm1, %v2940_v36, %v2932_v46  ;;  %v8730_v46 = vld [vmem:[%s12016_s6 + $0x70] sm:$0xff]   ;;  %v8731_v36 = vld [vmem:[%s12016_s6 + $0x78] sm:$0xff]  }
 0x624   : > { %v2942_v56 = vpop.permute.xlu0 %2941  ;;  %v2955_v58 = vmul.f32 %v2951_v11, %v9420_v49  ;;  %v2956_v6 = vmul.f32 %v2947_v53, %v9424_v50  ;;  %v8732_v53 = vld [vmem:[%s12016_s6 + $0xa0] sm:$0xff]  }
 0x625   : > { %v2948_v57 = vsel %vm680_vm1, %v2934_v51, %v2942_v56  ;;  %v2952_v12 = vsel %vm680_vm1, %v2942_v56, %v2934_v51  ;;  %v10367_v51 = vld [vmem:[%s12034_s18 + $0x104] ss:$8 sps:$4 sm:$0xff]   ;;  %v9020_v11 = vld [vmem:[%s12034_s18 + $0x100] ss:$8 sps:$4 sm:$0xff]   ;;  %v9021_v56 = vld [vmem:[%s12034_s18 + $0x114] ss:$8 sps:$4 sm:$0xff]  }
 0x626   : > { %v2957_v13 = vmul.f32 %v2952_v12, %v9420_v49  ;;  %v2958_v59 = vmul.f32 %v2948_v57, %v9424_v50  ;;  %v2936_v14 = vpop.permute.xlu1 %2935  ;;  %v8733_v57 = vld [vmem:[%s12016_s6 + $0xa8] sm:$0xff]   ;;  %v9022_v12 = vld [vmem:[%s12034_s18 + $0x110] ss:$8 sps:$4 sm:$0xff]  }
 0x628   : > { %v2963_v15 = vpack.c.bf16 %v2957_v13, %v2955_v58  ;;  %v2938_v16 = vpop.permute.xlu0 %2937  ;;  %v2964_v60 = vpack.c.bf16 %v2958_v59, %v2956_v6  ;;  %v9023_v58 = vld [vmem:[%s12034_s18 + $0x124] ss:$8 sps:$4 sm:$0xff]   ;;  %v9024_v6 = vld [vmem:[%s12034_s18 + $0x120] ss:$8 sps:$4 sm:$0xff]   ;;  %v9025_v13 = vld [vmem:[%s12034_s18 + $0x134] ss:$8 sps:$4 sm:$0xff]  }
 0x629   : > { %v8734_v59 = vld [vmem:[%s12016_s6 + $0xb0] sm:$0xff]  }
 0x62a   : > { %v2944_v7 = vpop.permute.xlu1 %2943  ;;  %3158 = vmatprep.subr.bf16.mxu1 %v2964_v60  ;;  %v9029_v60 = vld [vmem:[%s12034_s18 + $0x154] ss:$8 sps:$4 sm:$0xff]  }
 0x62b   : > { %v2949_v17 = vsel %vm680_vm1, %v2936_v14, %v2944_v7  ;;  %v2953_v62 = vsel %vm680_vm1, %v2944_v7, %v2936_v14  ;;  %3159 = vmatpush1.bf16.msra.mxu1 %v2963_v15  ;;  %v9026_v14 = vld [vmem:[%s12034_s18 + $0x130] ss:$8 sps:$4 sm:$0xff]   ;;  %v9027_v15 = vld [vmem:[%s12034_s18 + $0x144] ss:$8 sps:$4 sm:$0xff]  }
 0x62c   : > { %v2946_v2 = vpop.permute.xlu0 %2945  ;;  %v2959_v24 = vmul.f32 %v2953_v62, %v9420_v49  ;;  %v2960_v61 = vmul.f32 %v2949_v17, %v9424_v50  ;;  %v8735_v7 = vld [vmem:[%s12016_s6 + $0xb8] sm:$0xff]   ;;  %v9031_v62 = vld [vmem:[%s12034_s18 + $0x164] ss:$8 sps:$4 sm:$0xff]  }
 0x62d   : > { %v2950_v20 = vsel %vm680_vm1, %v2938_v16, %v2946_v2  ;;  %v2954_v26 = vsel %vm680_vm1, %v2946_v2, %v2938_v16  ;;  %v9028_v16 = vld [vmem:[%s12034_s18 + $0x140] ss:$8 sps:$4 sm:$0xff]   ;;  %v9030_v17 = vld [vmem:[%s12034_s18 + $0x150] ss:$8 sps:$4 sm:$0xff]  }
 0x62e   : > { %v2961_v27 = vmul.f32 %v2954_v26, %v9420_v49  ;;  %v2962_v22 = vmul.f32 %v2950_v20, %v9424_v50  ;;  %v2968_v63 = vpop.permute.xlu1 %2967  ;;  %v9032_v2 = vld [vmem:[%s12034_s18 + $0x160] ss:$8 sps:$4 sm:$0xff]   ;;  %v9033_v20 = vld [vmem:[%s12034_s18 + $0x174] ss:$8 sps:$4 sm:$0xff]   ;;  %v9034_v26 = vld [vmem:[%s12034_s18 + $0x170] ss:$8 sps:$4 sm:$0xff]  }
 0x630   : > { %v2965_v4 = vpack.c.bf16 %v2961_v27, %v2959_v24  ;;  %v2970_v28 = vpop.permute.xlu0 %2969  ;;  %v2966_v29 = vpack.c.bf16 %v2962_v22, %v2960_v61  ;;  %v9035_v24 = vld [vmem:[%s12034_s18 + $0x184] ss:$8 sps:$4 sm:$0xff]   ;;  %v9036_v61 = vld [vmem:[%s12034_s18 + $0x180] ss:$8 sps:$4 sm:$0xff]   ;;  %v9037_v27 = vld [vmem:[%s12034_s18 + $0x194] ss:$8 sps:$4 sm:$0xff]  }
 0x631   : > { %v9038_v22 = vld [vmem:[%s12034_s18 + $0x190] ss:$8 sps:$4 sm:$0xff]  }
 0x632   : > { %v2976_v8 = vpop.permute.xlu1 %2975  ;;  %3160 = vmatprep.subr.bf16.mxu1 %v2966_v29  ;;  %v9042_v29 = vld [vmem:[%s12034_s18 + $0x1b0] ss:$8 sps:$4 sm:$0xff]  }
 0x633   : > { %v2983_v34 = vsel %vm728_vm2, %v2968_v63, %v2976_v8  ;;  %v2987_v31 = vsel %vm728_vm2, %v2976_v8, %v2968_v63  ;;  %3161 = vmatpush1.bf16.msra.mxu1 %v2965_v4  ;;  %v9039_v63 = vld [vmem:[%s12034_s18 + $0x1a4] ss:$8 sps:$4 sm:$0xff]   ;;  %v9040_v4 = vld [vmem:[%s12034_s18 + $0x1a0] ss:$8 sps:$4 sm:$0xff]  }
 0x634   : > { %v2978_v42 = vpop.permute.xlu0 %2977  ;;  %v2991_v10 = vmul.f32 %v2983_v34, %v9459_v18  ;;  %v2992_v33 = vmul.f32 %v2987_v31, %v9463_v19  ;;  %v9043_v8 = vld [vmem:[%s12034_s18 + $0x1c4] ss:$8 sps:$4 sm:$0xff]   ;;  %v9045_v34 = vld [vmem:[%s12034_s18 + $0x1d4] ss:$8 sps:$4 sm:$0xff]   ;;  %v9046_v31 = vld [vmem:[%s12034_s18 + $0x1d0] ss:$8 sps:$4 sm:$0xff]  }
 0x635   : > { %v2984_v32 = vsel %vm728_vm2, %v2970_v28, %v2978_v42  ;;  %v2988_v41 = vsel %vm728_vm2, %v2978_v42, %v2970_v28  ;;  %v9041_v28 = vld [vmem:[%s12034_s18 + $0x1b4] ss:$8 sps:$4 sm:$0xff]   ;;  %v9047_v42 = vld [vmem:[%s12034_s18 + $0x1e4] ss:$8 sps:$4 sm:$0xff]  }
 0x636   : > { %v2993_v38 = vmul.f32 %v2984_v32, %v9459_v18  ;;  %v2994_v39 = vmul.f32 %v2988_v41, %v9463_v19  ;;  %v2972_v37 = vpop.permute.xlu1 %2971  ;;  %7502 = vmatmul.mubr.msk.bf16.vlgmr.msra.gmra.mrb[32].mxu1 %vm602_vm0, %v8728_v30  ;;  %v9044_v30 = vld [vmem:[%s12034_s18 + $0x1c0] ss:$8 sps:$4 sm:$0xff]   ;;  %v9049_v41 = vld [vmem:[%s12034_s18 + $0x1f4] ss:$8 sps:$4 sm:$0xff]  }
 0x637   : > { %3200 = vmatprep.mubr.bf16.mxu1 %v9186_v0  ;;  %v9048_v32 = vld [vmem:[%s12034_s18 + $0x1e0] ss:$8 sps:$4 sm:$0xff]  }
 0x638   : > { %v2999_v40 = vpack.c.bf16 %v2993_v38, %v2991_v10  ;;  %v2974_v23 = vpop.permute.xlu0 %2973  ;;  %v3000_v43 = vpack.c.bf16 %v2994_v39, %v2992_v33  ;;  %v9050_v10 = vld [vmem:[%s12034_s18 + $0x1f0] ss:$8 sps:$4 sm:$0xff]  }
 0x63a   : > { %v2980_v21 = vpop.permute.xlu1 %2979  ;;  %3272 = vmatprep.subr.bf16.mxu1 %v3000_v43 }
 0x63b   : > { %v2985_v47 = vsel %vm728_vm2, %v2972_v37, %v2980_v21  ;;  %v2989_v48 = vsel %vm728_vm2, %v2980_v21, %v2972_v37  ;;  %3273 = vmatpush1.bf16.msra.mxu1 %v2999_v40 }
 0x63c   : > { %v2982_v52 = vpop.permute.xlu0 %2981  ;;  %v2995_v1 = vmul.f32 %v2985_v47, %v9459_v18  ;;  %v2996_v44 = vmul.f32 %v2989_v48, %v9463_v19 }
 0x63d   : > { %v2986_v54 = vsel %vm728_vm2, %v2974_v23, %v2982_v52  ;;  %v2990_v55 = vsel %vm728_vm2, %v2982_v52, %v2974_v23 }
 0x63e   : > { %v2997_v9 = vmul.f32 %v2986_v54, %v9459_v18  ;;  %v2998_v3 = vmul.f32 %v2990_v55, %v9463_v19  ;;  %7503 = vmatmul.mubr.msk.bf16.gmra.mrb[36].mxu1 %vm602_vm0, %v8729_v45 }
 0x63f   : > { %3210 = vmatprep.mubr.bf16.mxu1 %v9186_v0 }
 0x640   : > { %v3001_v5 = vpack.c.bf16 %v2997_v9, %v2995_v1  ;;  %v3002_v35 = vpack.c.bf16 %v2998_v3, %v2996_v44 }
 0x642   : > { %3274 = vmatprep.subr.bf16.mxu1 %v3002_v35 }
 0x643   : > { %3275 = vmatpush1.bf16.msra.mxu1 %v3001_v5 }
 0x644   : > { %3556 = vmatprep.subr.bf16.mxu1 %v10367_v51 }
 0x646   : > { %7504 = vmatmul.mubr.msk.bf16.gmra.mrb[40].mxu1 %vm602_vm0, %v8730_v46 }
 0x647   : > { %3220 = vmatprep.mubr.bf16.mxu1 %v9186_v0 }
 0x64b   : > { %v3393_v45 = vpop.permute.xlu1 %3392 }
 0x64d   : > { %v3398_v54 = vpop.permute.xlu0 %3397 }
 0x64e   : > { %7505 = vmatmul.mubr.msk.bf16.gmra.mrb[44].mxu1 %vm602_vm0, %v8731_v36 }
 0x64f   : > { %3304 = vmatprep.mubr.bf16.mxu1 %v9186_v0 }
 0x656   : > { %7518 = vmatmul.mubr.msk.bf16.vlgmr.msra.gmra.mrb[32].mxu1 %vm602_vm0, %v8732_v53  ;;  %v3403_v53 = vpop.permute.xlu1 %3402 }
 0x657   : > { %3314 = vmatprep.mubr.bf16.mxu1 %v9186_v0  ;;  %3557 = vmatpush1.bf16.msra.mxu1 %v9020_v11 }
 0x658   : > { %3558 = vmatprep.subr.bf16.mxu1 %v9021_v56 }
 0x65b   : > { %3559 = vmatpush1.bf16.msra.mxu1 %v9022_v12  ;;  %v3408_v12 = vpop.permute.xlu0 %3407 }
 0x65c   : > { %3560 = vmatprep.subr.bf16.mxu1 %v9023_v58 }
 0x65e   : > { %7519 = vmatmul.mubr.msk.bf16.gmra.mrb[36].mxu1 %vm602_vm0, %v8733_v57 }
 0x65f   : > { %3324 = vmatprep.mubr.bf16.mxu1 %v9186_v0  ;;  %3561 = vmatpush1.bf16.msra.mxu1 %v9024_v6 }
 0x660   : > { %3562 = vmatprep.subr.bf16.mxu1 %v9025_v13 }
 0x663   : > { %3563 = vmatpush1.bf16.msra.mxu1 %v9026_v14 }
 0x664   : > { %3564 = vmatprep.subr.bf16.mxu1 %v9027_v15 }
 0x666   : > { %7520 = vmatmul.mubr.msk.bf16.gmra.mrb[40].mxu1 %vm602_vm0, %v8734_v59 }
 0x667   : > { %3334 = vmatprep.mubr.bf16.mxu1 %v9186_v0  ;;  %3565 = vmatpush1.bf16.msra.mxu1 %v9028_v16 }
 0x668   : > { %3566 = vmatprep.subr.bf16.mxu1 %v9029_v60 }
 0x66b   : > { %3567 = vmatpush1.bf16.msra.mxu1 %v9030_v17 }
 0x66c   : > { %3568 = vmatprep.subr.bf16.mxu1 %v9031_v62 }
 0x66e   : > { %7521 = vmatmul.mubr.msk.bf16.gmra.mrb[44].mxu1 %vm602_vm0, %v8735_v7 }
 0x66f   : > { %3569 = vmatpush1.bf16.msra.mxu1 %v9032_v2  ;;  %v2845_v2 = vpop.permute.xlu1 %2844 }
 0x670   : > { %3570 = vmatprep.subr.bf16.mxu1 %v9033_v20 }
 0x673   : > { %3571 = vmatpush1.bf16.msra.mxu1 %v9034_v26 }
 0x674   : > { %3572 = vmatprep.subr.bf16.mxu1 %v9035_v24 }
 0x677   : > { %3573 = vmatpush1.bf16.msra.mxu1 %v9036_v61 }
 0x678   : > { %3574 = vmatprep.subr.bf16.mxu1 %v9037_v27  ;;  %v2850_v27 = vpop.permute.xlu0 %2849 }
 0x67b   : > { %3575 = vmatpush1.bf16.msra.mxu1 %v9038_v22 }
 0x67c   : > { %3576 = vmatprep.subr.bf16.mxu1 %v9039_v63 }
 0x67f   : > { %3577 = vmatpush1.bf16.msra.mxu1 %v9040_v4  ;;  %v3373_v4 = vpop.permute.xlu1 %3372 }
 0x680   : > { %3578 = vmatprep.subr.bf16.mxu1 %v9041_v28 }
 0x683   : > { %3579 = vmatpush1.bf16.msra.mxu1 %v9042_v29 }
 0x684   : > { %3580 = vmatprep.subr.bf16.mxu1 %v9043_v8 }
 0x687   : > { %3581 = vmatpush1.bf16.msra.mxu1 %v9044_v30  ;;  %v3378_v30 = vpop.permute.xlu0 %3377 }
 0x688   : > { %3582 = vmatprep.subr.bf16.mxu1 %v9045_v34 }
 0x68b   : > { %3583 = vmatpush1.bf16.msra.mxu1 %v9046_v31 }
 0x68c   : > { %3584 = vmatprep.subr.bf16.mxu1 %v9047_v42 }
 0x68f   : > { %3585 = vmatpush1.bf16.msra.mxu1 %v9048_v32 }
 0x690   : > { %3586 = vmatprep.subr.bf16.mxu1 %v9049_v41 }
 0x693   : > { %3587 = vmatpush1.bf16.msra.mxu1 %v9050_v10 }
 0x729   : > { %v3306_v33 = vpop.f32.mrb[32].mxu1 }
 0x72a   : > { %v3308_v38 = vpop.f32.mrb[33].mxu1  ;;  %v8241_v29 = vadd.f32 %v3306_v33, %v2845_v2 }
 0x72b   : > { %v10489_v39 = vpop.f32.mrb[34].mxu1  ;;  %v8243_v34 = vadd.f32 %v3308_v38, %v2845_v2 }
 0x72c   : > { %v10491_v37 = vpop.f32.mrb[35].mxu1  ;;  %v8245_v32 = vadd.f32 %v10489_v39, %v2850_v27 }
 0x731   : > { %v10493_v40 = vpop.f32.mrb[36].mxu1 }
 0x732   : > { %v10495_v23 = vpop.f32.mrb[37].mxu1 }
 0x733   : > { %v10497_v43 = vpop.f32.mrb[38].mxu1 }
 0x734   : > { %v10499_v21 = vpop.f32.mrb[39].mxu1 }
 0x739   : > { %v3326_v47 = vpop.f32.mrb[40].mxu1 }
 0x73a   : > { %v3418_v48 = vadd.f32 %v3393_v45, %v3326_v47  ;;  %v3328_v52 = vpop.f32.mrb[41].mxu1 }
 0x73b   : > { %v3419_v55 = vadd.f32 %v3393_v45, %v3328_v52  ;;  %v3330_v1 = vpop.f32.mrb[42].mxu1  ;;  %v8247_v45 = vadd.f32 %v10491_v37, %v2850_v27 }
 0x73c   : > { %v7530_v44 = vmul.f32 -1.442695, %v3418_v48  ;;  %v3420_v9 = vadd.f32 %v3398_v54, %v3330_v1  ;;  %v3332_v3 = vpop.f32.mrb[43].mxu1  ;;  %v8242_v48 = vadd.f32 %v8241_v29, %v3373_v4  ;;  %v8244_v1 = vadd.f32 %v8243_v34, %v3373_v4 }
 0x73d   : > { %v7531_v5 = vmul.f32 -1.442695, %v3419_v55  ;;  %v3421_v35 = vadd.f32 %v3398_v54, %v3332_v3  ;;  %v2855_v55 = vpop.permute.xlu1 %2854  ;;  %v2860_v3 = vpop.permute.xlu0 %2859  ;;  %v8248_v39 = vadd.f32 %v8247_v45, %v3378_v30 }
 0x73e   : > { %8859 = vpow2.f32 %v7530_v44  ;;  %v7532_v46 = vmul.f32 -1.442695, %v3420_v9  ;;  %v8246_v44 = vadd.f32 %v8245_v32, %v3378_v30  ;;  %v8249_v37 = vadd.f32 %v10493_v40, %v2855_v55 }
 0x73f   : > { %8861 = vpow2.f32 %v7531_v5  ;;  %v7533_v36 = vmul.f32 -1.442695, %v3421_v35 }
 0x740   : > { %8863 = vpow2.f32 %v7532_v46 }
 0x741   : > { %8865 = vpow2.f32 %v7533_v36  ;;  %v3336_v11 = vpop.f32.mrb[44].mxu1  ;;  %v8251_v36 = vadd.f32 %v10495_v23, %v2855_v55 }
 0x742   : > { %v3422_v56 = vadd.f32 %v3403_v53, %v3336_v11  ;;  %v3338_v57 = vpop.f32.mrb[45].mxu1  ;;  %v8253_v11 = vadd.f32 %v10497_v43, %v2860_v3 }
 0x743   : > { %v3423_v58 = vadd.f32 %v3403_v53, %v3338_v57  ;;  %v3340_v6 = vpop.f32.mrb[46].mxu1  ;;  %v3383_v57 = vpop.permute.xlu1 %3382 }
 0x744   : > { %v7534_v13 = vmul.f32 -1.442695, %v3422_v56  ;;  %v3424_v59 = vadd.f32 %v3408_v12, %v3340_v6  ;;  %v3342_v14 = vpop.f32.mrb[47].mxu1  ;;  %v8250_v6 = vadd.f32 %v8249_v37, %v3383_v57  ;;  %v9056_v37 = vld [vmem:[%s12034_s18 + $0x220] ss:$8 sps:$4 sm:$0xff]  }
 0x745   : > { %v7535_v15 = vmul.f32 -1.442695, %v3423_v58  ;;  %v3425_v16 = vadd.f32 %v3408_v12, %v3342_v14  ;;  %v8255_v12 = vadd.f32 %v10499_v21, %v2860_v3  ;;  %v8252_v14 = vadd.f32 %v8251_v36, %v3383_v57  ;;  %v9053_v3 = vld [vmem:[%s12034_s18 + $0x214] ss:$8 sps:$4 sm:$0xff]   ;;  %v9058_v36 = vld [vmem:[%s12034_s18 + $0x230] ss:$8 sps:$4 sm:$0xff]  }
 0x746   : > { %8867 = vpow2.f32 %v7534_v13  ;;  %v7536_v60 = vmul.f32 -1.442695, %v3424_v59  ;;  %v3388_v59 = vpop.permute.xlu0 %3387  ;;  %v9061_v57 = vld [vmem:[%s12034_s18 + $0x254] ss:$8 sps:$4 sm:$0xff]  }
 0x747   : > { %8869 = vpow2.f32 %v7535_v15  ;;  %v7537_v7 = vmul.f32 -1.442695, %v3425_v16  ;;  %v8254_v23 = vadd.f32 %v8253_v11, %v3388_v59  ;;  %v8256_v16 = vadd.f32 %v8255_v12, %v3388_v59  ;;  %v9060_v11 = vld [vmem:[%s12034_s18 + $0x240] ss:$8 sps:$4 sm:$0xff]   ;;  %v9062_v12 = vld [vmem:[%s12034_s18 + $0x250] ss:$8 sps:$4 sm:$0xff]  }
 0x748   : > { %v8860_v17 = vpop.eup %8859  ;;  %8871 = vpow2.f32 %v7536_v60  ;;  %v9066_v59 = vld [vmem:[%s12034_s18 + $0x270] ss:$8 sps:$4 sm:$0xff]  }
 0x749   : > { %v8862_v62 = vpop.eup %8861  ;;  %v3458_v20 = vadd.f32 1.0, %v8860_v17  ;;  %8873 = vpow2.f32 %v7537_v7 }
 0x74a   : > { %v8864_v26 = vpop.eup %8863  ;;  %v3459_v24 = vadd.f32 1.0, %v8862_v62 }
 0x74b   : > { %v8866_v61 = vpop.eup %8865  ;;  %8875 = vrcp.f32 %v3458_v20  ;;  %v3460_v22 = vadd.f32 1.0, %v8864_v26 }
 0x74c   : > { %8877 = vrcp.f32 %v3459_v24  ;;  %v3461_v63 = vadd.f32 1.0, %v8866_v61 }
 0x74d   : > { %8879 = vrcp.f32 %v3460_v22 }
 0x74e   : > { %8881 = vrcp.f32 %v3461_v63 }
 0x750   : > { %v8868_v28 = vpop.eup %8867 }
 0x751   : > { %v8870_v8 = vpop.eup %8869  ;;  %v3462_v31 = vadd.f32 1.0, %v8868_v28 }
 0x752   : > { %v8872_v42 = vpop.eup %8871  ;;  %v3463_v41 = vadd.f32 1.0, %v8870_v8 }
 0x753   : > { %v8874_v10 = vpop.eup %8873  ;;  %8883 = vrcp.f32 %v3462_v31  ;;  %v3464_v47 = vadd.f32 1.0, %v8872_v42 }
 0x754   : > { %8885 = vrcp.f32 %v3463_v41  ;;  %v3465_v52 = vadd.f32 1.0, %v8874_v10 }
 0x755   : > { %v8876_v54 = vpop.eup %8875  ;;  %8887 = vrcp.f32 %v3464_v47 }
 0x756   : > { %v8878_v33 = vpop.eup %8877  ;;  %8889 = vrcp.f32 %v3465_v52  ;;  %v3482_v38 = vmul.f32 %v8876_v54, %v8242_v48 }
 0x757   : > { %v8880_v9 = vpop.eup %8879  ;;  %v3483_v5 = vmul.f32 %v8878_v33, %v8244_v1  ;;  %v8736_v1 = vld [vmem:[%s12018_s8 + $0x40] sm:$0xff]   ;;  %v8737_v33 = vld [vmem:[%s12018_s8 + $0x48] sm:$0xff]  }
 0x758   : > { %v8882_v35 = vpop.eup %8881  ;;  %v3484_v46 = vmul.f32 %v8880_v9, %v8246_v44  ;;  %v9051_v44 = vld [vmem:[%s12034_s18 + $0x204] ss:$8 sps:$4 sm:$0xff]   ;;  %v9052_v9 = vld [vmem:[%s12034_s18 + $0x200] ss:$8 sps:$4 sm:$0xff]  }
 0x759   : > { %v3485_v53 = vmul.f32 %v8882_v35, %v8248_v39  ;;  %v8739_v39 = vld [vmem:[%s12018_s8 + $0x38] sm:$0xff]   ;;  %v9055_v35 = vld [vmem:[%s12034_s18 + $0x224] ss:$8 sps:$4 sm:$0xff]  }
 0x75a   : > { %v10506_v56 = vpack.c.bf16 %v3484_v46, %v3482_v38  ;;  %v8738_v38 = vld [vmem:[%s12018_s8 + $0x30] sm:$0xff]  }
 0x75b   : > { %v10509_v58 = vpack.c.bf16 %v3485_v53, %v3483_v5  ;;  %v9054_v5 = vld [vmem:[%s12034_s18 + $0x210] ss:$8 sps:$4 sm:$0xff]   ;;  %v9057_v46 = vld [vmem:[%s12034_s18 + $0x234] ss:$8 sps:$4 sm:$0xff]   ;;  %v9059_v53 = vld [vmem:[%s12034_s18 + $0x244] ss:$8 sps:$4 sm:$0xff]  }
 0x75d   : > { %v8884_v13 = vpop.eup %8883  ;;  %3526 = vmatprep.mubr.bf16.mxu0 %v10509_v58  ;;  %3588 = vmatprep.mubr.bf16.mxu1 %v10509_v58 }
 0x75e   : > { %v8886_v40 = vpop.eup %8885  ;;  %3527 = vmatmul.mubr.bf16.vlgmr.msra.gmra.mrb[40].mxu0 %v10506_v56  ;;  %3589 = vmatmul.mubr.bf16.vlgmr.msra.gmra.mrb[48].mxu1 %v10506_v56  ;;  %v3486_v43 = vmul.f32 %v8884_v13, %v8250_v6  ;;  %v9064_v6 = vld [vmem:[%s12034_s18 + $0x260] ss:$8 sps:$4 sm:$0xff]   ;;  %v9065_v13 = vld [vmem:[%s12034_s18 + $0x274] ss:$8 sps:$4 sm:$0xff]  }
 0x75f   : > { %v8888_v15 = vpop.eup %8887  ;;  %v3487_v21 = vmul.f32 %v8886_v40, %v8252_v14  ;;  %v9067_v14 = vld [vmem:[%s12034_s18 + $0x284] ss:$8 sps:$4 sm:$0xff]   ;;  %v9068_v40 = vld [vmem:[%s12034_s18 + $0x280] ss:$8 sps:$4 sm:$0xff]  }
 0x760   : > { %v8890_v60 = vpop.eup %8889  ;;  %v3488_v7 = vmul.f32 %v8888_v15, %v8254_v23  ;;  %v9069_v23 = vld [vmem:[%s12034_s18 + $0x294] ss:$8 sps:$4 sm:$0xff]   ;;  %v9071_v15 = vld [vmem:[%s12034_s18 + $0x2a4] ss:$8 sps:$4 sm:$0xff]  }
 0x761   : > { %v3489_v17 = vmul.f32 %v8890_v60, %v8256_v16  ;;  %v9072_v16 = vld [vmem:[%s12034_s18 + $0x2a0] ss:$8 sps:$4 sm:$0xff]   ;;  %v9074_v60 = vld [vmem:[%s12034_s18 + $0x2b0] ss:$8 sps:$4 sm:$0xff]  }
 0x762   : > { %v10515_v62 = vpack.c.bf16 %v3488_v7, %v3486_v43  ;;  %v9070_v43 = vld [vmem:[%s12034_s18 + $0x290] ss:$8 sps:$4 sm:$0xff]   ;;  %v9075_v7 = vld [vmem:[%s12034_s18 + $0x2c4] ss:$8 sps:$4 sm:$0xff]  }
 0x763   : > { %v10517_v2 = vpack.c.bf16 %v3489_v17, %v3487_v21  ;;  %v9073_v21 = vld [vmem:[%s12034_s18 + $0x2b4] ss:$8 sps:$4 sm:$0xff]   ;;  %v9076_v17 = vld [vmem:[%s12034_s18 + $0x2c0] ss:$8 sps:$4 sm:$0xff]  }
 0x765   : > { %3536 = vmatprep.mubr.bf16.mxu0 %v10517_v2  ;;  %3598 = vmatprep.mubr.bf16.mxu1 %v10517_v2 }
 0x766   : > { %3537 = vmatmul.mubr.bf16.gmra.mrb[44].mxu0 %v10515_v62  ;;  %3599 = vmatmul.mubr.bf16.gmra.mrb[52].mxu1 %v10515_v62 }
 0x767   : > { %3666 = vmatprep.mubr.bf16.mxu0 %v9186_v0  ;;  %4094 = vmatprep.mubr.bf16.mxu1 %v9186_v0 }
 0x831   : > { %v3528_v20 = vpop.f32.mrb[40].mxu0  ;;  %v3590_v26 = vpop.f32.mrb[48].mxu1 }
 0x832   : > { %v3530_v24 = vpop.f32.mrb[41].mxu0  ;;  %v3592_v61 = vpop.f32.mrb[49].mxu1 }
 0x833   : > { %v3532_v27 = vpop.f32.mrb[42].mxu0  ;;  %v3594_v22 = vpop.f32.mrb[50].mxu1 }
 0x834   : > { %v3547_v63 = vpack.c.bf16 %v3532_v27, %v3528_v20  ;;  %v3609_v4 = vpack.c.bf16 %v3594_v22, %v3590_v26  ;;  %v3534_v28 = vpop.f32.mrb[43].mxu0  ;;  %v3596_v29 = vpop.f32.mrb[51].mxu1  ;;  %v9077_v20 = vld [vmem:[%s12034_s18 + $0x2d4] ss:$8 sps:$4 sm:$0xff]   ;;  %v9078_v26 = vld [vmem:[%s12034_s18 + $0x2d0] ss:$8 sps:$4 sm:$0xff]  }
 0x835   : > { %v3548_v8 = vpack.c.bf16 %v3534_v28, %v3530_v24  ;;  %v3610_v30 = vpack.c.bf16 %v3596_v29, %v3592_v61  ;;  %v9079_v24 = vld [vmem:[%s12034_s18 + $0x2e4] ss:$8 sps:$4 sm:$0xff]   ;;  %v9080_v61 = vld [vmem:[%s12034_s18 + $0x2e0] ss:$8 sps:$4 sm:$0xff]   ;;  %v9081_v27 = vld [vmem:[%s12034_s18 + $0x2f4] ss:$8 sps:$4 sm:$0xff]  }
 0x836   : > { %v9082_v22 = vld [vmem:[%s12034_s18 + $0x2f0] ss:$8 sps:$4 sm:$0xff]  }
 0x837   : > { %3634 = vmatprep.subr.bf16.mxu0 %v3610_v30 }
 0x838   : > { %3635 = vmatpush1.bf16.msra.mxu0 %v3609_v4 }
 0x839   : > { %v3538_v34 = vpop.f32.mrb[44].mxu0  ;;  %v3600_v31 = vpop.f32.mrb[52].mxu1 }
 0x83a   : > { %v3540_v42 = vpop.f32.mrb[45].mxu0  ;;  %v3602_v32 = vpop.f32.mrb[53].mxu1 }
 0x83b   : > { %v3542_v41 = vpop.f32.mrb[46].mxu0  ;;  %v3604_v10 = vpop.f32.mrb[54].mxu1 }
 0x83c   : > { %v3549_v45 = vpack.c.bf16 %v3542_v41, %v3538_v34  ;;  %v3611_v47 = vpack.c.bf16 %v3604_v10, %v3600_v31  ;;  %v3544_v48 = vpop.f32.mrb[47].mxu0  ;;  %v3606_v52 = vpop.f32.mrb[55].mxu1 }
 0x83d   : > { %v3550_v54 = vpack.c.bf16 %v3544_v48, %v3540_v42  ;;  %v3612_v55 = vpack.c.bf16 %v3606_v52, %v3602_v32  ;;  %v3903_v10 = vpop.permute.xlu1 %3902  ;;  %v3908_v52 = vpop.permute.xlu0 %3907 }
 0x83f   : > { %3636 = vmatprep.subr.bf16.mxu0 %v3612_v55 }
 0x840   : > { %3637 = vmatpush1.bf16.msra.mxu0 %v3611_v47 }
 0x841   : > { %3703 = vmatprep.subr.bf16.mxu0 %v3548_v8 }
 0x843   : > { %7548 = vmatmul.mubr.msk.bf16.vlgmr.msra.gmra.mrb[48].mxu0 %vm602_vm0, %v8736_v1 }
 0x844   : > { %3704 = vmatpush1.bf16.msra.mxu0 %v3547_v63  ;;  %3676 = vmatprep.mubr.bf16.mxu0 %v9186_v0 }
 0x845   : > { %3705 = vmatprep.subr.bf16.mxu0 %v3550_v54 }
 0x848   : > { %3706 = vmatpush1.bf16.msra.mxu0 %v3549_v45 }
 0x849   : > { %3756 = vmatprep.subr.bf16.mxu0 %v9051_v44 }
 0x84b   : > { %7549 = vmatmul.mubr.msk.bf16.gmra.mrb[52].mxu0 %vm602_vm0, %v8737_v33 }
 0x84c   : > { %3735 = vmatprep.mubr.bf16.mxu0 %v9186_v0 }
 0x853   : > { %7552 = vmatmul.mubr.msk.bf16.vlgmr.msra.gmra.mrb[48].mxu0 %vm602_vm0, %v8738_v38 }
 0x854   : > { %3757 = vmatpush1.bf16.msra.mxu0 %v9052_v9  ;;  %3745 = vmatprep.mubr.bf16.mxu0 %v9186_v0 }
 0x855   : > { %3758 = vmatprep.subr.bf16.mxu0 %v9053_v3 }
 0x858   : > { %3759 = vmatpush1.bf16.msra.mxu0 %v9054_v5  ;;  %v3913_v5 = vpop.permute.xlu1 %3912 }
 0x859   : > { %3760 = vmatprep.subr.bf16.mxu0 %v9055_v35 }
 0x85b   : > { %7553 = vmatmul.mubr.msk.bf16.gmra.mrb[52].mxu0 %vm602_vm0, %v8739_v39 }
 0x85c   : > { %3761 = vmatpush1.bf16.msra.mxu0 %v9056_v37  ;;  %3788 = vmatprep.mubr.bf16.mxu0 %v10509_v58  ;;  %v9063_v58 = vld [vmem:[%s12034_s18 + $0x264] ss:$8 sps:$4 sm:$0xff]  }
 0x85d   : > { %3762 = vmatprep.subr.bf16.mxu0 %v9057_v46 }
 0x860   : > { %3763 = vmatpush1.bf16.msra.mxu0 %v9058_v36 }
 0x861   : > { %3764 = vmatprep.subr.bf16.mxu0 %v9059_v53 }
 0x864   : > { %3765 = vmatpush1.bf16.msra.mxu0 %v9060_v11  ;;  %v3918_v11 = vpop.permute.xlu0 %3917 }
 0x865   : > { %3766 = vmatprep.subr.bf16.mxu0 %v9061_v57 }
 0x868   : > { %3767 = vmatpush1.bf16.msra.mxu0 %v9062_v12 }
 0x869   : > { %3768 = vmatprep.subr.bf16.mxu0 %v9063_v58 }
 0x86c   : > { %3769 = vmatpush1.bf16.msra.mxu0 %v9064_v6 }
 0x86d   : > { %3770 = vmatprep.subr.bf16.mxu0 %v9065_v13 }
 0x870   : > { %3771 = vmatpush1.bf16.msra.mxu0 %v9066_v59 }
 0x871   : > { %3772 = vmatprep.subr.bf16.mxu0 %v9067_v14 }
 0x874   : > { %3773 = vmatpush1.bf16.msra.mxu0 %v9068_v40 }
 0x875   : > { %3774 = vmatprep.subr.bf16.mxu0 %v9069_v23 }
 0x878   : > { %3775 = vmatpush1.bf16.msra.mxu0 %v9070_v43 }
 0x879   : > { %3776 = vmatprep.subr.bf16.mxu0 %v9071_v15 }
 0x87c   : > { %3777 = vmatpush1.bf16.msra.mxu0 %v9072_v16  ;;  %v8742_v16 = vld [vmem:[%s12020_s10 + $0x80] sm:$0xff]  }
 0x87d   : > { %3778 = vmatprep.subr.bf16.mxu0 %v9073_v21  ;;  %v8743_v21 = vld [vmem:[%s12020_s10 + $0x88] sm:$0xff]  }
 0x880   : > { %3779 = vmatpush1.bf16.msra.mxu0 %v9074_v60  ;;  %v7618_v60 = vld [vmem:[%s12021_s11 + $0x60] sm:$0xff] }
 0x881   : > { %3780 = vmatprep.subr.bf16.mxu0 %v9075_v7  ;;  %v8744_v7 = vld [vmem:[%s12020_s10 + $0x90] sm:$0xff]  }
 0x884   : > { %3781 = vmatpush1.bf16.msra.mxu0 %v9076_v17  ;;  %v7619_v17 = vld [vmem:[%s12021_s11 + $0x68] sm:$0xff] }
 0x885   : > { %3782 = vmatprep.subr.bf16.mxu0 %v9077_v20  ;;  %v7620_v20 = vld [vmem:[%s12021_s11 + $0x70] sm:$0xff] }
 0x888   : > { %3783 = vmatpush1.bf16.msra.mxu0 %v9078_v26  ;;  %v7621_v26 = vld [vmem:[%s12021_s11 + $0x78] sm:$0xff] }
 0x889   : > { %3784 = vmatprep.subr.bf16.mxu0 %v9079_v24  ;;  %v7614_v24 = vld [vmem:[%s12021_s11 + $0x40] sm:$0xff] }
 0x88c   : > { %3785 = vmatpush1.bf16.msra.mxu0 %v9080_v61  ;;  %v8745_v61 = vld [vmem:[%s12020_s10 + $0x98] sm:$0xff]  }
 0x88d   : > { %3786 = vmatprep.subr.bf16.mxu0 %v9081_v27  ;;  %v7615_v27 = vld [vmem:[%s12021_s11 + $0x48] sm:$0xff] }
 0x890   : > { %3787 = vmatpush1.bf16.msra.mxu0 %v9082_v22  ;;  %v7616_v22 = vld [vmem:[%s12021_s11 + $0x50] sm:$0xff] }
 0x893   : > { %3789 = vmatmul.mubr.bf16.vlgmr.msra.gmra.mrb[56].mxu0 %v10506_v56 }
 0x894   : > { %3798 = vmatprep.mubr.bf16.mxu0 %v10517_v2  ;;  %v8741_v2 = vld [vmem:[%s12018_s8 + $0x58] sm:$0xff]  }
 0x89b   : > { %3799 = vmatmul.mubr.bf16.gmra.mrb[60].mxu0 %v10515_v62  ;;  %v8740_v62 = vld [vmem:[%s12018_s8 + $0x50] sm:$0xff]  }
 0x89c   : > { %3866 = vmatprep.mubr.bf16.mxu0 %v9186_v0 }
 0x966   : > { %v3790_v63 = vpop.f32.mrb[56].mxu0 }
 0x967   : > { %v3792_v4 = vpop.f32.mrb[57].mxu0 }
 0x968   : > { %v3794_v28 = vpop.f32.mrb[58].mxu0 }
 0x969   : > { %v3809_v29 = vpack.c.bf16 %v3794_v28, %v3790_v63  ;;  %v3796_v8 = vpop.f32.mrb[59].mxu0  ;;  %v7617_v63 = vld [vmem:[%s12021_s11 + $0x58] sm:$0xff] }
 0x96a   : > { %v3810_v30 = vpack.c.bf16 %v3796_v8, %v3792_v4 }
 0x96c   : > { %3834 = vmatprep.subr.bf16.mxu0 %v3810_v30 }
 0x96d   : > { %3835 = vmatpush1.bf16.msra.mxu0 %v3809_v29 }
 0x96e   : > { %v3800_v34 = vpop.f32.mrb[60].mxu0 }
 0x96f   : > { %v3802_v31 = vpop.f32.mrb[61].mxu0 }
 0x970   : > { %v3804_v42 = vpop.f32.mrb[62].mxu0 }
 0x971   : > { %v3811_v32 = vpack.c.bf16 %v3804_v42, %v3800_v34  ;;  %v3806_v41 = vpop.f32.mrb[63].mxu0 }
 0x972   : > { %v3812_v56 = vpack.c.bf16 %v3806_v41, %v3802_v31 }
 0x974   : > { %3836 = vmatprep.subr.bf16.mxu0 %v3812_v56 }
 0x975   : > { %3837 = vmatpush1.bf16.msra.mxu0 %v3811_v32 }
 0x978   : > { %7560 = vmatmul.mubr.msk.bf16.vlgmr.msra.gmra.mrb[48].mxu0 %vm602_vm0, %v8740_v62 }
 0x979   : > { %3876 = vmatprep.mubr.bf16.mxu0 %v9186_v0 }
 0x980   : > { %7561 = vmatmul.mubr.msk.bf16.gmra.mrb[52].mxu0 %vm602_vm0, %v8741_v2 }
 0x981   : > { %4581 = vmatprep.mubr.bf16.mxu0 %v9186_v0 }
 0xa4b   : > { %v3868_v45 = vpop.f32.mrb[48].mxu0 }
 0xa4c   : > { %v3920_v47 = vadd.f32 %v3903_v10, %v3868_v45  ;;  %v3870_v48 = vpop.f32.mrb[49].mxu0 }
 0xa4d   : > { %v3921_v54 = vadd.f32 %v3903_v10, %v3870_v48  ;;  %v3872_v55 = vpop.f32.mrb[50].mxu0 }
 0xa4e   : > { %v10655_v1 = vmax.f32 %v3920_v47, 0.0  ;;  %v3922_v33 = vadd.f32 %v3908_v52, %v3872_v55  ;;  %v3874_v44 = vpop.f32.mrb[51].mxu0 }
 0xa4f   : > { %v3923_v38 = vadd.f32 %v3908_v52, %v3874_v44  ;;  %v10661_v3 = vmax.f32 %v3921_v54, 0.0 }
 0xa50   : > { %v10657_v9 = vmax.f32 %v3922_v33, 0.0  ;;  %3940 = vrot.lane.b32.xlu1 %v10655_v1, %s9187_s30 }
 0xa51   : > { %v10663_v39 = vmax.f32 %v3923_v38, 0.0 }
 0xa52   : > { %3942 = vrot.lane.b32.xlu0 %v10657_v9, %s9187_s30  ;;  %v3936_v53 = vpack.c.bf16 %v10657_v9, %v10655_v1 }
 0xa53   : > { %v3878_v35 = vpop.f32.mrb[52].mxu0  ;;  %v3937_v37 = vpack.c.bf16 %v10663_v39, %v10661_v3 }
 0xa54   : > { %v3924_v46 = vadd.f32 %v3913_v5, %v3878_v35  ;;  %3948 = vrot.lane.b32.xlu1 %v10661_v3, %s9187_s30  ;;  %v3880_v36 = vpop.f32.mrb[53].mxu0 }
 0xa55   : > { %v3925_v57 = vadd.f32 %v3913_v5, %v3880_v36  ;;  %v3882_v12 = vpop.f32.mrb[54].mxu0  ;;  %4062 = vmatprep.subr.bf16.mxu1 %v3937_v37 }
 0xa56   : > { %v10673_v58 = vmax.f32 %v3924_v46, 0.0  ;;  %v3926_v6 = vadd.f32 %v3918_v11, %v3882_v12  ;;  %3950 = vrot.lane.b32.xlu0 %v10663_v39, %s9187_s30  ;;  %v3884_v13 = vpop.f32.mrb[55].mxu0  ;;  %4063 = vmatpush1.bf16.msra.mxu1 %v3936_v53  ;;  %v8746_v12 = vld [vmem:[%s12020_s10 + $0x60] sm:$0xff]  }
 0xa57   : > { %v3927_v59 = vadd.f32 %v3918_v11, %v3884_v13  ;;  %v10681_v40 = vmax.f32 %v3925_v57, 0.0 }
 0xa58   : > { %v10677_v14 = vmax.f32 %v3926_v6, 0.0  ;;  %3944 = vrot.lane.b32.xlu1 %v10673_v58, %s9187_s30 }
 0xa59   : > { %v10683_v23 = vmax.f32 %v3927_v59, 0.0 }
 0xa5a   : > { %3946 = vrot.lane.b32.xlu0 %v10677_v14, %s9187_s30  ;;  %v3938_v15 = vpack.c.bf16 %v10677_v14, %v10673_v58 }
 0xa5b   : > { %v3939_v43 = vpack.c.bf16 %v10683_v23, %v10681_v40 }
 0xa5c   : > { %3952 = vrot.lane.b32.xlu1 %v10681_v40, %s9187_s30 }
 0xa5d   : > { %4064 = vmatprep.subr.bf16.mxu1 %v3939_v43 }
 0xa5e   : > { %3954 = vrot.lane.b32.xlu0 %v10683_v23, %s9187_s30  ;;  %4065 = vmatpush1.bf16.msra.mxu1 %v3938_v15 }
 0xa60   : > { %3976 = vrot.lane.b32.xlu1 %v10655_v1, %s12035_s27 }
 0xa61   : > { %7586 = vmatmul.mubr.msk.bf16.vlgmr.msra.gmra.mrb[56].mxu1 %vm602_vm0, %v8742_v16 }
 0xa62   : > { %3978 = vrot.lane.b32.xlu0 %v10657_v9, %s12035_s27  ;;  %4104 = vmatprep.mubr.bf16.mxu1 %v9186_v0 }
 0xa64   : > { %3984 = vrot.lane.b32.xlu1 %v10661_v3, %s12035_s27 }
 0xa66   : > { %3986 = vrot.lane.b32.xlu0 %v10663_v39, %s12035_s27 }
 0xa68   : > { %3980 = vrot.lane.b32.xlu1 %v10673_v58, %s12035_s27 }
 0xa69   : > { %7587 = vmatmul.mubr.msk.bf16.gmra.mrb[60].mxu1 %vm602_vm0, %v8743_v21 }
 0xa6a   : > { %3982 = vrot.lane.b32.xlu0 %v10677_v14, %s12035_s27  ;;  %4114 = vmatprep.mubr.bf16.mxu1 %v9186_v0 }
 0xa6c   : > { %3988 = vrot.lane.b32.xlu1 %v10681_v40, %s12035_s27 }
 0xa6e   : > { %3990 = vrot.lane.b32.xlu0 %v10683_v23, %s12035_s27 }
 0xa70   : > { %4401 = vperm.xlu1 %8545, %v7618_v60  }
 0xa71   : > { %7588 = vmatmul.mubr.msk.bf16.gmra.mrb[64].mxu1 %vm602_vm0, %v8744_v7 }
 0xa72   : > { %4406 = vperm.xlu0 %8544, %v7619_v17   ;;  %4124 = vmatprep.mubr.bf16.mxu1 %v9186_v0 }
 0xa74   : > { %4411 = vperm.xlu1 %8545, %v7620_v20  }
 0xa76   : > { %4416 = vperm.xlu0 %8544, %v7621_v26  }
 0xa78   : > { %4381 = vperm.xlu1 %8545, %v7614_v24  }
 0xa79   : > { %7589 = vmatmul.mubr.msk.bf16.gmra.mrb[68].mxu1 %vm602_vm0, %v8745_v61 }
 0xa7a   : > { %4386 = vperm.xlu0 %8544, %v7615_v27   ;;  %4199 = vmatprep.mubr.bf16.mxu1 %v9186_v0  ;;  %v8747_v27 = vld [vmem:[%s12020_s10 + $0x68] sm:$0xff]  }
 0xa7c   : > { %4391 = vperm.xlu1 %8545, %v7616_v22  }
 0xa7e   : > { %4396 = vperm.xlu0 %8544, %v7617_v63  }
 0xac2   : > { %v3941_v4 = vpop.permute.xlu1 %3940 }
 0xac4   : > { %v3943_v28 = vpop.permute.xlu0 %3942 }
 0xac6   : > { %v3949_v29 = vpop.permute.xlu1 %3948 }
 0xac7   : > { %v3956_v8 = vsel %vm680_vm1, %v3941_v4, %v3949_v29  ;;  %v3960_v30 = vsel %vm680_vm1, %v3949_v29, %v3941_v4 }
 0xac8   : > { %v3951_v34 = vpop.permute.xlu0 %3950  ;;  %v3964_v32 = vmul.f32 %v3960_v30, %v9420_v49  ;;  %v3965_v41 = vmul.f32 %v3956_v8, %v9424_v50 }
 0xac9   : > { %v3957_v31 = vsel %vm680_vm1, %v3943_v28, %v3951_v34  ;;  %v3961_v42 = vsel %vm680_vm1, %v3951_v34, %v3943_v28 }
 0xaca   : > { %v3966_v56 = vmul.f32 %v3961_v42, %v9420_v49  ;;  %v3967_v62 = vmul.f32 %v3957_v31, %v9424_v50  ;;  %v3945_v2 = vpop.permute.xlu1 %3944 }
 0xacc   : > { %v3972_v10 = vpack.c.bf16 %v3966_v56, %v3964_v32  ;;  %v3947_v45 = vpop.permute.xlu0 %3946  ;;  %v3973_v47 = vpack.c.bf16 %v3967_v62, %v3965_v41  ;;  %v8748_v41 = vld [vmem:[%s12020_s10 + $0x70] sm:$0xff]   ;;  %v9083_v56 = vld [vmem:[%s12034_s18 + $0x4] ss:$8 sps:$4 sm:$0xff]   ;;  %v8749_v62 = vld [vmem:[%s12020_s10 + $0x78] sm:$0xff]  }
 0xace   : > { %v3953_v48 = vpop.permute.xlu1 %3952  ;;  %4167 = vmatprep.subr.bf16.mxu1 %v3973_v47  ;;  %v8751_v47 = vld [vmem:[%s12020_s10 + $0xa8] sm:$0xff]  }
 0xacf   : > { %v3958_v52 = vsel %vm680_vm1, %v3945_v2, %v3953_v48  ;;  %v3962_v54 = vsel %vm680_vm1, %v3953_v48, %v3945_v2  ;;  %4168 = vmatpush1.bf16.msra.mxu1 %v3972_v10  ;;  %v8750_v2 = vld [vmem:[%s12020_s10 + $0xa0] sm:$0xff]   ;;  %v9086_v48 = vld [vmem:[%s12034_s18 + $0x10] ss:$8 sps:$4 sm:$0xff]  }
 0xad0   : > { %v3955_v55 = vpop.permute.xlu0 %3954  ;;  %v3968_v38 = vmul.f32 %v3962_v54, %v9420_v49  ;;  %v3969_v5 = vmul.f32 %v3958_v52, %v9424_v50  ;;  %v9084_v10 = vld [vmem:[%s12034_s18] ss:$8 sps:$4 sm:$0xff]   ;;  %v9087_v52 = vld [vmem:[%s12034_s18 + $0x24] ss:$8 sps:$4 sm:$0xff]  }
 0xad1   : > { %v3959_v33 = vsel %vm680_vm1, %v3947_v45, %v3955_v55  ;;  %v3963_v44 = vsel %vm680_vm1, %v3955_v55, %v3947_v45  ;;  %v9085_v45 = vld [vmem:[%s12034_s18 + $0x14] ss:$8 sps:$4 sm:$0xff]   ;;  %v9088_v54 = vld [vmem:[%s12034_s18 + $0x20] ss:$8 sps:$4 sm:$0xff]  }
 0xad2   : > { %v3970_v35 = vmul.f32 %v3963_v44, %v9420_v49  ;;  %v3971_v37 = vmul.f32 %v3959_v33, %v9424_v50  ;;  %v3977_v46 = vpop.permute.xlu1 %3976  ;;  %v9089_v55 = vld [vmem:[%s12034_s18 + $0x34] ss:$8 sps:$4 sm:$0xff]   ;;  %v9090_v44 = vld [vmem:[%s12034_s18 + $0x30] ss:$8 sps:$4 sm:$0xff]  }
 0xad3   : > { %v8752_v33 = vld [vmem:[%s12020_s10 + $0xb0] sm:$0xff]  }
 0xad4   : > { %v3974_v36 = vpack.c.bf16 %v3970_v35, %v3968_v38  ;;  %v3979_v53 = vpop.permute.xlu0 %3978  ;;  %v3975_v11 = vpack.c.bf16 %v3971_v37, %v3969_v5  ;;  %v9091_v38 = vld [vmem:[%s12034_s18 + $0x44] ss:$8 sps:$4 sm:$0xff]   ;;  %v9092_v5 = vld [vmem:[%s12034_s18 + $0x40] ss:$8 sps:$4 sm:$0xff]   ;;  %v9093_v35 = vld [vmem:[%s12034_s18 + $0x54] ss:$8 sps:$4 sm:$0xff]  }
 0xad5   : > { %v8753_v37 = vld [vmem:[%s12020_s10 + $0xb8] sm:$0xff]  }
 0xad6   : > { %v3985_v57 = vpop.permute.xlu1 %3984  ;;  %4169 = vmatprep.subr.bf16.mxu1 %v3975_v11  ;;  %v9097_v11 = vld [vmem:[%s12034_s18 + $0x74] ss:$8 sps:$4 sm:$0xff]  }
 0xad7   : > { %v3992_v6 = vsel %vm728_vm2, %v3977_v46, %v3985_v57  ;;  %v3996_v13 = vsel %vm728_vm2, %v3985_v57, %v3977_v46  ;;  %4170 = vmatpush1.bf16.msra.mxu1 %v3974_v36  ;;  %v9094_v46 = vld [vmem:[%s12034_s18 + $0x50] ss:$8 sps:$4 sm:$0xff]   ;;  %v9095_v36 = vld [vmem:[%s12034_s18 + $0x64] ss:$8 sps:$4 sm:$0xff]  }
 0xad8   : > { %v3987_v59 = vpop.permute.xlu0 %3986  ;;  %v4000_v16 = vmul.f32 %v3992_v6, %v9459_v18  ;;  %v4001_v21 = vmul.f32 %v3996_v13, %v9463_v19  ;;  %v9098_v57 = vld [vmem:[%s12034_s18 + $0x70] ss:$8 sps:$4 sm:$0xff]   ;;  %v9100_v6 = vld [vmem:[%s12034_s18 + $0x80] ss:$8 sps:$4 sm:$0xff]   ;;  %v9101_v13 = vld [vmem:[%s12034_s18 + $0x94] ss:$8 sps:$4 sm:$0xff]  }
 0xad9   : > { %v3993_v43 = vsel %vm728_vm2, %v3979_v53, %v3987_v59  ;;  %v3997_v15 = vsel %vm728_vm2, %v3987_v59, %v3979_v53  ;;  %v9096_v53 = vld [vmem:[%s12034_s18 + $0x60] ss:$8 sps:$4 sm:$0xff]   ;;  %v9102_v59 = vld [vmem:[%s12034_s18 + $0x90] ss:$8 sps:$4 sm:$0xff]  }
 0xada   : > { %v4002_v60 = vmul.f32 %v3993_v43, %v9459_v18  ;;  %v4003_v7 = vmul.f32 %v3997_v15, %v9463_v19  ;;  %v3981_v17 = vpop.permute.xlu1 %3980  ;;  %7594 = vmatmul.mubr.msk.bf16.vlgmr.msra.gmra.mrb[56].mxu1 %vm602_vm0, %v8746_v12  ;;  %v9099_v12 = vld [vmem:[%s12034_s18 + $0x84] ss:$8 sps:$4 sm:$0xff]   ;;  %v9104_v15 = vld [vmem:[%s12034_s18 + $0xa0] ss:$8 sps:$4 sm:$0xff]  }
 0xadb   : > { %4209 = vmatprep.mubr.bf16.mxu1 %v9186_v0  ;;  %v9103_v43 = vld [vmem:[%s12034_s18 + $0xa4] ss:$8 sps:$4 sm:$0xff]  }
 0xadc   : > { %v4008_v20 = vpack.c.bf16 %v4002_v60, %v4000_v16  ;;  %v3983_v26 = vpop.permute.xlu0 %3982  ;;  %v4009_v24 = vpack.c.bf16 %v4003_v7, %v4001_v21  ;;  %v9105_v16 = vld [vmem:[%s12034_s18 + $0xb4] ss:$8 sps:$4 sm:$0xff]   ;;  %v9106_v21 = vld [vmem:[%s12034_s18 + $0xb0] ss:$8 sps:$4 sm:$0xff]   ;;  %v9107_v60 = vld [vmem:[%s12034_s18 + $0xc4] ss:$8 sps:$4 sm:$0xff]  }
 0xadd   : > { %v9108_v7 = vld [vmem:[%s12034_s18 + $0xc0] ss:$8 sps:$4 sm:$0xff]  }
 0xade   : > { %v3989_v61 = vpop.permute.xlu1 %3988  ;;  %4281 = vmatprep.subr.bf16.mxu1 %v4009_v24  ;;  %v9112_v24 = vld [vmem:[%s12034_s18 + $0xe0] ss:$8 sps:$4 sm:$0xff]  }
 0xadf   : > { %v3994_v22 = vsel %vm728_vm2, %v3981_v17, %v3989_v61  ;;  %v3998_v63 = vsel %vm728_vm2, %v3989_v61, %v3981_v17  ;;  %4282 = vmatpush1.bf16.msra.mxu1 %v4008_v20  ;;  %v9109_v17 = vld [vmem:[%s12034_s18 + $0xd4] ss:$8 sps:$4 sm:$0xff]   ;;  %v9110_v20 = vld [vmem:[%s12034_s18 + $0xd0] ss:$8 sps:$4 sm:$0xff]  }
 0xae0   : > { %v3991_v4 = vpop.permute.xlu0 %3990  ;;  %v4004_v8 = vmul.f32 %v3994_v22, %v9459_v18  ;;  %v4005_v30 = vmul.f32 %v3998_v63, %v9463_v19  ;;  %v9113_v61 = vld [vmem:[%s12034_s18 + $0xf4] ss:$8 sps:$4 sm:$0xff]  }
 0xae1   : > { %v3995_v28 = vsel %vm728_vm2, %v3983_v26, %v3991_v4  ;;  %v3999_v29 = vsel %vm728_vm2, %v3991_v4, %v3983_v26  ;;  %v9111_v26 = vld [vmem:[%s12034_s18 + $0xe4] ss:$8 sps:$4 sm:$0xff]  }
 0xae2   : > { %v4006_v34 = vmul.f32 %v3995_v28, %v9459_v18  ;;  %v4007_v31 = vmul.f32 %v3999_v29, %v9463_v19  ;;  %7595 = vmatmul.mubr.msk.bf16.gmra.mrb[60].mxu1 %vm602_vm0, %v8747_v27  ;;  %v9114_v27 = vld [vmem:[%s12034_s18 + $0xf0] ss:$8 sps:$4 sm:$0xff]  }
 0xae3   : > { %4219 = vmatprep.mubr.bf16.mxu1 %v9186_v0 }
 0xae4   : > { %v4010_v42 = vpack.c.bf16 %v4006_v34, %v4004_v8  ;;  %v4011_v32 = vpack.c.bf16 %v4007_v31, %v4005_v30 }
 0xae6   : > { %4283 = vmatprep.subr.bf16.mxu1 %v4011_v32 }
 0xae7   : > { %4284 = vmatpush1.bf16.msra.mxu1 %v4010_v42 }
 0xae8   : > { %5165 = vmatprep.subr.bf16.mxu1 %v9083_v56 }
 0xaea   : > { %7596 = vmatmul.mubr.msk.bf16.gmra.mrb[64].mxu1 %vm602_vm0, %v8748_v41 }
 0xaeb   : > { %4229 = vmatprep.mubr.bf16.mxu1 %v9186_v0 }
 0xaef   : > { %v4402_v31 = vpop.permute.xlu1 %4401 }
 0xaf1   : > { %v4407_v56 = vpop.permute.xlu0 %4406 }
 0xaf2   : > { %7597 = vmatmul.mubr.msk.bf16.gmra.mrb[68].mxu1 %vm602_vm0, %v8749_v62 }
 0xaf3   : > { %4313 = vmatprep.mubr.bf16.mxu1 %v9186_v0 }
 0xafa   : > { %7610 = vmatmul.mubr.msk.bf16.vlgmr.msra.gmra.mrb[56].mxu1 %vm602_vm0, %v8750_v2 }
 0xafb   : > { %4323 = vmatprep.mubr.bf16.mxu1 %v9186_v0  ;;  %5166 = vmatpush1.bf16.msra.mxu1 %v9084_v10 }
 0xafc   : > { %5167 = vmatprep.subr.bf16.mxu1 %v9085_v45 }
 0xaff   : > { %5168 = vmatpush1.bf16.msra.mxu1 %v9086_v48 }
 0xb00   : > { %5169 = vmatprep.subr.bf16.mxu1 %v9087_v52 }
 0xb02   : > { %7611 = vmatmul.mubr.msk.bf16.gmra.mrb[60].mxu1 %vm602_vm0, %v8751_v47 }
 0xb03   : > { %4333 = vmatprep.mubr.bf16.mxu1 %v9186_v0  ;;  %5170 = vmatpush1.bf16.msra.mxu1 %v9088_v54 }
 0xb04   : > { %5171 = vmatprep.subr.bf16.mxu1 %v9089_v55  ;;  %v4412_v55 = vpop.permute.xlu1 %4411 }
 0xb07   : > { %5172 = vmatpush1.bf16.msra.mxu1 %v9090_v44 }
 0xb08   : > { %5173 = vmatprep.subr.bf16.mxu1 %v9091_v38 }
 0xb0a   : > { %7612 = vmatmul.mubr.msk.bf16.gmra.mrb[64].mxu1 %vm602_vm0, %v8752_v33 }
 0xb0b   : > { %4343 = vmatprep.mubr.bf16.mxu1 %v9186_v0  ;;  %5174 = vmatpush1.bf16.msra.mxu1 %v9092_v5  ;;  %v4417_v5 = vpop.permute.xlu0 %4416 }
 0xb0c   : > { %5175 = vmatprep.subr.bf16.mxu1 %v9093_v35 }
 0xb0f   : > { %5176 = vmatpush1.bf16.msra.mxu1 %v9094_v46 }
 0xb10   : > { %5177 = vmatprep.subr.bf16.mxu1 %v9095_v36 }
 0xb12   : > { %7613 = vmatmul.mubr.msk.bf16.gmra.mrb[68].mxu1 %vm602_vm0, %v8753_v37 }
 0xb13   : > { %5178 = vmatpush1.bf16.msra.mxu1 %v9096_v53 }
 0xb14   : > { %5179 = vmatprep.subr.bf16.mxu1 %v9097_v11 }
 0xb17   : > { %5180 = vmatpush1.bf16.msra.mxu1 %v9098_v57 }
 0xb18   : > { %5181 = vmatprep.subr.bf16.mxu1 %v9099_v12 }
 0xb1b   : > { %5182 = vmatpush1.bf16.msra.mxu1 %v9100_v6 }
 0xb1c   : > { %5183 = vmatprep.subr.bf16.mxu1 %v9101_v13 }
 0xb1f   : > { %5184 = vmatpush1.bf16.msra.mxu1 %v9102_v59 }
 0xb20   : > { %5185 = vmatprep.subr.bf16.mxu1 %v9103_v43 }
 0xb23   : > { %5186 = vmatpush1.bf16.msra.mxu1 %v9104_v15 }
 0xb24   : > { %5187 = vmatprep.subr.bf16.mxu1 %v9105_v16 }
 0xb27   : > { %5188 = vmatpush1.bf16.msra.mxu1 %v9106_v21 }
 0xb28   : > { %5189 = vmatprep.subr.bf16.mxu1 %v9107_v60 }
 0xb2b   : > { %5190 = vmatpush1.bf16.msra.mxu1 %v9108_v7 }
 0xb2c   : > { %5191 = vmatprep.subr.bf16.mxu1 %v9109_v17  ;;  %v4382_v17 = vpop.permute.xlu1 %4381 }
 0xb2f   : > { %5192 = vmatpush1.bf16.msra.mxu1 %v9110_v20 }
 0xb30   : > { %5193 = vmatprep.subr.bf16.mxu1 %v9111_v26 }
 0xb33   : > { %5194 = vmatpush1.bf16.msra.mxu1 %v9112_v24 }
 0xb34   : > { %5195 = vmatprep.subr.bf16.mxu1 %v9113_v61  ;;  %v4387_v61 = vpop.permute.xlu0 %4386 }
 0xb37   : > { %5196 = vmatpush1.bf16.msra.mxu1 %v9114_v27 }
 0xb38   : > { %5227 = vmatprep.subr.bf16.mxu1 %v10367_v51 }
 0xbcd   : > { %v4315_v22 = vpop.f32.mrb[56].mxu1 }
 0xbce   : > { %v4317_v63 = vpop.f32.mrb[57].mxu1  ;;  %v4419_v26 = vadd.f32 %v4382_v17, %v4315_v22 }
 0xbcf   : > { %v4319_v4 = vpop.f32.mrb[58].mxu1  ;;  %v4420_v27 = vadd.f32 %v4382_v17, %v4317_v63  ;;  %v7696_v17 = vld [vmem:[%s12017_s7 + $0xb0] sm:$0xff] }
 0xbd0   : > { %v10939_v28 = vpop.f32.mrb[59].mxu1 }
 0xbd5   : > { %v10941_v29 = vpop.f32.mrb[60].mxu1 }
 0xbd6   : > { %v10943_v8 = vpop.f32.mrb[61].mxu1 }
 0xbd7   : > { %v10945_v30 = vpop.f32.mrb[62].mxu1 }
 0xbd8   : > { %v10947_v34 = vpop.f32.mrb[63].mxu1 }
 0xbdd   : > { %v4335_v42 = vpop.f32.mrb[64].mxu1 }
 0xbde   : > { %v4427_v32 = vadd.f32 %v4402_v31, %v4335_v42  ;;  %v4337_v41 = vpop.f32.mrb[65].mxu1 }
 0xbdf   : > { %v4428_v62 = vadd.f32 %v4402_v31, %v4337_v41  ;;  %v4339_v51 = vpop.f32.mrb[66].mxu1 }
 0xbe0   : > { %v7622_v2 = vmul.f32 -1.442695, %v4427_v32  ;;  %v4429_v10 = vadd.f32 %v4407_v56, %v4339_v51  ;;  %v4341_v45 = vpop.f32.mrb[67].mxu1  ;;  %v4421_v32 = vadd.f32 %v4387_v61, %v4319_v4 }
 0xbe1   : > { %v7623_v47 = vmul.f32 -1.442695, %v4428_v62  ;;  %v4430_v48 = vadd.f32 %v4407_v56, %v4341_v45  ;;  %v4422_v62 = vadd.f32 %v4387_v61, %v10939_v28  ;;  %v7637_v61 = vld [vmem:[%s12015_s5 + $0x58] sm:$0xff] }
 0xbe2   : > { %8891 = vpow2.f32 %v7622_v2  ;;  %v7624_v52 = vmul.f32 -1.442695, %v4429_v10  ;;  %v4435_v2 = vadd.f32 %v4419_v26, %v10655_v1  ;;  %v4437_v63 = vadd.f32 %v4421_v32, %v10657_v9  ;;  %v7636_v26 = vld [vmem:[%s12015_s5 + $0x50] sm:$0xff]  ;;  %v8759_v32 = vld [vmem:[%s12016_s6 + $0xf8] sm:$0xff]  }
 0xbe3   : > { %8893 = vpow2.f32 %v7623_v47  ;;  %v7625_v54 = vmul.f32 -1.442695, %v4430_v48  ;;  %v4436_v47 = vadd.f32 %v4420_v27, %v10661_v3  ;;  %v7692_v27 = vld [vmem:[%s12017_s7 + $0x90] sm:$0xff] }
 0xbe4   : > { %8895 = vpow2.f32 %v7624_v52  ;;  %v4392_v52 = vpop.permute.xlu1 %4391 }
 0xbe5   : > { %8897 = vpow2.f32 %v7625_v54  ;;  %v4345_v33 = vpop.f32.mrb[68].mxu1  ;;  %v4438_v54 = vadd.f32 %v4422_v62, %v10663_v39  ;;  %v4424_v3 = vadd.f32 %v4392_v52, %v10943_v8  ;;  %v7733_v62 = vld [vmem:[%s12019_s9 + $0x58] sm:$0xff] }
 0xbe6   : > { %v4431_v44 = vadd.f32 %v4412_v55, %v4345_v33  ;;  %v4347_v38 = vpop.f32.mrb[69].mxu1  ;;  %v4423_v33 = vadd.f32 %v4392_v52, %v10941_v29 }
 0xbe7   : > { %v4432_v35 = vadd.f32 %v4412_v55, %v4347_v38  ;;  %v4349_v37 = vpop.f32.mrb[70].mxu1 }
 0xbe8   : > { %v7626_v46 = vmul.f32 -1.442695, %v4431_v44  ;;  %v4433_v36 = vadd.f32 %v4417_v5, %v4349_v37  ;;  %v4351_v53 = vpop.f32.mrb[71].mxu1  ;;  %v4397_v44 = vpop.permute.xlu0 %4396  ;;  %v4439_v39 = vadd.f32 %v4423_v33, %v10673_v58 }
 0xbe9   : > { %v7627_v11 = vmul.f32 -1.442695, %v4432_v35  ;;  %v4434_v57 = vadd.f32 %v4417_v5, %v4351_v53  ;;  %v4425_v5 = vadd.f32 %v4397_v44, %v10945_v30  ;;  %v4426_v35 = vadd.f32 %v4397_v44, %v10947_v34 }
 0xbea   : > { %8899 = vpow2.f32 %v7626_v46  ;;  %v7628_v12 = vmul.f32 -1.442695, %v4433_v36  ;;  %v4440_v46 = vadd.f32 %v4424_v3, %v10681_v40 }
 0xbeb   : > { %8901 = vpow2.f32 %v7627_v11  ;;  %v7629_v6 = vmul.f32 -1.442695, %v4434_v57  ;;  %v4441_v8 = vadd.f32 %v4425_v5, %v10677_v14  ;;  %v4442_v11 = vadd.f32 %v4426_v35, %v10683_v23  ;;  %v8754_v14 = vld [vmem:[%s12014_s4 + $0x20] sm:$0xff]   ;;  %v8755_v23 = vld [vmem:[%s12014_s4 + $0x28] sm:$0xff]  }
 0xbec   : > { %v8892_v13 = vpop.eup %8891  ;;  %8903 = vpow2.f32 %v7628_v12 }
 0xbed   : > { %v8894_v59 = vpop.eup %8893  ;;  %v4467_v43 = vadd.f32 1.0, %v8892_v13  ;;  %8905 = vpow2.f32 %v7629_v6  ;;  %v7694_v13 = vld [vmem:[%s12017_s7 + $0xa0] sm:$0xff] }
 0xbee   : > { %v8896_v15 = vpop.eup %8895  ;;  %v4468_v16 = vadd.f32 1.0, %v8894_v59  ;;  %v8756_v59 = vld [vmem:[%s12016_s6 + $0xe0] sm:$0xff]  }
 0xbef   : > { %v8898_v21 = vpop.eup %8897  ;;  %8907 = vrcp.f32 %v4467_v43  ;;  %v4469_v60 = vadd.f32 1.0, %v8896_v15  ;;  %v7695_v43 = vld [vmem:[%s12017_s7 + $0xa8] sm:$0xff]  ;;  %v7634_v15 = vld [vmem:[%s12015_s5 + $0x40] sm:$0xff] }
 0xbf0   : > { %8909 = vrcp.f32 %v4468_v16  ;;  %v4470_v7 = vadd.f32 1.0, %v8898_v21  ;;  %v7635_v16 = vld [vmem:[%s12015_s5 + $0x48] sm:$0xff]  ;;  %v7690_v21 = vld [vmem:[%s12017_s7 + $0x80] sm:$0xff] }
 0xbf1   : > { %8911 = vrcp.f32 %v4469_v60  ;;  %v8757_v60 = vld [vmem:[%s12016_s6 + $0xe8] sm:$0xff]  }
 0xbf2   : > { %8913 = vrcp.f32 %v4470_v7  ;;  %v7691_v7 = vld [vmem:[%s12017_s7 + $0x88] sm:$0xff] }
 0xbf4   : > { %v8900_v20 = vpop.eup %8899 }
 0xbf5   : > { %v8902_v24 = vpop.eup %8901  ;;  %v4471_v31 = vadd.f32 1.0, %v8900_v20  ;;  %v7697_v20 = vld [vmem:[%s12017_s7 + $0xb8] sm:$0xff] }
 0xbf6   : > { %v8904_v42 = vpop.eup %8903  ;;  %v4472_v41 = vadd.f32 1.0, %v8902_v24  ;;  %v8758_v24 = vld [vmem:[%s12016_s6 + $0xf0] sm:$0xff]  }
 0xbf7   : > { %v8906_v56 = vpop.eup %8905  ;;  %8915 = vrcp.f32 %v4471_v31  ;;  %v4473_v51 = vadd.f32 1.0, %v8904_v42  ;;  %v7693_v31 = vld [vmem:[%s12017_s7 + $0x98] sm:$0xff]  ;;  %v7730_v42 = vld [vmem:[%s12019_s9 + $0x40] sm:$0xff] }
 0xbf8   : > { %8917 = vrcp.f32 %v4472_v41  ;;  %v4474_v10 = vadd.f32 1.0, %v8906_v56  ;;  %v7731_v41 = vld [vmem:[%s12019_s9 + $0x48] sm:$0xff]  ;;  %v7732_v56 = vld [vmem:[%s12019_s9 + $0x50] sm:$0xff] }
 0xbf9   : > { %v8908_v45 = vpop.eup %8907  ;;  %8919 = vrcp.f32 %v4473_v51 }
 0xbfa   : > { %v8910_v22 = vpop.eup %8909  ;;  %8921 = vrcp.f32 %v4474_v10  ;;  %v4491_v48 = vmul.f32 %v8908_v45, %v4435_v2 }
 0xbfb   : > { %v8912_v4 = vpop.eup %8911  ;;  %v4492_v28 = vmul.f32 %v8910_v22, %v4436_v47 }
 0xbfc   : > { %v8914_v55 = vpop.eup %8913  ;;  %4602 = vrot.lane.b32.xlu1 %v4491_v48, %s9187_s30  ;;  %v4493_v1 = vmul.f32 %v8912_v4, %v4437_v63 }
 0xbfd   : > { %v4494_v38 = vmul.f32 %v8914_v55, %v4438_v54 }
 0xbfe   : > { %4604 = vrot.lane.b32.xlu0 %v4493_v1, %s9187_s30  ;;  %v4504_v9 = vpack.c.bf16 %v4493_v1, %v4491_v48 }
 0xbff   : > { %v4505_v37 = vpack.c.bf16 %v4494_v38, %v4492_v28 }
 0xc00   : > { %4610 = vrot.lane.b32.xlu1 %v4492_v28, %s9187_s30 }
 0xc01   : > { %v8916_v29 = vpop.eup %8915  ;;  %4549 = vmatprep.subr.bf16.mxu0 %v4505_v37 }
 0xc02   : > { %v8918_v36 = vpop.eup %8917  ;;  %4612 = vrot.lane.b32.xlu0 %v4494_v38, %s9187_s30  ;;  %4550 = vmatpush1.bf16.msra.mxu0 %v4504_v9  ;;  %v4495_v30 = vmul.f32 %v8916_v29, %v4439_v39 }
 0xc03   : > { %v8920_v53 = vpop.eup %8919  ;;  %v4496_v34 = vmul.f32 %v8918_v36, %v4440_v46 }
 0xc04   : > { %v8922_v57 = vpop.eup %8921  ;;  %4606 = vrot.lane.b32.xlu1 %v4495_v30, %s9187_s30  ;;  %v4497_v58 = vmul.f32 %v8920_v53, %v4441_v8 }
 0xc05   : > { %v4498_v12 = vmul.f32 %v8922_v57, %v4442_v11  ;;  %v8760_v57 = vld [vmem:[%s12016_s6 + $0xc0] sm:$0xff]  }
 0xc06   : > { %4608 = vrot.lane.b32.xlu0 %v4497_v58, %s9187_s30  ;;  %v4506_v40 = vpack.c.bf16 %v4497_v58, %v4495_v30 }
 0xc07   : > { %v4507_v6 = vpack.c.bf16 %v4498_v12, %v4496_v34 }
 0xc08   : > { %4614 = vrot.lane.b32.xlu1 %v4496_v34, %s9187_s30 }
 0xc09   : > { %4551 = vmatprep.subr.bf16.mxu0 %v4507_v6 }
 0xc0a   : > { %4616 = vrot.lane.b32.xlu0 %v4498_v12, %s9187_s30  ;;  %4552 = vmatpush1.bf16.msra.mxu0 %v4506_v40 }
 0xc0b   : > { %4724 = vmatprep.subr.bf16.mxu0 %v4505_v37 }
 0xc0c   : > { %4638 = vrot.lane.b32.xlu1 %v4491_v48, %s12035_s27 }
 0xc0d   : > { %7640 = vmatmul.mubr.msk.bf16.vlgmr.msra.gmra.mrb[64].mxu0 %vm602_vm0, %v8754_v14 }
 0xc0e   : > { %4640 = vrot.lane.b32.xlu0 %v4493_v1, %s12035_s27  ;;  %4725 = vmatpush1.bf16.msra.mxu0 %v4504_v9 }
 0xc0f   : > { %4726 = vmatprep.subr.bf16.mxu0 %v4507_v6  ;;  %4591 = vmatprep.mubr.bf16.mxu0 %v9186_v0 }
 0xc10   : > { %4646 = vrot.lane.b32.xlu1 %v4492_v28, %s12035_s27 }
 0xc12   : > { %4648 = vrot.lane.b32.xlu0 %v4494_v38, %s12035_s27  ;;  %4727 = vmatpush1.bf16.msra.mxu0 %v4506_v40 }
 0xc14   : > { %4642 = vrot.lane.b32.xlu1 %v4495_v30, %s12035_s27 }
 0xc15   : > { %7641 = vmatmul.mubr.msk.bf16.gmra.mrb[68].mxu0 %vm602_vm0, %v8755_v23 }
 0xc16   : > { %4644 = vrot.lane.b32.xlu0 %v4497_v58, %s12035_s27  ;;  %4756 = vmatprep.mubr.bf16.mxu0 %v9186_v0 }
 0xc18   : > { %4650 = vrot.lane.b32.xlu1 %v4496_v34, %s12035_s27 }
 0xc1a   : > { %4652 = vrot.lane.b32.xlu0 %v4498_v12, %s12035_s27 }
 0xc1c   : > { %5063 = vperm.xlu1 %8545, %v7694_v13  }
 0xc1d   : > { %7662 = vmatmul.mubr.msk.bf16.vlgmr.msra.gmra.mrb[64].mxu0 %vm602_vm0, %v8756_v59 }
 0xc1e   : > { %5068 = vperm.xlu0 %8544, %v7695_v43   ;;  %4766 = vmatprep.mubr.bf16.mxu0 %v9186_v0 }
 0xc20   : > { %4515 = vperm.xlu1 %8545, %v7634_v15  }
 0xc22   : > { %4520 = vperm.xlu0 %8544, %v7635_v16  }
 0xc24   : > { %5043 = vperm.xlu1 %8545, %v7690_v21  }
 0xc25   : > { %7663 = vmatmul.mubr.msk.bf16.gmra.mrb[68].mxu0 %vm602_vm0, %v8757_v60 }
 0xc26   : > { %5048 = vperm.xlu0 %8544, %v7691_v7   ;;  %4776 = vmatprep.mubr.bf16.mxu0 %v9186_v0 }
 0xc28   : > { %5073 = vperm.xlu1 %8545, %v7696_v17   ;;  %v8761_v17 = vld [vmem:[%s12016_s6 + $0xc8] sm:$0xff]  }
 0xc2a   : > { %5078 = vperm.xlu0 %8544, %v7697_v20  }
 0xc2c   : > { %4525 = vperm.xlu1 %8545, %v7636_v26  }
 0xc2d   : > { %7664 = vmatmul.mubr.msk.bf16.gmra.mrb[72].mxu0 %vm602_vm0, %v8758_v24 }
 0xc2e   : > { %4530 = vperm.xlu0 %8544, %v7637_v61   ;;  %4786 = vmatprep.mubr.bf16.mxu0 %v9186_v0 }
 0xc30   : > { %5053 = vperm.xlu1 %8545, %v7692_v27  }
 0xc32   : > { %5058 = vperm.xlu0 %8544, %v7693_v31  }
 0xc34   : > { %5573 = vperm.xlu1 %8545, %v7730_v42  }
 0xc35   : > { %7665 = vmatmul.mubr.msk.bf16.gmra.mrb[76].mxu0 %vm602_vm0, %v8759_v32 }
 0xc36   : > { %5578 = vperm.xlu0 %8544, %v7731_v41   ;;  %4861 = vmatprep.mubr.bf16.mxu0 %v9186_v0 }
 0xc38   : > { %5583 = vperm.xlu1 %8545, %v7732_v56  }
 0xc3a   : > { %5588 = vperm.xlu0 %8544, %v7733_v62  }
 0xc6e   : > { %v4603_v51 = vpop.permute.xlu1 %4602 }
 0xc70   : > { %v4605_v2 = vpop.permute.xlu0 %4604 }
 0xc72   : > { %v4611_v10 = vpop.permute.xlu1 %4610 }
 0xc73   : > { %v4618_v45 = vsel %vm680_vm1, %v4603_v51, %v4611_v10  ;;  %v4622_v47 = vsel %vm680_vm1, %v4611_v10, %v4603_v51  ;;  %v8762_v51 = vld [vmem:[%s12016_s6 + $0xd0] sm:$0xff]   ;;  %v8764_v10 = vld [vmem:[%s12016_s6 + $0x100] sm:$0xff]  }
 0xc74   : > { %v4613_v22 = vpop.permute.xlu0 %4612  ;;  %v4626_v4 = vmul.f32 %v4622_v47, %v9420_v49  ;;  %v4627_v52 = vmul.f32 %v4618_v45, %v9424_v50  ;;  %v8765_v45 = vld [vmem:[%s12016_s6 + $0x108] sm:$0xff]   ;;  %v8766_v47 = vld [vmem:[%s12016_s6 + $0x110] sm:$0xff]  }
 0xc75   : > { %v4619_v63 = vsel %vm680_vm1, %v4605_v2, %v4613_v22  ;;  %v4623_v48 = vsel %vm680_vm1, %v4613_v22, %v4605_v2  ;;  %v8763_v2 = vld [vmem:[%s12016_s6 + $0xd8] sm:$0xff]  }
 0xc76   : > { %v4628_v54 = vmul.f32 %v4623_v48, %v9420_v49  ;;  %v4629_v28 = vmul.f32 %v4619_v63, %v9424_v50  ;;  %v4607_v55 = vpop.permute.xlu1 %4606  ;;  %v8767_v22 = vld [vmem:[%s12016_s6 + $0x118] sm:$0xff]  }
 0xc78   : > { %v4634_v33 = vpack.c.bf16 %v4628_v54, %v4626_v4  ;;  %v4609_v1 = vpop.permute.xlu0 %4608  ;;  %v4635_v44 = vpack.c.bf16 %v4629_v28, %v4627_v52 }
 0xc7a   : > { %v4615_v3 = vpop.permute.xlu1 %4614  ;;  %4829 = vmatprep.subr.bf16.mxu0 %v4635_v44 }
 0xc7b   : > { %v4620_v38 = vsel %vm680_vm1, %v4607_v55, %v4615_v3  ;;  %v4624_v5 = vsel %vm680_vm1, %v4615_v3, %v4607_v55  ;;  %4830 = vmatpush1.bf16.msra.mxu0 %v4634_v33 }
 0xc7c   : > { %v4617_v9 = vpop.permute.xlu0 %4616  ;;  %v4630_v39 = vmul.f32 %v4624_v5, %v9420_v49  ;;  %v4631_v29 = vmul.f32 %v4620_v38, %v9424_v50 }
 0xc7d   : > { %v4621_v35 = vsel %vm680_vm1, %v4609_v1, %v4617_v9  ;;  %v4625_v37 = vsel %vm680_vm1, %v4617_v9, %v4609_v1 }
 0xc7e   : > { %v4632_v46 = vmul.f32 %v4625_v37, %v9420_v49  ;;  %v4633_v36 = vmul.f32 %v4621_v35, %v9424_v50  ;;  %v4639_v8 = vpop.permute.xlu1 %4638 }
 0xc80   : > { %v4636_v30 = vpack.c.bf16 %v4632_v46, %v4630_v39  ;;  %v4641_v53 = vpop.permute.xlu0 %4640  ;;  %v4637_v11 = vpack.c.bf16 %v4633_v36, %v4631_v29 }
 0xc82   : > { %v4647_v34 = vpop.permute.xlu1 %4646  ;;  %4831 = vmatprep.subr.bf16.mxu0 %v4637_v11 }
 0xc83   : > { %v4654_v58 = vsel %vm728_vm2, %v4639_v8, %v4647_v34  ;;  %v4658_v12 = vsel %vm728_vm2, %v4647_v34, %v4639_v8  ;;  %4832 = vmatpush1.bf16.msra.mxu0 %v4636_v30 }
 0xc84   : > { %v4649_v40 = vpop.permute.xlu0 %4648  ;;  %v4662_v23 = vmul.f32 %v4654_v58, %v9459_v18  ;;  %v4663_v13 = vmul.f32 %v4658_v12, %v9463_v19 }
 0xc85   : > { %v4655_v6 = vsel %vm728_vm2, %v4641_v53, %v4649_v40  ;;  %v4659_v14 = vsel %vm728_vm2, %v4649_v40, %v4641_v53 }
 0xc86   : > { %v4664_v59 = vmul.f32 %v4655_v6, %v9459_v18  ;;  %v4665_v43 = vmul.f32 %v4659_v14, %v9463_v19  ;;  %v4643_v15 = vpop.permute.xlu1 %4642  ;;  %7670 = vmatmul.mubr.msk.bf16.vlgmr.msra.gmra.mrb[64].mxu0 %vm602_vm0, %v8760_v57 }
 0xc87   : > { %4871 = vmatprep.mubr.bf16.mxu0 %v9186_v0 }
 0xc88   : > { %v4670_v16 = vpack.c.bf16 %v4664_v59, %v4662_v23  ;;  %v4645_v21 = vpop.permute.xlu0 %4644  ;;  %v4671_v60 = vpack.c.bf16 %v4665_v43, %v4663_v13 }
 0xc8a   : > { %v4651_v7 = vpop.permute.xlu1 %4650  ;;  %4943 = vmatprep.subr.bf16.mxu0 %v4671_v60 }
 0xc8b   : > { %v4656_v20 = vsel %vm728_vm2, %v4643_v15, %v4651_v7  ;;  %v4660_v26 = vsel %vm728_vm2, %v4651_v7, %v4643_v15  ;;  %4944 = vmatpush1.bf16.msra.mxu0 %v4670_v16 }
 0xc8c   : > { %v4653_v24 = vpop.permute.xlu0 %4652  ;;  %v4666_v31 = vmul.f32 %v4656_v20, %v9459_v18  ;;  %v4667_v42 = vmul.f32 %v4660_v26, %v9463_v19 }
 0xc8d   : > { %v4657_v61 = vsel %vm728_vm2, %v4645_v21, %v4653_v24  ;;  %v4661_v27 = vsel %vm728_vm2, %v4653_v24, %v4645_v21 }
 0xc8e   : > { %v4668_v32 = vmul.f32 %v4657_v61, %v9459_v18  ;;  %v4669_v41 = vmul.f32 %v4661_v27, %v9463_v19  ;;  %7671 = vmatmul.mubr.msk.bf16.gmra.mrb[68].mxu0 %vm602_vm0, %v8761_v17 }
 0xc8f   : > { %4881 = vmatprep.mubr.bf16.mxu0 %v9186_v0 }
 0xc90   : > { %v4672_v56 = vpack.c.bf16 %v4668_v32, %v4666_v31  ;;  %v4673_v62 = vpack.c.bf16 %v4669_v41, %v4667_v42 }
 0xc92   : > { %4945 = vmatprep.subr.bf16.mxu0 %v4673_v62 }
 0xc93   : > { %4946 = vmatpush1.bf16.msra.mxu0 %v4672_v56 }
 0xc96   : > { %7672 = vmatmul.mubr.msk.bf16.gmra.mrb[72].mxu0 %vm602_vm0, %v8762_v51 }
 0xc97   : > { %4891 = vmatprep.mubr.bf16.mxu0 %v9186_v0 }
 0xc9b   : > { %v5064_v54 = vpop.permute.xlu1 %5063 }
 0xc9d   : > { %v5069_v28 = vpop.permute.xlu0 %5068 }
 0xc9e   : > { %7673 = vmatmul.mubr.msk.bf16.gmra.mrb[76].mxu0 %vm602_vm0, %v8763_v2 }
 0xc9f   : > { %4975 = vmatprep.mubr.bf16.mxu0 %v9186_v0  ;;  %v4516_v3 = vpop.permute.xlu1 %4515 }
 0xca1   : > { %v4521_v38 = vpop.permute.xlu0 %4520 }
 0xca3   : > { %v5044_v37 = vpop.permute.xlu1 %5043 }
 0xca5   : > { %v11156_v30 = vpop.permute.xlu0 %5048 }
 0xca6   : > { %7686 = vmatmul.mubr.msk.bf16.vlgmr.msra.gmra.mrb[64].mxu0 %vm602_vm0, %v8764_v10 }
 0xca7   : > { %4985 = vmatprep.mubr.bf16.mxu0 %v9186_v0  ;;  %v5074_v58 = vpop.permute.xlu1 %5073 }
 0xca9   : > { %v5079_v14 = vpop.permute.xlu0 %5078 }
 0xcae   : > { %7687 = vmatmul.mubr.msk.bf16.gmra.mrb[68].mxu0 %vm602_vm0, %v8765_v45 }
 0xcaf   : > { %4995 = vmatprep.mubr.bf16.mxu0 %v9186_v0 }
 0xcb6   : > { %7688 = vmatmul.mubr.msk.bf16.gmra.mrb[72].mxu0 %vm602_vm0, %v8766_v47 }
 0xcb7   : > { %5005 = vmatprep.mubr.bf16.mxu0 %v9186_v0 }
 0xcbe   : > { %7689 = vmatmul.mubr.msk.bf16.gmra.mrb[76].mxu0 %vm602_vm0, %v8767_v22 }
 0xcbf   : > { %5337 = vmatprep.mubr.bf16.mxu0 %v9186_v0 }
 0xd79   : > { %v4977_v63 = vpop.f32.mrb[64].mxu0 }
 0xd7a   : > { %v4979_v48 = vpop.f32.mrb[65].mxu0  ;;  %v8257_v41 = vadd.f32 %v4977_v63, %v4516_v3 }
 0xd7b   : > { %v11144_v4 = vpop.f32.mrb[66].mxu0  ;;  %v8259_v62 = vadd.f32 %v4979_v48, %v4516_v3 }
 0xd7c   : > { %v11146_v52 = vpop.f32.mrb[67].mxu0  ;;  %v8261_v10 = vadd.f32 %v11144_v4, %v4521_v38  ;;  %v4531_v4 = vpop.permute.xlu0 %4530 }
 0xd7d   : > { %v8263_v22 = vadd.f32 %v11146_v52, %v4521_v38 }
 0xd7e   : > { %v8262_v48 = vadd.f32 %v8261_v10, %v11156_v30  ;;  %v9131_v10 = vld [vmem:[%s12034_s18 + $0x180] ss:$8 sps:$4 sm:$0xff]  }
 0xd81   : > { %v11148_v55 = vpop.f32.mrb[68].mxu0 }
 0xd82   : > { %v11150_v33 = vpop.f32.mrb[69].mxu0 }
 0xd83   : > { %v11152_v1 = vpop.f32.mrb[70].mxu0 }
 0xd84   : > { %v11154_v44 = vpop.f32.mrb[71].mxu0 }
 0xd89   : > { %v4997_v5 = vpop.f32.mrb[72].mxu0 }
 0xd8a   : > { %v5089_v9 = vadd.f32 %v5064_v54, %v4997_v5  ;;  %v4999_v35 = vpop.f32.mrb[73].mxu0 }
 0xd8b   : > { %v5090_v39 = vadd.f32 %v5064_v54, %v4999_v35  ;;  %v5001_v29 = vpop.f32.mrb[74].mxu0  ;;  %v4526_v35 = vpop.permute.xlu1 %4525 }
 0xd8c   : > { %v7698_v46 = vmul.f32 -1.442695, %v5089_v9  ;;  %v5091_v36 = vadd.f32 %v5069_v28, %v5001_v29  ;;  %v5003_v8 = vpop.f32.mrb[75].mxu0  ;;  %v8265_v38 = vadd.f32 %v11148_v55, %v4526_v35 }
 0xd8d   : > { %v7699_v53 = vmul.f32 -1.442695, %v5090_v39  ;;  %v5092_v11 = vadd.f32 %v5069_v28, %v5003_v8  ;;  %v8258_v28 = vadd.f32 %v8257_v41, %v5044_v37  ;;  %v8260_v39 = vadd.f32 %v8259_v62, %v5044_v37  ;;  %v9126_v41 = vld [vmem:[%s12034_s18 + $0x164] ss:$8 sps:$4 sm:$0xff]   ;;  %v9128_v62 = vld [vmem:[%s12034_s18 + $0x174] ss:$8 sps:$4 sm:$0xff]  }
 0xd8e   : > { %8923 = vpow2.f32 %v7698_v46  ;;  %v7700_v34 = vmul.f32 -1.442695, %v5091_v36  ;;  %v8264_v46 = vadd.f32 %v8263_v22, %v11156_v30  ;;  %v8269_v37 = vadd.f32 %v11152_v1, %v4531_v4  ;;  %v5059_v30 = vpop.permute.xlu0 %5058  ;;  %v9134_v22 = vld [vmem:[%s12034_s18 + $0x1a4] ss:$8 sps:$4 sm:$0xff]  }
 0xd8f   : > { %8925 = vpow2.f32 %v7699_v53  ;;  %v7701_v57 = vmul.f32 -1.442695, %v5092_v11  ;;  %v8267_v53 = vadd.f32 %v11150_v33, %v4526_v35  ;;  %v9139_v35 = vld [vmem:[%s12034_s18 + $0x1c0] ss:$8 sps:$4 sm:$0xff]  }
 0xd90   : > { %8927 = vpow2.f32 %v7700_v34 }
 0xd91   : > { %8929 = vpow2.f32 %v7701_v57  ;;  %v5007_v12 = vpop.f32.mrb[76].mxu0  ;;  %v5054_v57 = vpop.permute.xlu1 %5053 }
 0xd92   : > { %v5093_v40 = vadd.f32 %v5074_v58, %v5007_v12  ;;  %v5009_v6 = vpop.f32.mrb[77].mxu0 }
 0xd93   : > { %v5094_v23 = vadd.f32 %v5074_v58, %v5009_v6  ;;  %v5011_v13 = vpop.f32.mrb[78].mxu0  ;;  %v8271_v58 = vadd.f32 %v11154_v44, %v4531_v4  ;;  %v9145_v4 = vld [vmem:[%s12034_s18 + $0x1f0] ss:$8 sps:$4 sm:$0xff]  }
 0xd94   : > { %v7702_v59 = vmul.f32 -1.442695, %v5093_v40  ;;  %v5095_v43 = vadd.f32 %v5079_v14, %v5011_v13  ;;  %v5013_v15 = vpop.f32.mrb[79].mxu0  ;;  %v8266_v40 = vadd.f32 %v8265_v38, %v5054_v57 }
 0xd95   : > { %v7703_v16 = vmul.f32 -1.442695, %v5094_v23  ;;  %v5096_v21 = vadd.f32 %v5079_v14, %v5013_v15  ;;  %v8268_v14 = vadd.f32 %v8267_v53, %v5054_v57  ;;  %v8270_v23 = vadd.f32 %v8269_v37, %v5059_v30  ;;  %v9116_v15 = vld [vmem:[%s12034_s18 + $0x114] ss:$8 sps:$4 sm:$0xff]  }
 0xd96   : > { %8931 = vpow2.f32 %v7702_v59  ;;  %v7704_v60 = vmul.f32 -1.442695, %v5095_v43  ;;  %v8272_v1 = vadd.f32 %v8271_v58, %v5059_v30  ;;  %v9115_v59 = vld [vmem:[%s12034_s18 + $0x100] ss:$8 sps:$4 sm:$0xff]  }
 0xd97   : > { %8933 = vpow2.f32 %v7703_v16  ;;  %v7705_v7 = vmul.f32 -1.442695, %v5096_v21 }
 0xd98   : > { %v8924_v17 = vpop.eup %8923  ;;  %8935 = vpow2.f32 %v7704_v60 }
 0xd99   : > { %v8926_v20 = vpop.eup %8925  ;;  %v5129_v26 = vadd.f32 1.0, %v8924_v17  ;;  %8937 = vpow2.f32 %v7705_v7  ;;  %v9117_v7 = vld [vmem:[%s12034_s18 + $0x110] ss:$8 sps:$4 sm:$0xff]  }
 0xd9a   : > { %v8928_v24 = vpop.eup %8927  ;;  %v5130_v61 = vadd.f32 1.0, %v8926_v20  ;;  %v9118_v20 = vld [vmem:[%s12034_s18 + $0x124] ss:$8 sps:$4 sm:$0xff]  }
 0xd9b   : > { %v8930_v27 = vpop.eup %8929  ;;  %8939 = vrcp.f32 %v5129_v26  ;;  %v5131_v31 = vadd.f32 1.0, %v8928_v24  ;;  %v9119_v26 = vld [vmem:[%s12034_s18 + $0x120] ss:$8 sps:$4 sm:$0xff]   ;;  %v9120_v24 = vld [vmem:[%s12034_s18 + $0x134] ss:$8 sps:$4 sm:$0xff]  }
 0xd9c   : > { %8941 = vrcp.f32 %v5130_v61  ;;  %v5132_v42 = vadd.f32 1.0, %v8930_v27  ;;  %v9121_v61 = vld [vmem:[%s12034_s18 + $0x130] ss:$8 sps:$4 sm:$0xff]   ;;  %v9122_v27 = vld [vmem:[%s12034_s18 + $0x144] ss:$8 sps:$4 sm:$0xff]  }
 0xd9d   : > { %8943 = vrcp.f32 %v5131_v31  ;;  %v9123_v31 = vld [vmem:[%s12034_s18 + $0x140] ss:$8 sps:$4 sm:$0xff]  }
 0xd9e   : > { %8945 = vrcp.f32 %v5132_v42  ;;  %v9124_v42 = vld [vmem:[%s12034_s18 + $0x154] ss:$8 sps:$4 sm:$0xff]  }
 0xda0   : > { %v8932_v32 = vpop.eup %8931 }
 0xda1   : > { %v8934_v56 = vpop.eup %8933  ;;  %v5133_v51 = vadd.f32 1.0, %v8932_v32  ;;  %v9125_v32 = vld [vmem:[%s12034_s18 + $0x150] ss:$8 sps:$4 sm:$0xff]  }
 0xda2   : > { %v8936_v2 = vpop.eup %8935  ;;  %v5134_v45 = vadd.f32 1.0, %v8934_v56  ;;  %v9127_v56 = vld [vmem:[%s12034_s18 + $0x160] ss:$8 sps:$4 sm:$0xff]  }
 0xda3   : > { %v8938_v47 = vpop.eup %8937  ;;  %8947 = vrcp.f32 %v5133_v51  ;;  %v5135_v54 = vadd.f32 1.0, %v8936_v2  ;;  %v9129_v51 = vld [vmem:[%s12034_s18 + $0x170] ss:$8 sps:$4 sm:$0xff]   ;;  %v9130_v2 = vld [vmem:[%s12034_s18 + $0x184] ss:$8 sps:$4 sm:$0xff]  }
 0xda4   : > { %8949 = vrcp.f32 %v5134_v45  ;;  %v5136_v5 = vadd.f32 1.0, %v8938_v47  ;;  %v9132_v45 = vld [vmem:[%s12034_s18 + $0x194] ss:$8 sps:$4 sm:$0xff]   ;;  %v9133_v47 = vld [vmem:[%s12034_s18 + $0x190] ss:$8 sps:$4 sm:$0xff]  }
 0xda5   : > { %v8940_v9 = vpop.eup %8939  ;;  %8951 = vrcp.f32 %v5135_v54  ;;  %v9135_v54 = vld [vmem:[%s12034_s18 + $0x1a0] ss:$8 sps:$4 sm:$0xff]  }
 0xda6   : > { %v8942_v63 = vpop.eup %8941  ;;  %8953 = vrcp.f32 %v5136_v5  ;;  %v5153_v3 = vmul.f32 %v8940_v9, %v8258_v28  ;;  %v9136_v28 = vld [vmem:[%s12034_s18 + $0x1b4] ss:$8 sps:$4 sm:$0xff]   ;;  %v9137_v5 = vld [vmem:[%s12034_s18 + $0x1b0] ss:$8 sps:$4 sm:$0xff]   ;;  %v9138_v9 = vld [vmem:[%s12034_s18 + $0x1c4] ss:$8 sps:$4 sm:$0xff]  }
 0xda7   : > { %v8944_v29 = vpop.eup %8943  ;;  %v5154_v36 = vmul.f32 %v8942_v63, %v8260_v39  ;;  %v9140_v39 = vld [vmem:[%s12034_s18 + $0x1d4] ss:$8 sps:$4 sm:$0xff]   ;;  %v9141_v63 = vld [vmem:[%s12034_s18 + $0x1d0] ss:$8 sps:$4 sm:$0xff]  }
 0xda8   : > { %v8946_v52 = vpop.eup %8945  ;;  %v5155_v8 = vmul.f32 %v8944_v29, %v8262_v48  ;;  %v9142_v48 = vld [vmem:[%s12034_s18 + $0x1e4] ss:$8 sps:$4 sm:$0xff]   ;;  %v9144_v29 = vld [vmem:[%s12034_s18 + $0x1f4] ss:$8 sps:$4 sm:$0xff]  }
 0xda9   : > { %v5156_v11 = vmul.f32 %v8946_v52, %v8264_v46 }
 0xdaa   : > { %v11165_v34 = vpack.c.bf16 %v5155_v8, %v5153_v3  ;;  %v9143_v3 = vld [vmem:[%s12034_s18 + $0x1e0] ss:$8 sps:$4 sm:$0xff]  }
 0xdab   : > { %v11168_v12 = vpack.c.bf16 %v5156_v11, %v5154_v36 }
 0xdad   : > { %v8948_v6 = vpop.eup %8947  ;;  %5197 = vmatprep.mubr.bf16.mxu1 %v11168_v12 }
 0xdae   : > { %v8950_v55 = vpop.eup %8949  ;;  %5198 = vmatmul.mubr.bf16.vlgmr.msra.gmra.mrb[72].mxu1 %v11165_v34  ;;  %v5157_v33 = vmul.f32 %v8948_v6, %v8266_v40 }
 0xdaf   : > { %v8952_v13 = vpop.eup %8951  ;;  %5228 = vmatpush1.bf16.msra.mxu1 %v9115_v59  ;;  %v5158_v44 = vmul.f32 %v8950_v55, %v8268_v14 }
 0xdb0   : > { %v8954_v43 = vpop.eup %8953  ;;  %5229 = vmatprep.subr.bf16.mxu1 %v9116_v15  ;;  %v5159_v16 = vmul.f32 %v8952_v13, %v8270_v23 }
 0xdb1   : > { %v5160_v21 = vmul.f32 %v8954_v43, %v8272_v1 }
 0xdb2   : > { %v11178_v60 = vpack.c.bf16 %v5159_v16, %v5157_v33 }
 0xdb3   : > { %5230 = vmatpush1.bf16.msra.mxu1 %v9117_v7  ;;  %v11183_v17 = vpack.c.bf16 %v5160_v21, %v5158_v44  ;;  %v8768_v21 = vld [vmem:[%s12018_s8 + $0x70] sm:$0xff]   ;;  %v8769_v7 = vld [vmem:[%s12018_s8 + $0x78] sm:$0xff]  }
 0xdb4   : > { %5231 = vmatprep.subr.bf16.mxu1 %v9118_v20  ;;  %v9146_v20 = vld [vmem:[%s12034_s18 + $0x204] ss:$8 sps:$4 sm:$0xff]  }
 0xdb5   : > { %5207 = vmatprep.mubr.bf16.mxu1 %v11183_v17 }
 0xdb6   : > { %5208 = vmatmul.mubr.bf16.gmra.mrb[76].mxu1 %v11178_v60 }
 0xdb7   : > { %5232 = vmatpush1.bf16.msra.mxu1 %v9119_v26  ;;  %5259 = vmatprep.mubr.bf16.mxu1 %v11168_v12  ;;  %v8770_v26 = vld [vmem:[%s12018_s8 + $0x60] sm:$0xff]  }
 0xdb8   : > { %5233 = vmatprep.subr.bf16.mxu1 %v9120_v24  ;;  %v9147_v24 = vld [vmem:[%s12034_s18 + $0x200] ss:$8 sps:$4 sm:$0xff]  }
 0xdbb   : > { %5234 = vmatpush1.bf16.msra.mxu1 %v9121_v61  ;;  %v9148_v61 = vld [vmem:[%s12034_s18 + $0x214] ss:$8 sps:$4 sm:$0xff]  }
 0xdbc   : > { %5235 = vmatprep.subr.bf16.mxu1 %v9122_v27  ;;  %v8771_v27 = vld [vmem:[%s12018_s8 + $0x68] sm:$0xff]  }
 0xdbf   : > { %5236 = vmatpush1.bf16.msra.mxu1 %v9123_v31  ;;  %v9149_v31 = vld [vmem:[%s12034_s18 + $0x210] ss:$8 sps:$4 sm:$0xff]  }
 0xdc0   : > { %5237 = vmatprep.subr.bf16.mxu1 %v9124_v42  ;;  %v9150_v42 = vld [vmem:[%s12034_s18 + $0x224] ss:$8 sps:$4 sm:$0xff]  }
 0xdc3   : > { %5238 = vmatpush1.bf16.msra.mxu1 %v9125_v32  ;;  %v9151_v32 = vld [vmem:[%s12034_s18 + $0x220] ss:$8 sps:$4 sm:$0xff]  }
 0xdc4   : > { %5239 = vmatprep.subr.bf16.mxu1 %v9126_v41  ;;  %v9152_v41 = vld [vmem:[%s12034_s18 + $0x234] ss:$8 sps:$4 sm:$0xff]  }
 0xdc7   : > { %5240 = vmatpush1.bf16.msra.mxu1 %v9127_v56  ;;  %v9153_v56 = vld [vmem:[%s12034_s18 + $0x230] ss:$8 sps:$4 sm:$0xff]  }
 0xdc8   : > { %5241 = vmatprep.subr.bf16.mxu1 %v9128_v62  ;;  %v9154_v62 = vld [vmem:[%s12034_s18 + $0x244] ss:$8 sps:$4 sm:$0xff]  }
 0xdcb   : > { %5242 = vmatpush1.bf16.msra.mxu1 %v9129_v51  ;;  %v9155_v51 = vld [vmem:[%s12034_s18 + $0x240] ss:$8 sps:$4 sm:$0xff]  }
 0xdcc   : > { %5243 = vmatprep.subr.bf16.mxu1 %v9130_v2  ;;  %v9157_v2 = vld [vmem:[%s12034_s18 + $0x250] ss:$8 sps:$4 sm:$0xff]  }
 0xdcf   : > { %5244 = vmatpush1.bf16.msra.mxu1 %v9131_v10  ;;  %v9158_v10 = vld [vmem:[%s12034_s18 + $0x264] ss:$8 sps:$4 sm:$0xff]  }
 0xdd0   : > { %5245 = vmatprep.subr.bf16.mxu1 %v9132_v45  ;;  %v9159_v45 = vld [vmem:[%s12034_s18 + $0x260] ss:$8 sps:$4 sm:$0xff]  }
 0xdd3   : > { %5246 = vmatpush1.bf16.msra.mxu1 %v9133_v47  ;;  %v9160_v47 = vld [vmem:[%s12034_s18 + $0x274] ss:$8 sps:$4 sm:$0xff]  }
 0xdd4   : > { %5247 = vmatprep.subr.bf16.mxu1 %v9134_v22  ;;  %v9161_v22 = vld [vmem:[%s12034_s18 + $0x270] ss:$8 sps:$4 sm:$0xff]  }
 0xdd7   : > { %5248 = vmatpush1.bf16.msra.mxu1 %v9135_v54  ;;  %v9162_v54 = vld [vmem:[%s12034_s18 + $0x284] ss:$8 sps:$4 sm:$0xff]  }
 0xdd8   : > { %5249 = vmatprep.subr.bf16.mxu1 %v9136_v28  ;;  %v9163_v28 = vld [vmem:[%s12034_s18 + $0x280] ss:$8 sps:$4 sm:$0xff]  }
 0xddb   : > { %5250 = vmatpush1.bf16.msra.mxu1 %v9137_v5  ;;  %v9164_v5 = vld [vmem:[%s12034_s18 + $0x294] ss:$8 sps:$4 sm:$0xff]  }
 0xddc   : > { %5251 = vmatprep.subr.bf16.mxu1 %v9138_v9  ;;  %v9165_v9 = vld [vmem:[%s12034_s18 + $0x290] ss:$8 sps:$4 sm:$0xff]  }
 0xddf   : > { %5252 = vmatpush1.bf16.msra.mxu1 %v9139_v35  ;;  %v9166_v35 = vld [vmem:[%s12034_s18 + $0x2a4] ss:$8 sps:$4 sm:$0xff]  }
 0xde0   : > { %5253 = vmatprep.subr.bf16.mxu1 %v9140_v39  ;;  %v9167_v39 = vld [vmem:[%s12034_s18 + $0x2a0] ss:$8 sps:$4 sm:$0xff]  }
 0xde3   : > { %5254 = vmatpush1.bf16.msra.mxu1 %v9141_v63  ;;  %v9168_v63 = vld [vmem:[%s12034_s18 + $0x2b4] ss:$8 sps:$4 sm:$0xff]  }
 0xde4   : > { %5255 = vmatprep.subr.bf16.mxu1 %v9142_v48  ;;  %v9169_v48 = vld [vmem:[%s12034_s18 + $0x2b0] ss:$8 sps:$4 sm:$0xff]  }
 0xde7   : > { %5256 = vmatpush1.bf16.msra.mxu1 %v9143_v3  ;;  %v9170_v3 = vld [vmem:[%s12034_s18 + $0x2c4] ss:$8 sps:$4 sm:$0xff]  }
 0xde8   : > { %5257 = vmatprep.subr.bf16.mxu1 %v9144_v29  ;;  %v9171_v29 = vld [vmem:[%s12034_s18 + $0x2c0] ss:$8 sps:$4 sm:$0xff]  }
 0xdeb   : > { %5258 = vmatpush1.bf16.msra.mxu1 %v9145_v4  ;;  %v9172_v4 = vld [vmem:[%s12034_s18 + $0x2d4] ss:$8 sps:$4 sm:$0xff]  }
 0xdee   : > { %5260 = vmatmul.mubr.bf16.vlgmr.msra.gmra.mrb[80].mxu1 %v11165_v34 }
 0xdef   : > { %5269 = vmatprep.mubr.bf16.mxu1 %v11183_v17 }
 0xdf6   : > { %5270 = vmatmul.mubr.bf16.gmra.mrb[84].mxu1 %v11178_v60 }
 0xdf7   : > { %5765 = vmatprep.mubr.bf16.mxu1 %v9186_v0 }
 0xe81   : > { %v5199_v46 = vpop.f32.mrb[72].mxu1 }
 0xe82   : > { %v5201_v36 = vpop.f32.mrb[73].mxu1 }
 0xe83   : > { %v5203_v52 = vpop.f32.mrb[74].mxu1 }
 0xe84   : > { %v5218_v38 = vpack.c.bf16 %v5203_v52, %v5199_v46  ;;  %v5205_v8 = vpop.f32.mrb[75].mxu1  ;;  %v9173_v46 = vld [vmem:[%s12034_s18 + $0x2d0] ss:$8 sps:$4 sm:$0xff]   ;;  %v9175_v52 = vld [vmem:[%s12034_s18 + $0x2e0] ss:$8 sps:$4 sm:$0xff]  }
 0xe85   : > { %v5219_v53 = vpack.c.bf16 %v5205_v8, %v5201_v36  ;;  %v9174_v36 = vld [vmem:[%s12034_s18 + $0x2e4] ss:$8 sps:$4 sm:$0xff]   ;;  %v9177_v8 = vld [vmem:[%s12034_s18 + $0x2f0] ss:$8 sps:$4 sm:$0xff]  }
 0xe89   : > { %v5209_v11 = vpop.f32.mrb[76].mxu1 }
 0xe8a   : > { %v5211_v37 = vpop.f32.mrb[77].mxu1 }
 0xe8b   : > { %v5213_v57 = vpop.f32.mrb[78].mxu1 }
 0xe8c   : > { %v5220_v58 = vpack.c.bf16 %v5213_v57, %v5209_v11  ;;  %v5215_v40 = vpop.f32.mrb[79].mxu1 }
 0xe8d   : > { %v5221_v6 = vpack.c.bf16 %v5215_v40, %v5211_v37 }
 0xec1   : > { %v5261_v30 = vpop.f32.mrb[80].mxu1 }
 0xec2   : > { %v5263_v14 = vpop.f32.mrb[81].mxu1 }
 0xec3   : > { %v5265_v55 = vpop.f32.mrb[82].mxu1 }
 0xec4   : > { %v5280_v23 = vpack.c.bf16 %v5265_v55, %v5261_v30  ;;  %v5267_v33 = vpop.f32.mrb[83].mxu1 }
 0xec5   : > { %v5281_v13 = vpack.c.bf16 %v5267_v33, %v5263_v14  ;;  %v5574_v33 = vpop.permute.xlu1 %5573 }
 0xec7   : > { %5305 = vmatprep.subr.bf16.mxu0 %v5281_v13 }
 0xec8   : > { %5306 = vmatpush1.bf16.msra.mxu0 %v5280_v23 }
 0xec9   : > { %v5271_v1 = vpop.f32.mrb[84].mxu1 }
 0xeca   : > { %v5273_v59 = vpop.f32.mrb[85].mxu1 }
 0xecb   : > { %v5275_v44 = vpop.f32.mrb[86].mxu1 }
 0xecc   : > { %v5282_v43 = vpack.c.bf16 %v5275_v44, %v5271_v1  ;;  %v5277_v15 = vpop.f32.mrb[87].mxu1  ;;  %v5579_v44 = vpop.permute.xlu0 %5578 }
 0xecd   : > { %v5283_v16 = vpack.c.bf16 %v5277_v15, %v5273_v59 }
 0xecf   : > { %5307 = vmatprep.subr.bf16.mxu0 %v5283_v16 }
 0xed0   : > { %5308 = vmatpush1.bf16.msra.mxu0 %v5282_v43 }
 0xed1   : > { %5374 = vmatprep.subr.bf16.mxu0 %v5219_v53 }
 0xed3   : > { %7716 = vmatmul.mubr.msk.bf16.vlgmr.msra.gmra.mrb[80].mxu0 %vm602_vm0, %v8768_v21 }
 0xed4   : > { %5375 = vmatpush1.bf16.msra.mxu0 %v5218_v38  ;;  %5347 = vmatprep.mubr.bf16.mxu0 %v9186_v0  ;;  %v9176_v38 = vld [vmem:[%s12034_s18 + $0x2f4] ss:$8 sps:$4 sm:$0xff]  }
 0xed5   : > { %5376 = vmatprep.subr.bf16.mxu0 %v5221_v6 }
 0xed8   : > { %5377 = vmatpush1.bf16.msra.mxu0 %v5220_v58 }
 0xed9   : > { %5427 = vmatprep.subr.bf16.mxu0 %v9146_v20 }
 0xedb   : > { %7717 = vmatmul.mubr.msk.bf16.gmra.mrb[84].mxu0 %vm602_vm0, %v8769_v7 }
 0xedc   : > { %5406 = vmatprep.mubr.bf16.mxu0 %v9186_v0 }
 0xee3   : > { %7720 = vmatmul.mubr.msk.bf16.vlgmr.msra.gmra.mrb[80].mxu0 %vm602_vm0, %v8770_v26 }
 0xee4   : > { %5428 = vmatpush1.bf16.msra.mxu0 %v9147_v24  ;;  %5416 = vmatprep.mubr.bf16.mxu0 %v9186_v0 }
 0xee5   : > { %5429 = vmatprep.subr.bf16.mxu0 %v9148_v61 }
 0xee8   : > { %5430 = vmatpush1.bf16.msra.mxu0 %v9149_v31 }
 0xee9   : > { %5431 = vmatprep.subr.bf16.mxu0 %v9150_v42 }
 0xeeb   : > { %7721 = vmatmul.mubr.msk.bf16.gmra.mrb[84].mxu0 %vm602_vm0, %v8771_v27  ;;  %v5584_v27 = vpop.permute.xlu1 %5583 }
 0xeec   : > { %5432 = vmatpush1.bf16.msra.mxu0 %v9151_v32  ;;  %5459 = vmatprep.mubr.bf16.mxu0 %v11168_v12  ;;  %v9156_v12 = vld [vmem:[%s12034_s18 + $0x254] ss:$8 sps:$4 sm:$0xff]  }
 0xeed   : > { %5433 = vmatprep.subr.bf16.mxu0 %v9152_v41 }
 0xef0   : > { %5434 = vmatpush1.bf16.msra.mxu0 %v9153_v56 }
 0xef1   : > { %5435 = vmatprep.subr.bf16.mxu0 %v9154_v62  ;;  %v5589_v62 = vpop.permute.xlu0 %5588 }
 0xef4   : > { %5436 = vmatpush1.bf16.msra.mxu0 %v9155_v51 }
 0xef5   : > { %5437 = vmatprep.subr.bf16.mxu0 %v9156_v12 }
 0xef8   : > { %5438 = vmatpush1.bf16.msra.mxu0 %v9157_v2 }
 0xef9   : > { %5439 = vmatprep.subr.bf16.mxu0 %v9158_v10 }
 0xefc   : > { %5440 = vmatpush1.bf16.msra.mxu0 %v9159_v45 }
 0xefd   : > { %5441 = vmatprep.subr.bf16.mxu0 %v9160_v47 }
 0xf00   : > { %5442 = vmatpush1.bf16.msra.mxu0 %v9161_v22 }
 0xf01   : > { %5443 = vmatprep.subr.bf16.mxu0 %v9162_v54 }
 0xf04   : > { %5444 = vmatpush1.bf16.msra.mxu0 %v9163_v28 }
 0xf05   : > { %5445 = vmatprep.subr.bf16.mxu0 %v9164_v5 }
 0xf08   : > { %5446 = vmatpush1.bf16.msra.mxu0 %v9165_v9 }
 0xf09   : > { %5447 = vmatprep.subr.bf16.mxu0 %v9166_v35  ;;  %v8774_v35 = vld [vmem:[%s12020_s10 + $0xe0] sm:$0xff]  }
 0xf0c   : > { %5448 = vmatpush1.bf16.msra.mxu0 %v9167_v39  ;;  %v8775_v39 = vld [vmem:[%s12020_s10 + $0xe8] sm:$0xff]  }
 0xf0d   : > { %5449 = vmatprep.subr.bf16.mxu0 %v9168_v63  ;;  %v7786_v63 = vld [vmem:[%s12021_s11 + $0xa0] sm:$0xff] }
 0xf10   : > { %5450 = vmatpush1.bf16.msra.mxu0 %v9169_v48  ;;  %v8776_v48 = vld [vmem:[%s12020_s10 + $0xf0] sm:$0xff]  }
 0xf11   : > { %5451 = vmatprep.subr.bf16.mxu0 %v9170_v3  ;;  %v7787_v3 = vld [vmem:[%s12021_s11 + $0xa8] sm:$0xff] }
 0xf14   : > { %5452 = vmatpush1.bf16.msra.mxu0 %v9171_v29  ;;  %v7788_v29 = vld [vmem:[%s12021_s11 + $0xb0] sm:$0xff] }
 0xf15   : > { %5453 = vmatprep.subr.bf16.mxu0 %v9172_v4  ;;  %v7789_v4 = vld [vmem:[%s12021_s11 + $0xb8] sm:$0xff] }
 0xf18   : > { %5454 = vmatpush1.bf16.msra.mxu0 %v9173_v46  ;;  %v7782_v46 = vld [vmem:[%s12021_s11 + $0x80] sm:$0xff] }
 0xf19   : > { %5455 = vmatprep.subr.bf16.mxu0 %v9174_v36  ;;  %v8777_v36 = vld [vmem:[%s12020_s10 + $0xf8] sm:$0xff]  }
 0xf1c   : > { %5456 = vmatpush1.bf16.msra.mxu0 %v9175_v52  ;;  %v7783_v52 = vld [vmem:[%s12021_s11 + $0x88] sm:$0xff] }
 0xf1d   : > { %5457 = vmatprep.subr.bf16.mxu0 %v9176_v38  ;;  %v7784_v38 = vld [vmem:[%s12021_s11 + $0x90] sm:$0xff] }
 0xf20   : > { %5458 = vmatpush1.bf16.msra.mxu0 %v9177_v8  ;;  %v7785_v8 = vld [vmem:[%s12021_s11 + $0x98] sm:$0xff] }
 0xf23   : > { %5460 = vmatmul.mubr.bf16.vlgmr.msra.gmra.mrb[88].mxu0 %v11165_v34 }
 0xf24   : > { %5469 = vmatprep.mubr.bf16.mxu0 %v11183_v17  ;;  %v8773_v17 = vld [vmem:[%s12018_s8 + $0x88] sm:$0xff]  }
 0xf2b   : > { %5470 = vmatmul.mubr.bf16.gmra.mrb[92].mxu0 %v11178_v60  ;;  %v8772_v60 = vld [vmem:[%s12018_s8 + $0x80] sm:$0xff]  }
 0xf2c   : > { %5537 = vmatprep.mubr.bf16.mxu0 %v9186_v0 }
 0xff6   : > { %v5461_v53 = vpop.f32.mrb[88].mxu0 }
 0xff7   : > { %v5463_v11 = vpop.f32.mrb[89].mxu0 }
 0xff8   : > { %v5465_v37 = vpop.f32.mrb[90].mxu0 }
 0xff9   : > { %v5480_v57 = vpack.c.bf16 %v5465_v37, %v5461_v53  ;;  %v5467_v58 = vpop.f32.mrb[91].mxu0  ;;  %v7100_v53 = vld [vmem:[%s12026_s16] sm:$0xff] }
 0xffa   : > { %v5481_v40 = vpack.c.bf16 %v5467_v58, %v5463_v11  ;;  %v7101_v11 = vld [vmem:[%s12026_s16 + $0x8] sm:$0xf] }
 0xffc   : > { %5505 = vmatprep.subr.bf16.mxu0 %v5481_v40 }
 0xffd   : > { %5506 = vmatpush1.bf16.msra.mxu0 %v5480_v57 }
 0xffe   : > { %v5471_v6 = vpop.f32.mrb[92].mxu0 }
 0xfff   : > { %v5473_v30 = vpop.f32.mrb[93].mxu0 }
0x1000   : > { %v5475_v14 = vpop.f32.mrb[94].mxu0 }
0x1001   : > { %v5482_v55 = vpack.c.bf16 %v5475_v14, %v5471_v6  ;;  %v5477_v23 = vpop.f32.mrb[95].mxu0 }
0x1002   : > { %v5483_v34 = vpack.c.bf16 %v5477_v23, %v5473_v30 }
0x1004   : > { %5507 = vmatprep.subr.bf16.mxu0 %v5483_v34 }
0x1005   : > { %5508 = vmatpush1.bf16.msra.mxu0 %v5482_v55 }
0x1008   : > { %7728 = vmatmul.mubr.msk.bf16.vlgmr.msra.gmra.mrb[80].mxu0 %vm602_vm0, %v8772_v60 }
0x1009   : > { %5547 = vmatprep.mubr.bf16.mxu0 %v9186_v0 }
0x1010   : > { %7729 = vmatmul.mubr.msk.bf16.gmra.mrb[84].mxu0 %vm602_vm0, %v8773_v17 }
0x1011   : > { %6236 = vmatprep.mubr.bf16.mxu0 %v9186_v0 }
0x10db   : > { %v5539_v13 = vpop.f32.mrb[80].mxu0 }
0x10dc   : > { %v5591_v1 = vadd.f32 %v5574_v33, %v5539_v13  ;;  %v5541_v59 = vpop.f32.mrb[81].mxu0 }
0x10dd   : > { %v5592_v43 = vadd.f32 %v5574_v33, %v5541_v59  ;;  %v5543_v15 = vpop.f32.mrb[82].mxu0 }
0x10de   : > { %v11406_v16 = vmax.f32 %v5591_v1, 0.0  ;;  %v5593_v21 = vadd.f32 %v5579_v44, %v5543_v15  ;;  %v5545_v7 = vpop.f32.mrb[83].mxu0 }
0x10df   : > { %v5594_v20 = vadd.f32 %v5579_v44, %v5545_v7  ;;  %v11412_v24 = vmax.f32 %v5592_v43, 0.0 }
0x10e0   : > { %v11408_v26 = vmax.f32 %v5593_v21, 0.0  ;;  %5611 = vrot.lane.b32.xlu1 %v11406_v16, %s9187_s30 }
0x10e1   : > { %v11414_v61 = vmax.f32 %v5594_v20, 0.0 }
0x10e2   : > { %5613 = vrot.lane.b32.xlu0 %v11408_v26, %s9187_s30  ;;  %v5607_v56 = vpack.c.bf16 %v11408_v26, %v11406_v16 }
0x10e3   : > { %v5549_v31 = vpop.f32.mrb[84].mxu0  ;;  %v5608_v42 = vpack.c.bf16 %v11414_v61, %v11412_v24 }
0x10e4   : > { %v5595_v32 = vadd.f32 %v5584_v27, %v5549_v31  ;;  %5619 = vrot.lane.b32.xlu1 %v11412_v24, %s9187_s30  ;;  %v5551_v41 = vpop.f32.mrb[85].mxu0 }
0x10e5   : > { %v5596_v51 = vadd.f32 %v5584_v27, %v5551_v41  ;;  %v5553_v12 = vpop.f32.mrb[86].mxu0  ;;  %5733 = vmatprep.subr.bf16.mxu1 %v5608_v42 }
0x10e6   : > { %v11424_v2 = vmax.f32 %v5595_v32, 0.0  ;;  %v5597_v10 = vadd.f32 %v5589_v62, %v5553_v12  ;;  %5621 = vrot.lane.b32.xlu0 %v11414_v61, %s9187_s30  ;;  %v5555_v45 = vpop.f32.mrb[87].mxu0  ;;  %5734 = vmatpush1.bf16.msra.mxu1 %v5607_v56 }
0x10e7   : > { %v5598_v47 = vadd.f32 %v5589_v62, %v5555_v45  ;;  %v11432_v54 = vmax.f32 %v5596_v51, 0.0 }
0x10e8   : > { %v11428_v22 = vmax.f32 %v5597_v10, 0.0  ;;  %5615 = vrot.lane.b32.xlu1 %v11424_v2, %s9187_s30  ;;  %v8778_v10 = vld [vmem:[%s12020_s10 + $0xc0] sm:$0xff]  }
0x10e9   : > { %v11434_v28 = vmax.f32 %v5598_v47, 0.0 }
0x10ea   : > { %5617 = vrot.lane.b32.xlu0 %v11428_v22, %s9187_s30  ;;  %v5609_v9 = vpack.c.bf16 %v11428_v22, %v11424_v2 }
0x10eb   : > { %v5610_v5 = vpack.c.bf16 %v11434_v28, %v11432_v54 }
0x10ec   : > { %5623 = vrot.lane.b32.xlu1 %v11432_v54, %s9187_s30 }
0x10ed   : > { %5735 = vmatprep.subr.bf16.mxu1 %v5610_v5 }
0x10ee   : > { %5625 = vrot.lane.b32.xlu0 %v11434_v28, %s9187_s30  ;;  %5736 = vmatpush1.bf16.msra.mxu1 %v5609_v9 }
0x10f0   : > { %5647 = vrot.lane.b32.xlu1 %v11406_v16, %s12035_s27 }
0x10f1   : > { %7754 = vmatmul.mubr.msk.bf16.vlgmr.msra.gmra.mrb[88].mxu1 %vm602_vm0, %v8774_v35 }
0x10f2   : > { %5649 = vrot.lane.b32.xlu0 %v11408_v26, %s12035_s27  ;;  %5775 = vmatprep.mubr.bf16.mxu1 %v9186_v0 }
0x10f4   : > { %5655 = vrot.lane.b32.xlu1 %v11412_v24, %s12035_s27 }
0x10f6   : > { %5657 = vrot.lane.b32.xlu0 %v11414_v61, %s12035_s27 }
0x10f8   : > { %5651 = vrot.lane.b32.xlu1 %v11424_v2, %s12035_s27 }
0x10f9   : > { %7755 = vmatmul.mubr.msk.bf16.gmra.mrb[92].mxu1 %vm602_vm0, %v8775_v39 }
0x10fa   : > { %5653 = vrot.lane.b32.xlu0 %v11428_v22, %s12035_s27  ;;  %5785 = vmatprep.mubr.bf16.mxu1 %v9186_v0 }
0x10fc   : > { %5659 = vrot.lane.b32.xlu1 %v11432_v54, %s12035_s27 }
0x10fe   : > { %5661 = vrot.lane.b32.xlu0 %v11434_v28, %s12035_s27 }
0x1100   : > { %6072 = vperm.xlu1 %8545, %v7786_v63  }
0x1101   : > { %7756 = vmatmul.mubr.msk.bf16.gmra.mrb[96].mxu1 %vm602_vm0, %v8776_v48 }
0x1102   : > { %6077 = vperm.xlu0 %8544, %v7787_v3   ;;  %5795 = vmatprep.mubr.bf16.mxu1 %v9186_v0 }
0x1104   : > { %6082 = vperm.xlu1 %8545, %v7788_v29  }
0x1106   : > { %6087 = vperm.xlu0 %8544, %v7789_v4  }
0x1108   : > { %6052 = vperm.xlu1 %8545, %v7782_v46  }
0x1109   : > { %7757 = vmatmul.mubr.msk.bf16.gmra.mrb[100].mxu1 %vm602_vm0, %v8777_v36  ;;  %v8779_v36 = vld [vmem:[%s12020_s10 + $0xc8] sm:$0xff]  }
0x110a   : > { %6057 = vperm.xlu0 %8544, %v7783_v52   ;;  %5870 = vmatprep.mubr.bf16.mxu1 %v9186_v0 }
0x110c   : > { %6062 = vperm.xlu1 %8545, %v7784_v38  }
0x110e   : > { %6067 = vperm.xlu0 %8544, %v7785_v8  }
0x1110   : > { %7104 = vperm.xlu1 %8545, %v7100_v53  }
0x1112   : > { %7109 = vperm.xlu0 %8544, %v7101_v11  }
0x1152   : > { %v5612_v37 = vpop.permute.xlu1 %5611 }
0x1154   : > { %v5614_v57 = vpop.permute.xlu0 %5613 }
0x1156   : > { %v5620_v58 = vpop.permute.xlu1 %5619 }
0x1157   : > { %v5627_v40 = vsel %vm680_vm1, %v5612_v37, %v5620_v58  ;;  %v5631_v6 = vsel %vm680_vm1, %v5620_v58, %v5612_v37 }
0x1158   : > { %v5622_v30 = vpop.permute.xlu0 %5621  ;;  %v5635_v23 = vmul.f32 %v5631_v6, %v9420_v49  ;;  %v5636_v34 = vmul.f32 %v5627_v40, %v9424_v50 }
0x1159   : > { %v5628_v14 = vsel %vm680_vm1, %v5614_v57, %v5622_v30  ;;  %v5632_v55 = vsel %vm680_vm1, %v5622_v30, %v5614_v57 }
0x115a   : > { %v5637_v60 = vmul.f32 %v5632_v55, %v9420_v49  ;;  %v5638_v17 = vmul.f32 %v5628_v14, %v9424_v50  ;;  %v5616_v33 = vpop.permute.xlu1 %5615  ;;  %v8783_v14 = vld [vmem:[%s12020_s10 + $0x108] sm:$0xff]   ;;  %v8784_v55 = vld [vmem:[%s12020_s10 + $0x110] sm:$0xff]  }
0x115c   : > { %v5643_v13 = vpack.c.bf16 %v5637_v60, %v5635_v23  ;;  %v5618_v1 = vpop.permute.xlu0 %5617  ;;  %v5644_v59 = vpack.c.bf16 %v5638_v17, %v5636_v34  ;;  %v8785_v23 = vld [vmem:[%s12020_s10 + $0x118] sm:$0xff]   ;;  %v6307_v34 = vld [vmem:[%s12024_s14 + $0x80] sm:$0xff]  ;;  %v6308_v60 = vld [vmem:[%s12024_s14 + $0x88] sm:$0xff] }
0x115d   : > { %v6291_v17 = vld [vmem:[%s12024_s14] sm:$0xff] }
0x115e   : > { %v5624_v44 = vpop.permute.xlu1 %5623  ;;  %5838 = vmatprep.subr.bf16.mxu1 %v5644_v59  ;;  %v6310_v59 = vld [vmem:[%s12024_s14 + $0x98] sm:$0xff] }
0x115f   : > { %v5629_v43 = vsel %vm680_vm1, %v5616_v33, %v5624_v44  ;;  %v5633_v15 = vsel %vm680_vm1, %v5624_v44, %v5616_v33  ;;  %5839 = vmatpush1.bf16.msra.mxu1 %v5643_v13  ;;  %v11608_v33 = vpack.c.bf16 %v6308_v60, %v6307_v34  ;;  %v6292_v13 = vld [vmem:[%s12024_s14 + $0x8] sm:$0xff] }
0x1160   : > { %v5626_v21 = vpop.permute.xlu0 %5625  ;;  %v5639_v27 = vmul.f32 %v5633_v15, %v9420_v49  ;;  %v5640_v31 = vmul.f32 %v5629_v43, %v9424_v50  ;;  %v11619_v44 = vpack.c.bf16 %v6292_v13, %v6291_v17  ;;  %v6293_v15 = vld [vmem:[%s12024_s14 + $0x10] sm:$0xff] }
0x1161   : > { %v5630_v7 = vsel %vm680_vm1, %v5618_v1, %v5626_v21  ;;  %v5634_v20 = vsel %vm680_vm1, %v5626_v21, %v5618_v1  ;;  %v6309_v1 = vld [vmem:[%s12024_s14 + $0x90] sm:$0xff]  ;;  %v6294_v21 = vld [vmem:[%s12024_s14 + $0x18] sm:$0xff] }
0x1162   : > { %v5641_v42 = vmul.f32 %v5634_v20, %v9420_v49  ;;  %v5642_v32 = vmul.f32 %v5630_v7, %v9424_v50  ;;  %v5648_v41 = vpop.permute.xlu1 %5647  ;;  %v11621_v43 = vpack.c.bf16 %v6310_v59, %v6309_v1  ;;  %v6311_v7 = vld [vmem:[%s12024_s14 + $0xa0] sm:$0xff]  ;;  %v6312_v20 = vld [vmem:[%s12024_s14 + $0xa8] sm:$0xff] }
0x1164   : > { %v5645_v56 = vpack.c.bf16 %v5641_v42, %v5639_v27  ;;  %v5650_v62 = vpop.permute.xlu0 %5649  ;;  %v5646_v51 = vpack.c.bf16 %v5642_v32, %v5640_v31  ;;  %v11637_v27 = vpack.c.bf16 %v6294_v21, %v6293_v15  ;;  %v11640_v31 = vpack.c.bf16 %v6312_v20, %v6311_v7  ;;  %v6295_v42 = vld [vmem:[%s12024_s14 + $0x20] sm:$0xff]  ;;  %v6296_v32 = vld [vmem:[%s12024_s14 + $0x28] sm:$0xff] }
0x1166   : > { %v5656_v12 = vpop.permute.xlu1 %5655  ;;  %5840 = vmatprep.subr.bf16.mxu1 %v5646_v51 }
0x1167   : > { %v5663_v45 = vsel %vm728_vm2, %v5648_v41, %v5656_v12  ;;  %v5667_v47 = vsel %vm728_vm2, %v5656_v12, %v5648_v41  ;;  %5841 = vmatpush1.bf16.msra.mxu1 %v5645_v56  ;;  %v6313_v41 = vld [vmem:[%s12024_s14 + $0xb0] sm:$0xff]  ;;  %v6314_v56 = vld [vmem:[%s12024_s14 + $0xb8] sm:$0xff] }
0x1168   : > { %v5658_v49 = vpop.permute.xlu0 %5657  ;;  %v5671_v9 = vmul.f32 %v5663_v45, %v9459_v18  ;;  %v5672_v35 = vmul.f32 %v5667_v47, %v9463_v19  ;;  %v11658_v51 = vpack.c.bf16 %v6314_v56, %v6313_v41  ;;  %v6297_v12 = vld [vmem:[%s12024_s14 + $0x30] sm:$0xff]  ;;  %v6315_v45 = vld [vmem:[%s12024_s14 + $0xc0] sm:$0xff]  ;;  %v6316_v47 = vld [vmem:[%s12024_s14 + $0xc8] sm:$0xff] }
0x1169   : > { %v5664_v50 = vsel %vm728_vm2, %v5650_v62, %v5658_v49  ;;  %v5668_v5 = vsel %vm728_vm2, %v5658_v49, %v5650_v62  ;;  %v11655_v62 = vpack.c.bf16 %v6296_v32, %v6295_v42 }
0x116a   : > { %v5673_v39 = vmul.f32 %v5664_v50, %v9459_v18  ;;  %v5674_v63 = vmul.f32 %v5668_v5, %v9463_v19  ;;  %v5652_v48 = vpop.permute.xlu1 %5651  ;;  %7762 = vmatmul.mubr.msk.bf16.vlgmr.msra.gmra.mrb[88].mxu1 %vm602_vm0, %v8778_v10  ;;  %v6298_v10 = vld [vmem:[%s12024_s14 + $0x38] sm:$0xff]  ;;  %v11676_v50 = vpack.c.bf16 %v6316_v47, %v6315_v45  ;;  %v6299_v5 = vld [vmem:[%s12024_s14 + $0x40] sm:$0xff] }
0x116b   : > { %5880 = vmatprep.mubr.bf16.mxu1 %v9186_v0  ;;  %v11673_v49 = vpack.c.bf16 %v6298_v10, %v6297_v12 }
0x116c   : > { %v5679_v3 = vpack.c.bf16 %v5673_v39, %v5671_v9  ;;  %v5654_v29 = vpop.permute.xlu0 %5653  ;;  %v5680_v4 = vpack.c.bf16 %v5674_v63, %v5672_v35  ;;  %v6300_v9 = vld [vmem:[%s12024_s14 + $0x48] sm:$0xff]  ;;  %v6317_v35 = vld [vmem:[%s12024_s14 + $0xd0] sm:$0xff]  ;;  %v6318_v39 = vld [vmem:[%s12024_s14 + $0xd8] sm:$0xff] }
0x116d   : > { %v11691_v63 = vpack.c.bf16 %v6300_v9, %v6299_v5 }
0x116e   : > { %v5660_v46 = vpop.permute.xlu1 %5659  ;;  %5952 = vmatprep.subr.bf16.mxu1 %v5680_v4  ;;  %v6319_v4 = vld [vmem:[%s12024_s14 + $0xe0] sm:$0xff] }
0x116f   : > { %v5665_v52 = vsel %vm728_vm2, %v5652_v48, %v5660_v46  ;;  %v5669_v38 = vsel %vm728_vm2, %v5660_v46, %v5652_v48  ;;  %5953 = vmatpush1.bf16.msra.mxu1 %v5679_v3  ;;  %v11694_v48 = vpack.c.bf16 %v6318_v39, %v6317_v35  ;;  %v6301_v3 = vld [vmem:[%s12024_s14 + $0x50] sm:$0xff]  ;;  %v6320_v46 = vld [vmem:[%s12024_s14 + $0xe8] sm:$0xff] }
0x1170   : > { %v5662_v8 = vpop.permute.xlu0 %5661  ;;  %v5675_v37 = vmul.f32 %v5665_v52, %v9459_v18  ;;  %v5676_v57 = vmul.f32 %v5669_v38, %v9463_v19  ;;  %v11712_v52 = vpack.c.bf16 %v6320_v46, %v6319_v4  ;;  %v6303_v38 = vld [vmem:[%s12024_s14 + $0x60] sm:$0xff] }
0x1171   : > { %v5666_v53 = vsel %vm728_vm2, %v5654_v29, %v5662_v8  ;;  %v5670_v11 = vsel %vm728_vm2, %v5662_v8, %v5654_v29  ;;  %v6302_v29 = vld [vmem:[%s12024_s14 + $0x58] sm:$0xff]  ;;  %v6304_v8 = vld [vmem:[%s12024_s14 + $0x68] sm:$0xff] }
0x1172   : > { %v5677_v58 = vmul.f32 %v5666_v53, %v9459_v18  ;;  %v5678_v40 = vmul.f32 %v5670_v11, %v9463_v19  ;;  %7763 = vmatmul.mubr.msk.bf16.gmra.mrb[92].mxu1 %vm602_vm0, %v8779_v36  ;;  %v8781_v18 = vld [vmem:[%s12020_s10 + $0xd8] sm:$0xff]   ;;  %v8782_v19 = vld [vmem:[%s12020_s10 + $0x100] sm:$0xff]   ;;  %v11709_v36 = vpack.c.bf16 %v6302_v29, %v6301_v3  ;;  %v11721_v11 = vpack.c.bf16 %v6304_v8, %v6303_v38 }
0x1173   : > { %5890 = vmatprep.mubr.bf16.mxu1 %v9186_v0 }
0x1174   : > { %v5681_v6 = vpack.c.bf16 %v5677_v58, %v5675_v37  ;;  %v5682_v30 = vpack.c.bf16 %v5678_v40, %v5676_v57 }
0x1176   : > { %5954 = vmatprep.subr.bf16.mxu1 %v5682_v30 }
0x1177   : > { %5955 = vmatpush1.bf16.msra.mxu1 %v5681_v6 }
0x1178   : > { %8086 = vmatprep.subr.bf16.mxu1 %v11608_v33 }
0x117a   : > { %7764 = vmatmul.mubr.msk.bf16.gmra.mrb[96].mxu1 %vm602_vm0, %v8780_v25 }
0x117b   : > { %5900 = vmatprep.mubr.bf16.mxu1 %v9186_v0 }
0x1182   : > { %7765 = vmatmul.mubr.msk.bf16.gmra.mrb[100].mxu1 %vm602_vm0, %v8781_v18  ;;  %v6073_v18 = vpop.permute.xlu1 %6072 }
0x1183   : > { %5984 = vmatprep.mubr.bf16.mxu1 %v9186_v0 }
0x1186   : > { %v6083_v20 = vpop.permute.xlu1 %6082 }
0x118a   : > { %7778 = vmatmul.mubr.msk.bf16.vlgmr.msra.gmra.mrb[88].mxu1 %vm602_vm0, %v8782_v19 }
0x118b   : > { %5994 = vmatprep.mubr.bf16.mxu1 %v9186_v0  ;;  %8088 = vmatpush3.bf16.msra.mxu1 %v11619_v44 }
0x118c   : > { %8090 = vmatprep.subr.bf16.mxu1 %v11621_v43 }
0x118f   : > { %8092 = vmatpush3.bf16.msra.mxu1 %v11637_v27 }
0x1190   : > { %8094 = vmatprep.subr.bf16.mxu1 %v11640_v31 }
0x1192   : > { %7779 = vmatmul.mubr.msk.bf16.gmra.mrb[92].mxu1 %vm602_vm0, %v8783_v14 }
0x1193   : > { %6004 = vmatprep.mubr.bf16.mxu1 %v9186_v0  ;;  %8096 = vmatpush3.bf16.msra.mxu1 %v11655_v62 }
0x1194   : > { %8098 = vmatprep.subr.bf16.mxu1 %v11658_v51 }
0x1197   : > { %8100 = vmatpush3.bf16.msra.mxu1 %v11673_v49 }
0x1198   : > { %8102 = vmatprep.subr.bf16.mxu1 %v11676_v50 }
0x119a   : > { %7780 = vmatmul.mubr.msk.bf16.gmra.mrb[96].mxu1 %vm602_vm0, %v8784_v55 }
0x119b   : > { %6014 = vmatprep.mubr.bf16.mxu1 %v9186_v0  ;;  %8104 = vmatpush3.bf16.msra.mxu1 %v11691_v63 }
0x119c   : > { %8106 = vmatprep.subr.bf16.mxu1 %v11694_v48 }
0x119f   : > { %8108 = vmatpush3.bf16.msra.mxu1 %v11709_v36 }
0x11a0   : > { %8110 = vmatprep.subr.bf16.mxu1 %v11712_v52 }
0x11a2   : > { %7781 = vmatmul.mubr.msk.bf16.gmra.mrb[100].mxu1 %vm602_vm0, %v8785_v23  ;;  %v6078_v23 = vpop.permute.xlu0 %6077 }
0x11a3   : > { %8112 = vmatpush3.bf16.msra.mxu1 %v11721_v11 }
0x11a6   : > { %v6088_v56 = vpop.permute.xlu0 %6087 }
0x125d   : > { %v5986_v53 = vpop.f32.mrb[88].mxu1 }
0x125e   : > { %v5988_v37 = vpop.f32.mrb[89].mxu1 }
0x125f   : > { %v11724_v57 = vpop.f32.mrb[90].mxu1 }
0x1260   : > { %v11726_v58 = vpop.f32.mrb[91].mxu1 }
0x1265   : > { %v11729_v40 = vpop.f32.mrb[92].mxu1 }
0x1266   : > { %v11731_v6 = vpop.f32.mrb[93].mxu1 }
0x1267   : > { %v11733_v30 = vpop.f32.mrb[94].mxu1 }
0x1268   : > { %v11735_v25 = vpop.f32.mrb[95].mxu1 }
0x126d   : > { %v6006_v19 = vpop.f32.mrb[96].mxu1 }
0x126e   : > { %v6098_v14 = vadd.f32 %v6073_v18, %v6006_v19  ;;  %v6008_v55 = vpop.f32.mrb[97].mxu1 }
0x126f   : > { %v6099_v34 = vadd.f32 %v6073_v18, %v6008_v55  ;;  %v6010_v60 = vpop.f32.mrb[98].mxu1  ;;  %v6053_v55 = vpop.permute.xlu1 %6052 }
0x1270   : > { %v7790_v17 = vmul.f32 -1.442695, %v6098_v14  ;;  %v6100_v13 = vadd.f32 %v6078_v23, %v6010_v60  ;;  %v6012_v1 = vpop.f32.mrb[99].mxu1 }
0x1271   : > { %v7791_v59 = vmul.f32 -1.442695, %v6099_v34  ;;  %v6101_v15 = vadd.f32 %v6078_v23, %v6012_v1  ;;  %v6090_v34 = vadd.f32 %v6053_v55, %v5986_v53 }
0x1272   : > { %8955 = vpow2.f32 %v7790_v17  ;;  %v7792_v21 = vmul.f32 -1.442695, %v6100_v13  ;;  %v6058_v17 = vpop.permute.xlu0 %6057  ;;  %v6091_v13 = vadd.f32 %v6053_v55, %v5988_v37 }
0x1273   : > { %8957 = vpow2.f32 %v7791_v59  ;;  %v7793_v7 = vmul.f32 -1.442695, %v6101_v15  ;;  %v6092_v15 = vadd.f32 %v6058_v17, %v11724_v57 }
0x1274   : > { %8959 = vpow2.f32 %v7792_v21  ;;  %v6107_v53 = vadd.f32 %v6091_v13, %v11412_v24  ;;  %v6321_v13 = vld [vmem:[%s12024_s14 + $0xf0] sm:$0xff] }
0x1275   : > { %8961 = vpow2.f32 %v7793_v7  ;;  %v6016_v42 = vpop.f32.mrb[100].mxu1  ;;  %v6108_v37 = vadd.f32 %v6092_v15, %v11408_v26  ;;  %v6305_v15 = vld [vmem:[%s12024_s14 + $0x70] sm:$0xff] }
0x1276   : > { %v6102_v32 = vadd.f32 %v6083_v20, %v6016_v42  ;;  %v6018_v41 = vpop.f32.mrb[101].mxu1 }
0x1277   : > { %v6103_v12 = vadd.f32 %v6083_v20, %v6018_v41  ;;  %v6020_v10 = vpop.f32.mrb[102].mxu1  ;;  %v6093_v20 = vadd.f32 %v6058_v17, %v11726_v58  ;;  %v8791_v17 = vld [vmem:[%s12022_s12 + $0x28] sm:$0xff]  }
0x1278   : > { %v7794_v45 = vmul.f32 -1.442695, %v6102_v32  ;;  %v6104_v47 = vadd.f32 %v6088_v56, %v6020_v10  ;;  %v6022_v5 = vpop.f32.mrb[103].mxu1  ;;  %v6106_v32 = vadd.f32 %v6090_v34, %v11406_v16  ;;  %v8789_v34 = vld [vmem:[%s12022_s12 + $0x18] sm:$0xff]  }
0x1279   : > { %v7795_v9 = vmul.f32 -1.442695, %v6103_v12  ;;  %v6105_v35 = vadd.f32 %v6088_v56, %v6022_v5 }
0x127a   : > { %8963 = vpow2.f32 %v7794_v45  ;;  %v7796_v39 = vmul.f32 -1.442695, %v6104_v47  ;;  %v6063_v45 = vpop.permute.xlu1 %6062  ;;  %v6109_v47 = vadd.f32 %v6093_v20, %v11414_v61  ;;  %v6268_v20 = vld [vmem:[%s12023_s13 + $0x8] sm:$0xff] }
0x127b   : > { %8965 = vpow2.f32 %v7795_v9  ;;  %v7797_v3 = vmul.f32 -1.442695, %v6105_v35  ;;  %v6094_v9 = vadd.f32 %v6063_v45, %v11729_v40  ;;  %v6068_v35 = vpop.permute.xlu0 %6067 }
0x127c   : > { %v8956_v29 = vpop.eup %8955  ;;  %8967 = vpow2.f32 %v7796_v39  ;;  %v6095_v39 = vadd.f32 %v6063_v45, %v11731_v6  ;;  %v6096_v24 = vadd.f32 %v6068_v35, %v11733_v30  ;;  %v6097_v26 = vadd.f32 %v6068_v35, %v11735_v25 }
0x127d   : > { %v8958_v4 = vpop.eup %8957  ;;  %v6138_v46 = vadd.f32 1.0, %v8956_v29  ;;  %8969 = vpow2.f32 %v7797_v3 }
0x127e   : > { %v8960_v38 = vpop.eup %8959  ;;  %v6139_v8 = vadd.f32 1.0, %v8958_v4 }
0x127f   : > { %v8962_v18 = vpop.eup %8961  ;;  %8971 = vrcp.f32 %v6138_v46  ;;  %v6140_v19 = vadd.f32 1.0, %v8960_v38  ;;  %v6110_v46 = vadd.f32 %v6094_v9, %v11424_v2  ;;  %v6111_v38 = vadd.f32 %v6095_v39, %v11432_v54  ;;  %v8787_v54 = vld [vmem:[%s12022_s12 + $0x8] sm:$0xff]  }
0x1280   : > { %8973 = vrcp.f32 %v6139_v8  ;;  %v6141_v14 = vadd.f32 1.0, %v8962_v18  ;;  %v6112_v8 = vadd.f32 %v6096_v24, %v11428_v22  ;;  %v6113_v18 = vadd.f32 %v6097_v26, %v11434_v28  ;;  %v8786_v22 = vld [vmem:[%s12022_s12] sm:$0xff]   ;;  %v8788_v28 = vld [vmem:[%s12022_s12 + $0x10] sm:$0xff]  }
0x1281   : > { %8975 = vrcp.f32 %v6140_v19  ;;  %v6273_v26 = vld [vmem:[%s12023_s13 + $0x30] sm:$0xff] }
0x1282   : > { %8977 = vrcp.f32 %v6141_v14 }
0x1284   : > { %v8964_v23 = vpop.eup %8963 }
0x1285   : > { %v8966_v60 = vpop.eup %8965  ;;  %v6142_v1 = vadd.f32 1.0, %v8964_v23 }
0x1286   : > { %v8968_v59 = vpop.eup %8967  ;;  %v6143_v21 = vadd.f32 1.0, %v8966_v60  ;;  %v8790_v60 = vld [vmem:[%s12022_s12 + $0x20] sm:$0xff]  }
0x1287   : > { %v8970_v7 = vpop.eup %8969  ;;  %8979 = vrcp.f32 %v6142_v1  ;;  %v6144_v42 = vadd.f32 1.0, %v8968_v59  ;;  %v6322_v1 = vld [vmem:[%s12024_s14 + $0xf8] sm:$0xff] }
0x1288   : > { %8981 = vrcp.f32 %v6143_v21  ;;  %v6145_v41 = vadd.f32 1.0, %v8970_v7  ;;  %v11816_v59 = vpack.c.bf16 %v6322_v1, %v6321_v13  ;;  %v6306_v21 = vld [vmem:[%s12024_s14 + $0x78] sm:$0xff] }
0x1289   : > { %v8972_v56 = vpop.eup %8971  ;;  %8983 = vrcp.f32 %v6144_v42  ;;  %v11824_v7 = vpack.c.bf16 %v6306_v21, %v6305_v15  ;;  %v7819_v13 = vld [vmem:[%s12023_s13 + $0x78] sm:$0xff] }
0x128a   : > { %v8974_v12 = vpop.eup %8973  ;;  %8985 = vrcp.f32 %v6145_v41  ;;  %v6162_v10 = vmul.f32 %v8972_v56, %v6106_v32  ;;  %8114 = vmatprep.subr.bf16.mxu1 %v11816_v59  ;;  %v6267_v32 = vld [vmem:[%s12023_s13] sm:$0xff]  ;;  %v6270_v56 = vld [vmem:[%s12023_s13 + $0x18] sm:$0xff] }
0x128b   : > { %v8976_v57 = vpop.eup %8975  ;;  %v6163_v58 = vmul.f32 %v8974_v12, %v6107_v53  ;;  %8116 = vmatpush3.bf16.msra.mxu1 %v11824_v7 }
0x128c   : > { %v8978_v5 = vpop.eup %8977  ;;  %v6164_v16 = vmul.f32 %v8976_v57, %v6108_v37 }
0x128d   : > { %v6165_v3 = vmul.f32 %v8978_v5, %v6109_v47  ;;  %v6272_v47 = vld [vmem:[%s12023_s13 + $0x28] sm:$0xff]  ;;  %v6271_v5 = vld [vmem:[%s12023_s13 + $0x20] sm:$0xff] }
0x128e   : > { %v11746_v29 = vpack.c.bf16 %v6164_v16, %v6162_v10  ;;  %v6274_v16 = vld [vmem:[%s12023_s13 + $0x38] sm:$0xff] }
0x128f   : > { %v11749_v4 = vpack.c.bf16 %v6165_v3, %v6163_v58 }
0x1291   : > { %v8980_v61 = vpop.eup %8979  ;;  %6204 = vmatprep.subr.bf16.mxu0 %v11749_v4 }
0x1292   : > { %v8982_v40 = vpop.eup %8981  ;;  %6205 = vmatpush1.bf16.msra.mxu0 %v11746_v29  ;;  %v6166_v6 = vmul.f32 %v8980_v61, %v6110_v46 }
0x1293   : > { %v8984_v30 = vpop.eup %8983  ;;  %v6167_v19 = vmul.f32 %v8982_v40, %v6111_v38  ;;  %v6276_v38 = vld [vmem:[%s12023_s13 + $0x48] sm:$0xff] }
0x1294   : > { %v8986_v25 = vpop.eup %8985  ;;  %v6168_v14 = vmul.f32 %v8984_v30, %v6112_v8  ;;  %v6275_v8 = vld [vmem:[%s12023_s13 + $0x40] sm:$0xff]  ;;  %v6278_v30 = vld [vmem:[%s12023_s13 + $0x58] sm:$0xff] }
0x1295   : > { %v6169_v55 = vmul.f32 %v8986_v25, %v6113_v18 }
0x1296   : > { %v11757_v23 = vpack.c.bf16 %v6168_v14, %v6166_v6 }
0x1297   : > { %v11759_v2 = vpack.c.bf16 %v6169_v55, %v6167_v19  ;;  %v6277_v55 = vld [vmem:[%s12023_s13 + $0x50] sm:$0xff] }
0x1299   : > { %6206 = vmatprep.subr.bf16.mxu0 %v11759_v2 }
0x129a   : > { %6207 = vmatpush1.bf16.msra.mxu0 %v11757_v23 }
0x129b   : > { %6451 = vmatprep.subr.bf16.mxu0 %v11749_v4 }
0x129d   : > { %7801 = vmatmul.mubr.msk.bf16.vlgmr.msra.gmra.mrb[96].mxu0 %vm602_vm0, %v8786_v22 }
0x129e   : > { %6452 = vmatpush1.bf16.msra.mxu0 %v11746_v29  ;;  %6246 = vmatprep.mubr.bf16.mxu0 %v9186_v0 }
0x129f   : > { %6453 = vmatprep.subr.bf16.mxu0 %v11759_v2 }
0x12a2   : > { %6454 = vmatpush1.bf16.msra.mxu0 %v11757_v23 }
0x12a3   : > { %8118 = vmatprep.subr.bf16.mxu0 %v11608_v33 }
0x12a5   : > { %7802 = vmatmul.mubr.msk.bf16.gmra.mrb[100].mxu0 %vm602_vm0, %v8787_v54 }
0x12a6   : > { %6256 = vmatprep.mubr.bf16.mxu0 %v9186_v0 }
0x12ad   : > { %7803 = vmatmul.mubr.msk.bf16.gmra.mrb[104].mxu0 %vm602_vm0, %v8788_v28  ;;  %v7817_v28 = vld [vmem:[%s12023_s13 + $0x68] sm:$0xff] }
0x12ae   : > { %6483 = vmatprep.mubr.bf16.mxu0 %v9186_v0 }
0x12b5   : > { %7813 = vmatmul.mubr.msk.bf16.vlgmr.msra.gmra.mrb[108].mxu0 %vm602_vm0, %v8789_v34 }
0x12b6   : > { %6493 = vmatprep.mubr.bf16.mxu0 %v9186_v0  ;;  %8120 = vmatpush3.bf16.msra.mxu0 %v11619_v44 }
0x12b7   : > { %8122 = vmatprep.subr.bf16.mxu0 %v11621_v43 }
0x12ba   : > { %8124 = vmatpush3.bf16.msra.mxu0 %v11637_v27 }
0x12bb   : > { %8126 = vmatprep.subr.bf16.mxu0 %v11640_v31 }
0x12bd   : > { %7814 = vmatmul.mubr.msk.bf16.gmra.mrb[112].mxu0 %vm602_vm0, %v8790_v60  ;;  %v7816_v60 = vld [vmem:[%s12023_s13 + $0x60] sm:$0xff] }
0x12be   : > { %6503 = vmatprep.mubr.bf16.mxu0 %v9186_v0  ;;  %8128 = vmatpush3.bf16.msra.mxu0 %v11655_v62 }
0x12bf   : > { %8130 = vmatprep.subr.bf16.mxu0 %v11658_v51 }
0x12c2   : > { %8132 = vmatpush3.bf16.msra.mxu0 %v11673_v49 }
0x12c3   : > { %8134 = vmatprep.subr.bf16.mxu0 %v11676_v50 }
0x12c5   : > { %7815 = vmatmul.mubr.msk.bf16.gmra.mrb[116].mxu0 %vm602_vm0, %v8791_v17 }
0x12c6   : > { %8136 = vmatpush3.bf16.msra.mxu0 %v11691_v63 }
0x12c7   : > { %8138 = vmatprep.subr.bf16.mxu0 %v11694_v48 }
0x12ca   : > { %8140 = vmatpush3.bf16.msra.mxu0 %v11709_v36 }
0x12cb   : > { %8142 = vmatprep.subr.bf16.mxu0 %v11712_v52 }
0x12ce   : > { %8144 = vmatpush3.bf16.msra.mxu0 %v11721_v11 }
0x12cf   : > { %8146 = vmatprep.subr.bf16.mxu0 %v11816_v59 }
0x12d2   : > { %8148 = vmatpush3.bf16.msra.mxu0 %v11824_v7 }
0x12d3   : > { %8174 = vmatprep.subr.bf16.mxu0 %v11608_v33  ;;  %v6269_v33 = vld [vmem:[%s12023_s13 + $0x10] sm:$0xff] }
0x1370   : > { %v6238_v42 = vpop.f32.mrb[96].mxu0 }
0x1371   : > { %v6240_v41 = vpop.f32.mrb[97].mxu0  ;;  %v6279_v37 = vmul.f32 %v6267_v32, %v6238_v42  ;;  %v7818_v42 = vld [vmem:[%s12023_s13 + $0x70] sm:$0xff] }
0x1372   : > { %v6280_v53 = vmul.f32 %v6268_v20, %v6240_v41  ;;  %v6242_v12 = vpop.f32.mrb[98].mxu0 }
0x1373   : > { %v6244_v10 = vpop.f32.mrb[99].mxu0  ;;  %v6281_v45 = vmul.f32 %v6269_v33, %v6242_v12  ;;  %v7820_v12 = vld [vmem:[%s12023_s13 + $0x80] sm:$0xff] }
0x1374   : > { %6387 = vmatprep.mubr.f32.mxu1 %v6280_v53  ;;  %v6282_v57 = vmul.f32 %v6270_v56, %v6244_v10  ;;  %v7821_v56 = vld [vmem:[%s12023_s13 + $0x88] sm:$0xff]  ;;  %v7823_v10 = vld [vmem:[%s12023_s13 + $0x98] sm:$0xff] }
0x1375   : > { %6388 = vmatmul.mubr.f32.vlgmr.msra.gmra.mrb[104].mxu1 %v6279_v37 }
0x1376   : > { %6392 = vmatprep.mubr.f32.mxu1 %v6282_v57 }
0x1378   : > { %v6248_v58 = vpop.f32.mrb[100].mxu0 }
0x1379   : > { %v6250_v9 = vpop.f32.mrb[101].mxu0  ;;  %6393 = vmatmul.mubr.f32.gmra.mrb[106].mxu1 %v6281_v45  ;;  %v6283_v3 = vmul.f32 %v6271_v5, %v6248_v58  ;;  %v7825_v5 = vld [vmem:[%s12023_s13 + $0xa8] sm:$0xff] }
0x137a   : > { %v6284_v35 = vmul.f32 %v6272_v47, %v6250_v9  ;;  %v6252_v39 = vpop.f32.mrb[102].mxu0 }
0x137b   : > { %v6254_v24 = vpop.f32.mrb[103].mxu0  ;;  %v6285_v61 = vmul.f32 %v6273_v26, %v6252_v39 }
0x137c   : > { %v6286_v46 = vmul.f32 %v6274_v16, %v6254_v24  ;;  %6397 = vmatprep.mubr.f32.mxu1 %v6284_v35  ;;  %v7827_v16 = vld [vmem:[%s12023_s13 + $0xb8] sm:$0xff] }
0x137d   : > { %6398 = vmatmul.mubr.f32.gmra.mrb[108].mxu1 %v6283_v3 }
0x137e   : > { %6402 = vmatprep.mubr.f32.mxu1 %v6286_v46 }
0x1380   : > { %v6258_v40 = vpop.f32.mrb[104].mxu0 }
0x1381   : > { %v6260_v6 = vpop.f32.mrb[105].mxu0  ;;  %6403 = vmatmul.mubr.f32.gmra.mrb[110].mxu1 %v6285_v61  ;;  %v6287_v25 = vmul.f32 %v6275_v8, %v6258_v40 }
0x1382   : > { %v6288_v18 = vmul.f32 %v6276_v38, %v6260_v6  ;;  %v6262_v19 = vpop.f32.mrb[106].mxu0 }
0x1383   : > { %v6264_v14 = vpop.f32.mrb[107].mxu0  ;;  %v6289_v54 = vmul.f32 %v6277_v55, %v6262_v19 }
0x1384   : > { %v6290_v22 = vmul.f32 %v6278_v30, %v6264_v14  ;;  %6407 = vmatprep.mubr.f32.mxu1 %v6288_v18 }
0x1385   : > { %6408 = vmatmul.mubr.f32.gmra.mrb[112].mxu1 %v6287_v25 }
0x1386   : > { %6412 = vmatprep.mubr.f32.mxu1 %v6290_v22 }
0x1388   : > { %v6485_v34 = vpop.f32.mrb[108].mxu0 }
0x1389   : > { %v6487_v17 = vpop.f32.mrb[109].mxu0  ;;  %6413 = vmatmul.mubr.f32.gmra.mrb[114].mxu1 %v6289_v54  ;;  %v6527_v21 = vmul.f32 %v7816_v60, %v6485_v34 }
0x138a   : > { %v6528_v1 = vmul.f32 %v7817_v28, %v6487_v17  ;;  %v6489_v15 = vpop.f32.mrb[110].mxu0 }
0x138b   : > { %v6491_v20 = vpop.f32.mrb[111].mxu0  ;;  %v6529_v41 = vmul.f32 %v7818_v42, %v6489_v15 }
0x138c   : > { %6603 = vmatprep.mubr.f32.mxu0 %v6528_v1  ;;  %v6530_v32 = vmul.f32 %v7819_v13, %v6491_v20 }
0x138d   : > { %6604 = vmatmul.mubr.f32.vlgmr.msra.gmra.mrb[120].mxu0 %v6527_v21 }
0x138e   : > { %6608 = vmatprep.mubr.f32.mxu0 %v6530_v32  ;;  %8176 = vmatpush3.bf16.msra.mxu0 %v11619_v44 }
0x138f   : > { %8178 = vmatprep.subr.bf16.mxu0 %v11621_v43  ;;  %v7822_v43 = vld [vmem:[%s12023_s13 + $0x90] sm:$0xff] }
0x1390   : > { %v6495_v53 = vpop.f32.mrb[112].mxu0 }
0x1391   : > { %v6497_v37 = vpop.f32.mrb[113].mxu0  ;;  %6609 = vmatmul.mubr.f32.gmra.mrb[122].mxu0 %v6529_v41  ;;  %v6531_v57 = vmul.f32 %v7820_v12, %v6495_v53 }
0x1392   : > { %v6532_v33 = vmul.f32 %v7821_v56, %v6497_v37  ;;  %v6499_v44 = vpop.f32.mrb[114].mxu0  ;;  %8180 = vmatpush3.bf16.msra.mxu0 %v11637_v27 }
0x1393   : > { %v6501_v45 = vpop.f32.mrb[115].mxu0  ;;  %8182 = vmatprep.subr.bf16.mxu0 %v11640_v31  ;;  %v6533_v58 = vmul.f32 %v7822_v43, %v6499_v44  ;;  %v7824_v31 = vld [vmem:[%s12023_s13 + $0xa0] sm:$0xff] }
0x1394   : > { %6613 = vmatprep.mubr.f32.mxu0 %v6532_v33  ;;  %v6534_v47 = vmul.f32 %v7823_v10, %v6501_v45  ;;  %v7829_v45 = vld [vmem:[%s12025_s15 + $0x18] sm:$0xf]  ;;  %v6418_v43 = vld [vmem:[%s12025_s15] sm:$0xff] }
0x1395   : > { %6614 = vmatmul.mubr.f32.gmra.mrb[124].mxu0 %v6531_v57 }
0x1396   : > { %6618 = vmatprep.mubr.f32.mxu0 %v6534_v47  ;;  %8184 = vmatpush3.bf16.msra.mxu0 %v11655_v62  ;;  %v6419_v47 = vld [vmem:[%s12025_s15 + $0x8] sm:$0xf] }
0x1397   : > { %8186 = vmatprep.subr.bf16.mxu0 %v11658_v51  ;;  %v7826_v51 = vld [vmem:[%s12023_s13 + $0xb0] sm:$0xff] }
0x1398   : > { %v6505_v27 = vpop.f32.mrb[116].mxu0 }
0x1399   : > { %v6507_v9 = vpop.f32.mrb[117].mxu0  ;;  %6619 = vmatmul.mubr.f32.gmra.mrb[126].mxu0 %v6533_v58  ;;  %v6535_v39 = vmul.f32 %v7824_v31, %v6505_v27  ;;  %v8792_v58 = vld [vmem:[%s12022_s12 + $0x30] sm:$0xff]   ;;  %v7846_v31 = vld [vmem:[%s12023_s13 + $0xc0] sm:$0xff] }
0x139a   : > { %v6536_v35 = vmul.f32 %v7825_v5, %v6507_v9  ;;  %v6509_v62 = vpop.f32.mrb[118].mxu0  ;;  %8188 = vmatpush3.bf16.msra.mxu0 %v11673_v49  ;;  %v7828_v49 = vld [vmem:[%s12025_s15 + $0x10] sm:$0xff]  ;;  %v7847_v5 = vld [vmem:[%s12023_s13 + $0xc8] sm:$0xff]  ;;  %v7849_v9 = vld [vmem:[%s12023_s13 + $0xd8] sm:$0xff] }
0x139b   : > { %v6511_v3 = vpop.f32.mrb[119].mxu0  ;;  %8190 = vmatprep.subr.bf16.mxu0 %v11676_v50  ;;  %v6537_v26 = vmul.f32 %v7826_v51, %v6509_v62  ;;  %8052 = vmatprep.mubr.msk.f32.mxu1 %vm6637_vm3, %v7828_v49 }
0x139c   : > { %6623 = vmatprep.mubr.f32.mxu0 %v6536_v35  ;;  %v6538_v24 = vmul.f32 %v7827_v16, %v6511_v3  ;;  %v7848_v3 = vld [vmem:[%s12023_s13 + $0xd0] sm:$0xff] }
0x139d   : > { %6624 = vmatmul.mubr.f32.gmra.mrb[128].mxu0 %v6535_v39 }
0x139e   : > { %6628 = vmatprep.mubr.f32.mxu0 %v6538_v24  ;;  %8192 = vmatpush3.bf16.msra.mxu0 %v11691_v63 }
0x139f   : > { %8194 = vmatprep.subr.bf16.mxu0 %v11694_v48 }
0x13a1   : > { %6629 = vmatmul.mubr.f32.gmra.mrb[130].mxu0 %v6537_v26  ;;  %v7851_v26 = vld [vmem:[%s12023_s13 + $0xe8] sm:$0xff] }
0x13a2   : > { %8196 = vmatpush3.bf16.msra.mxu0 %v11709_v36 }
0x13a3   : > { %8198 = vmatprep.subr.bf16.mxu0 %v11712_v52 }
0x13a6   : > { %8200 = vmatpush3.bf16.msra.mxu0 %v11721_v11 }
0x13a7   : > { %8202 = vmatprep.subr.bf16.mxu0 %v11816_v59 }
0x13aa   : > { %8204 = vmatpush3.bf16.msra.mxu0 %v11824_v7 }
0x1448   : > { %v7898_v50 = vpop.f32.mrb[104].mxu1 }
0x1449   : > { %v7899_v63 = vpop.f32.mrb[105].mxu1 }
0x144a   : > { %v7900_v48 = vadd.f32 %v7899_v63, %v7898_v50  ;;  %v7850_v50 = vld [vmem:[%s12023_s13 + $0xe0] sm:$0xff] }
0x144c   : > { %v7901_v46 = vpop.f32.mrb[106].mxu1 }
0x144d   : > { %v7902_v36 = vpop.f32.mrb[107].mxu1 }
0x144e   : > { %v7903_v61 = vadd.f32 %v7902_v36, %v7901_v46 }
0x1450   : > { %v8161_v52 = vpack.c.bf16 %v7903_v61, %v7900_v48  ;;  %v7904_v38 = vpop.f32.mrb[108].mxu1  ;;  %v7853_v48 = vld [vmem:[%s12023_s13 + $0xf8] sm:$0xff] }
0x1451   : > { %v7905_v11 = vpop.f32.mrb[109].mxu1 }
0x1452   : > { %v7906_v40 = vadd.f32 %v7905_v11, %v7904_v38  ;;  %v7852_v38 = vld [vmem:[%s12023_s13 + $0xf0] sm:$0xff] }
0x1454   : > { %v7907_v59 = vpop.f32.mrb[110].mxu1 }
0x1455   : > { %v7908_v8 = vpop.f32.mrb[111].mxu1 }
0x1456   : > { %v7909_v7 = vadd.f32 %v7908_v8, %v7907_v59  ;;  %v7855_v59 = vld [vmem:[%s12023_s13 + $0x108] sm:$0xff] }
0x1458   : > { %v8165_v6 = vpack.c.bf16 %v7909_v7, %v7906_v40  ;;  %v7910_v30 = vpop.f32.mrb[112].mxu1  ;;  %v7854_v7 = vld [vmem:[%s12023_s13 + $0x100] sm:$0xff] }
0x1459   : > { %v7911_v18 = vpop.f32.mrb[113].mxu1 }
0x145a   : > { %v7912_v19 = vadd.f32 %v7911_v18, %v7910_v30  ;;  %v7857_v30 = vld [vmem:[%s12023_s13 + $0x118] sm:$0xff] }
0x145c   : > { %v7913_v25 = vpop.f32.mrb[114].mxu1 }
0x145d   : > { %v7914_v14 = vpop.f32.mrb[115].mxu1 }
0x145e   : > { %v7915_v55 = vadd.f32 %v7914_v14, %v7913_v25 }
0x1460   : > { %v8169_v22 = vpack.c.bf16 %v7915_v55, %v7912_v19  ;;  %v7948_v54 = vpop.f32.mrb[120].mxu0  ;;  %v7856_v55 = vld [vmem:[%s12023_s13 + $0x110] sm:$0xff] }
0x1461   : > { %v7949_v28 = vpop.f32.mrb[121].mxu0 }
0x1462   : > { %v7950_v34 = vadd.f32 %v7949_v28, %v7948_v54  ;;  %v7858_v28 = vld [vmem:[%s12025_s15 + $0x20] sm:$0xff] }
0x1464   : > { %v7951_v60 = vpop.f32.mrb[122].mxu0 }
0x1465   : > { %v7952_v17 = vpop.f32.mrb[123].mxu0 }
0x1466   : > { %v7953_v13 = vadd.f32 %v7952_v17, %v7951_v60 }
0x1468   : > { %v8149_v1 = vpack.c.bf16 %v7953_v13, %v7950_v34  ;;  %v7954_v15 = vpop.f32.mrb[124].mxu0 }
0x1469   : > { %v7955_v21 = vpop.f32.mrb[125].mxu0 }
0x146a   : > { %v7956_v20 = vadd.f32 %v7955_v21, %v7954_v15  ;;  %8150 = vmatprep.subr.bf16.mxu1 %v8149_v1 }
0x146b   : > { %8152 = vmatpush3.bf16.msra.mxu1 %v8149_v1 }
0x146c   : > { %v7957_v42 = vpop.f32.mrb[126].mxu0 }
0x146d   : > { %v7958_v32 = vpop.f32.mrb[127].mxu0 }
0x146e   : > { %v7959_v41 = vadd.f32 %v7958_v32, %v7957_v42 }
0x1470   : > { %v8153_v56 = vpack.c.bf16 %v7959_v41, %v7956_v20  ;;  %v7960_v53 = vpop.f32.mrb[128].mxu0 }
0x1471   : > { %v7961_v12 = vpop.f32.mrb[129].mxu0 }
0x1472   : > { %v7962_v37 = vadd.f32 %v7961_v12, %v7960_v53  ;;  %8154 = vmatprep.subr.bf16.mxu1 %v8153_v56 }
0x1473   : > { %8156 = vmatpush3.bf16.msra.mxu1 %v8153_v56 }
0x1474   : > { %v7963_v10 = vpop.f32.mrb[130].mxu0 }
0x1475   : > { %v7964_v33 = vpop.f32.mrb[131].mxu0 }
0x1476   : > { %v7965_v44 = vadd.f32 %v7964_v33, %v7963_v10 }
0x1478   : > { %v8157_v57 = vpack.c.bf16 %v7965_v44, %v7962_v37 }
0x147a   : > { %8158 = vmatprep.subr.bf16.mxu1 %v8157_v57 }
0x147b   : > { %8160 = vmatpush3.bf16.msra.mxu1 %v8157_v57 }
0x147c   : > { %8162 = vmatprep.subr.bf16.mxu1 %v8161_v52 }
0x147e   : > { %8053 = vmatmul.mubr.msk.f32.vlgmr.msra.gmra.mrb[116].mxu1 %vm6637_vm3, %v7829_v45 }
0x147f   : > { %8164 = vmatpush3.bf16.msra.mxu1 %v8161_v52  ;;  %8067 = vmatprep.mubr.msk.f32.mxu1 %vm6637_vm3, %v6418_v43 }
0x1480   : > { %8166 = vmatprep.subr.bf16.mxu1 %v8165_v6 }
0x1483   : > { %8168 = vmatpush3.bf16.msra.mxu1 %v8165_v6 }
0x1484   : > { %8170 = vmatprep.subr.bf16.mxu1 %v8169_v22 }
0x1487   : > { %8172 = vmatpush3.bf16.msra.mxu1 %v8169_v22 }
0x1488   : > { %6831 = vmatprep.subr.bf16.mxu1 %v11749_v4  ;;  %v8793_v4 = vld [vmem:[%s12022_s12 + $0x38] sm:$0xff]  }
0x148a   : > { %8068 = vmatmul.mubr.msk.f32.vlgmr.msra.gmra.mrb[116].mxu1 %vm6637_vm3, %v6419_v47  ;;  %v7859_v47 = vld [vmem:[%s12025_s15 + $0x28] sm:$0xf] }
0x148b   : > { %6832 = vmatpush1.bf16.msra.mxu1 %v11746_v29  ;;  %6863 = vmatprep.mubr.bf16.mxu1 %v9186_v0  ;;  %v8794_v29 = vld [vmem:[%s12022_s12 + $0x40] sm:$0xff]  }
0x148c   : > { %6833 = vmatprep.subr.bf16.mxu1 %v11759_v2 }
0x148f   : > { %6834 = vmatpush1.bf16.msra.mxu1 %v11757_v23 }
0x1492   : > { %7843 = vmatmul.mubr.msk.bf16.vlgmr.msra.gmra.mrb[120].mxu1 %vm602_vm0, %v8792_v58 }
0x1493   : > { %6873 = vmatprep.mubr.bf16.mxu1 %v9186_v0 }
0x149a   : > { %7844 = vmatmul.mubr.msk.bf16.gmra.mrb[124].mxu1 %vm602_vm0, %v8793_v4 }
0x149b   : > { %6883 = vmatprep.mubr.bf16.mxu1 %v9186_v0 }
0x14a2   : > { %7845 = vmatmul.mubr.msk.bf16.gmra.mrb[128].mxu1 %vm602_vm0, %v8794_v29 }
0x155d   : > { %v11953_v2 = vpop.f32.mrb[116].mxu1 }
0x155e   : > { %v11955_v23 = vpop.f32.mrb[117].mxu1 }
0x1565   : > { %v6865_v27 = vpop.f32.mrb[120].mxu1 }
0x1566   : > { %v6867_v0 = vpop.f32.mrb[121].mxu1  ;;  %v6907_v62 = vmul.f32 %v7846_v31, %v6865_v27  ;;  %v7105_v31 = vpop.permute.xlu1 %7104 }
0x1567   : > { %v6908_v16 = vmul.f32 %v7847_v5, %v6867_v0  ;;  %v6869_v35 = vpop.f32.mrb[122].mxu1  ;;  %v7110_v5 = vpop.permute.xlu0 %7109 }
0x1568   : > { %v6871_v39 = vpop.f32.mrb[123].mxu1  ;;  %v6909_v24 = vmul.f32 %v7848_v3, %v6869_v35 }
0x1569   : > { %6983 = vmatprep.mubr.f32.mxu0 %v6908_v16  ;;  %v6910_v51 = vmul.f32 %v7849_v9, %v6871_v39 }
0x156a   : > { %6984 = vmatmul.mubr.f32.vlgmr.msra.gmra.mrb[132].mxu0 %v6907_v62 }
0x156b   : > { %6988 = vmatprep.mubr.f32.mxu0 %v6910_v51 }
0x156d   : > { %v6875_v49 = vpop.f32.mrb[124].mxu1 }
0x156e   : > { %v6877_v63 = vpop.f32.mrb[125].mxu1  ;;  %6989 = vmatmul.mubr.f32.gmra.mrb[134].mxu0 %v6909_v24  ;;  %v6911_v61 = vmul.f32 %v7850_v50, %v6875_v49 }
0x156f   : > { %v6912_v46 = vmul.f32 %v7851_v26, %v6877_v63  ;;  %v6879_v36 = vpop.f32.mrb[126].mxu1 }
0x1570   : > { %v6881_v52 = vpop.f32.mrb[127].mxu1  ;;  %v6913_v40 = vmul.f32 %v7852_v38, %v6879_v36 }
0x1571   : > { %6993 = vmatprep.mubr.f32.mxu0 %v6912_v46  ;;  %v6914_v11 = vmul.f32 %v7853_v48, %v6881_v52 }
0x1572   : > { %6994 = vmatmul.mubr.f32.gmra.mrb[136].mxu0 %v6911_v61 }
0x1573   : > { %6998 = vmatprep.mubr.f32.mxu0 %v6914_v11 }
0x1575   : > { %v6885_v8 = vpop.f32.mrb[128].mxu1 }
0x1576   : > { %v6887_v6 = vpop.f32.mrb[129].mxu1  ;;  %6999 = vmatmul.mubr.f32.gmra.mrb[138].mxu0 %v6913_v40  ;;  %v6915_v25 = vmul.f32 %v7854_v7, %v6885_v8 }
0x1577   : > { %v6916_v18 = vmul.f32 %v7855_v59, %v6887_v6  ;;  %v6889_v19 = vpop.f32.mrb[130].mxu1 }
0x1578   : > { %v6891_v14 = vpop.f32.mrb[131].mxu1  ;;  %v6917_v54 = vmul.f32 %v7856_v55, %v6889_v19 }
0x1579   : > { %7003 = vmatprep.mubr.f32.mxu0 %v6916_v18  ;;  %v6918_v22 = vmul.f32 %v7857_v30, %v6891_v14 }
0x157a   : > { %7004 = vmatmul.mubr.f32.gmra.mrb[140].mxu0 %v6915_v25 }
0x157b   : > { %7008 = vmatprep.mubr.f32.mxu0 %v6918_v22 }
0x157e   : > { %7009 = vmatmul.mubr.f32.gmra.mrb[142].mxu0 %v6917_v54 }
0x157f   : > { %8082 = vmatprep.mubr.msk.f32.mxu0 %vm6637_vm3, %v7858_v28 }
0x163d   : > { %v8014_v34 = vpop.f32.mrb[132].mxu0 }
0x163e   : > { %v8015_v60 = vpop.f32.mrb[133].mxu0 }
0x163f   : > { %v8016_v17 = vadd.f32 %v8015_v60, %v8014_v34 }
0x1641   : > { %v8017_v13 = vpop.f32.mrb[134].mxu0 }
0x1642   : > { %v8018_v1 = vpop.f32.mrb[135].mxu0 }
0x1643   : > { %v8019_v15 = vadd.f32 %v8018_v1, %v8017_v13 }
0x1645   : > { %v8205_v21 = vpack.c.bf16 %v8019_v15, %v8016_v17  ;;  %v8020_v20 = vpop.f32.mrb[136].mxu0 }
0x1646   : > { %v8021_v42 = vpop.f32.mrb[137].mxu0 }
0x1647   : > { %v8022_v32 = vadd.f32 %v8021_v42, %v8020_v20  ;;  %8206 = vmatprep.subr.bf16.mxu0 %v8205_v21 }
0x1648   : > { %8208 = vmatpush3.bf16.msra.mxu0 %v8205_v21 }
0x1649   : > { %v8023_v41 = vpop.f32.mrb[138].mxu0 }
0x164a   : > { %v8024_v56 = vpop.f32.mrb[139].mxu0 }
0x164b   : > { %v8025_v53 = vadd.f32 %v8024_v56, %v8023_v41 }
0x164d   : > { %v8209_v12 = vpack.c.bf16 %v8025_v53, %v8022_v32  ;;  %v8026_v37 = vpop.f32.mrb[140].mxu0 }
0x164e   : > { %v8027_v10 = vpop.f32.mrb[141].mxu0 }
0x164f   : > { %v8028_v33 = vadd.f32 %v8027_v10, %v8026_v37  ;;  %8210 = vmatprep.subr.bf16.mxu0 %v8209_v12 }
0x1650   : > { %8212 = vmatpush3.bf16.msra.mxu0 %v8209_v12 }
0x1651   : > { %v8029_v44 = vpop.f32.mrb[142].mxu0 }
0x1652   : > { %v8030_v57 = vpop.f32.mrb[143].mxu0 }
0x1653   : > { %v8031_v45 = vadd.f32 %v8030_v57, %v8029_v44 }
0x1655   : > { %v8213_v43 = vpack.c.bf16 %v8031_v45, %v8028_v33 }
0x1657   : > { %8214 = vmatprep.subr.bf16.mxu0 %v8213_v43 }
0x1658   : > { %8216 = vmatpush3.bf16.msra.mxu0 %v8213_v43 }
0x165b   : > { %8083 = vmatmul.mubr.msk.f32.vlgmr.msra.gmra.mrb[144].mxu0 %vm6637_vm3, %v7859_v47 }
0x172e   : > { %v8084_v58 = vpop.f32.mrb[144].mxu0 }
0x172f   : > { %v8273_v4 = vadd.f32 %v8084_v58, %v11953_v2  ;;  %v7089_v29 = vpop.f32.mrb[145].mxu0 }
0x1730   : > { %v8274_v27 = vadd.f32 %v7089_v29, %v11955_v23 }
0x1731   : > { %v7113_v0 = vadd.f32 %v8273_v4, %v7110_v5 }
0x1732   : > { %v7112_v9 = vadd.f32 %v8274_v27, %v7105_v31 }
0x1733   : > { %7117 = vst.msk [vmem:[%s548_s0 + $0x8] sm:$0xf] %vm7116_vm4, %v7113_v0 }
0x1734   : > { %7115 = vst.msk [vmem:[%s548_s0] sm:$0xff] %vm7114_vm5, %v7112_v9 }
0x1735 PF: > { %s27_s24 = sadd.s32 1, %s9184_s24  }
0x1736   : > { %p24_p4 = scmp.ge.s32.totalorder %s27_s24, 4  }
0x1738   :  { %26 = sbr.rel (!%p24_p4) target bundleno = 3 (0x3), region = 160 }

</bundles_post_ra>
